<compile_context>
chip_gen: v7x
topology: tpu7x:2x2x1
jax: 0.10.0
libtpu: 0.0.40
codegen_flags: <defaults>
</compile_context>

<pallas_src>
import functools

import jax
import jax.numpy as jnp
from jax.experimental import pallas as pl
from jax.experimental.pallas import tpu as pltpu

WIDE = 1024       # wide_factor
NARROW = 256      # narrow_factor
CP = 128          # lane-dense padded class width
NEG = -1e30       # bias for padded (fake) classes -> exp() == 0
MAX_TB = 256      # batch tile (rows); small enough for v7x's 64 MiB VMEM


def _round_up(n, m):
    return ((n + m - 1) // m) * m


def mlp_kernel(x_ref, w0_ref, w_w2n_ref, w_n2w_ref, w6_ref, b_ref, out_ref):
    """Fused 7-layer MLP + softmax for one batch tile.

    Weights are bf16 (MXU inputs), accumulation and epilogue are f32.
    b_ref is the packed (8, 1024) f32 bias table (row i = bias of layer i;
    row 6 holds the final bias padded with NEG past the real class count).
    """

    def dense(h, w_bf16, b_row, relu=True):
        y = jnp.dot(h.astype(jnp.bfloat16), w_bf16,
                    preferred_element_type=jnp.float32) + b_row
        return jnp.maximum(y, 0.0) if relu else y

    h = x_ref[...].astype(jnp.float32)
    h = dense(h, w0_ref[...],   b_ref[0:1, :WIDE])     # (TB, 1024)
    h = dense(h, w_w2n_ref[0],  b_ref[1:2, :NARROW])   # (TB, 256)
    h = dense(h, w_n2w_ref[0],  b_ref[2:3, :WIDE])     # (TB, 1024)
    h = dense(h, w_w2n_ref[1],  b_ref[3:4, :NARROW])   # (TB, 256)
    h = dense(h, w_n2w_ref[1],  b_ref[4:5, :WIDE])     # (TB, 1024)
    h = dense(h, w_w2n_ref[2],  b_ref[5:6, :NARROW])   # (TB, 256)

    # Final layer, lane-dense padded to CP columns (fake columns have bias NEG).
    logits = dense(h, w6_ref[...], b_ref[6:7, :CP], relu=False)   # (TB, CP)

    # Numerically stable softmax over dim=1; padded columns contribute exp()==0.
    z = logits - jnp.max(logits, axis=1, keepdims=True)
    e = jnp.exp(z)
    inv = pl.reciprocal(jnp.sum(e, axis=1, keepdims=True), approx=False)
    out_ref[...] = e * inv


def prepare_params(params):
    """Convert list of (W, b) f32 params (W shaped (in, out)) into the packed
    bf16/f32 operands the kernel expects."""
    w0 = params[0][0].astype(jnp.bfloat16)                                  # (F, 1024)
    w_w2n = jnp.stack([params[1][0], params[3][0], params[5][0]]).astype(jnp.bfloat16)  # (3,1024,256)
    w_n2w = jnp.stack([params[2][0], params[4][0]]).astype(jnp.bfloat16)                # (2,256,1024)

    w6, b6 = params[6]
    n_classes = w6.shape[1]
    assert n_classes <= CP, "n_classes > 128 needs a wider CP"
    w6p = jnp.zeros((NARROW, CP), jnp.bfloat16).at[:, :n_classes].set(
        w6.astype(jnp.bfloat16))                                            # (256, 128)

    # Packed bias table, f32, (8, 1024): row i = bias of layer i (zero padded).
    b_pack = jnp.zeros((8, WIDE), jnp.float32)
    b_pack = b_pack.at[0, :WIDE].set(params[0][1])
    b_pack = b_pack.at[1, :NARROW].set(params[1][1])
    b_pack = b_pack.at[2, :WIDE].set(params[2][1])
    b_pack = b_pack.at[3, :NARROW].set(params[3][1])
    b_pack = b_pack.at[4, :WIDE].set(params[4][1])
    b_pack = b_pack.at[5, :NARROW].set(params[5][1])
    b6_row = jnp.full((CP,), NEG, jnp.float32).at[:n_classes].set(b6)
    b_pack = b_pack.at[6, :CP].set(b6_row)

    return w0, w_w2n, w_n2w, w6p, b_pack, n_classes


@functools.partial(jax.jit, static_argnames=("n_classes",))
def mlp_forward(x, w0, w_w2n, w_n2w, w6p, b_pack, *, n_classes):
    """x: (B, F) f32. Returns (B, n_classes) f32 softmax probabilities."""
    B, F = x.shape

    # Batch tile: multiple of 8 sublanes, capped so the activation tiles +
    # resident bf16 weights stay far below v7x's 64 MiB VMEM.
    TB = min(MAX_TB, _round_up(B, 8))
    Bp = _round_up(B, TB)
    if Bp != B:
        x = jnp.pad(x, ((0, Bp - B), (0, 0)))

    grid = (Bp // TB,)

    out = pl.pallas_call(
        mlp_kernel,
        out_shape=jax.ShapeDtypeStruct((Bp, CP), jnp.float32),
        grid_spec=pltpu.PrefetchScalarGridSpec(
            num_scalar_prefetch=0,
            grid=grid,
            in_specs=[
                pl.BlockSpec((TB, F), lambda i: (i, 0)),          # x tile (pipelined)
                pl.BlockSpec(w0.shape, lambda i: (0, 0)),         # weights stay resident
                pl.BlockSpec(w_w2n.shape, lambda i: (0, 0, 0)),
                pl.BlockSpec(w_n2w.shape, lambda i: (0, 0, 0)),
                pl.BlockSpec(w6p.shape, lambda i: (0, 0)),
                pl.BlockSpec(b_pack.shape, lambda i: (0, 0)),
            ],
            out_specs=pl.BlockSpec((TB, CP), lambda i: (i, 0)),   # lane-dense store
        ),
        compiler_params=pltpu.CompilerParams(
            dimension_semantics=("parallel",),
            vmem_limit_bytes=32 << 20,
        ),
    )(x, w0, w_w2n, w_n2w, w6p, b_pack)

    return out[:B, :n_classes]


def init_params(key, n_features, n_classes):
    """nn.Linear default init U(-k, k), k=1/sqrt(fan_in); W stored (in, out)."""
    dims = [n_features, WIDE, NARROW, WIDE, NARROW, WIDE, NARROW, n_classes]
    params = []
    for i in range(len(dims) - 1):
        fan_in, fan_out = dims[i], dims[i + 1]
        k = 1.0 / jnp.sqrt(jnp.float32(fan_in))
        key, kw, kb = jax.random.split(key, 3)
        w = jax.random.uniform(kw, (fan_in, fan_out), jnp.float32, -k, k)
        b = jax.random.uniform(kb, (fan_out,), jnp.float32, -k, k)
        params.append((w, b))
    return params


def reference_forward(x, params, weight_dtype=jnp.float32):
    """Pure-JAX reference of the same forward pass."""
    h = x
    n = len(params)
    for i, (w, b) in enumerate(params):
        if weight_dtype == jnp.bfloat16:
            h = jnp.dot(h.astype(jnp.bfloat16), w.astype(jnp.bfloat16),
                        preferred_element_type=jnp.float32) + b
        else:
            h = h @ w + b
        if i < n - 1:
            h = jnp.maximum(h, 0.0)
    return jax.nn.softmax(h, axis=1)


if __name__ == "__main__":
    B = 8            # batch
    N_FEATURES = 32
    N_CLASSES = 8

    key = jax.random.PRNGKey(0)
    key, kx = jax.random.split(key)
    x = jax.random.normal(kx, (B, N_FEATURES), jnp.float32)
    params = init_params(key, N_FEATURES, N_CLASSES)

    w0, w_w2n, w_n2w, w6p, b_pack, n_classes = prepare_params(params)
    out = mlp_forward(x, w0, w_w2n, w_n2w, w6p, b_pack, n_classes=n_classes)
    out = jax.block_until_ready(out)

    assert out.shape == (B, N_CLASSES)
    # Proper probability distribution.
    assert jnp.allclose(jnp.sum(out, axis=1), 1.0, atol=1e-4)
    # Matches a reference that uses the same bf16 weights / f32 accumulate.
    ref_bf16 = reference_forward(x, params, weight_dtype=jnp.bfloat16)
    assert jnp.allclose(out, ref_bf16, atol=5e-4, rtol=5e-4)
    # Close to the full-f32 reference (bf16 weight quantization only).
    ref_f32 = reference_forward(x, params, weight_dtype=jnp.float32)
    assert jnp.allclose(out, ref_f32, atol=2e-2)

    print("KERNEL_OK")
</pallas_src>

<mosaic_0001>
module attributes {stable_mosaic.version = 11 : i64} {
  func.func @mlp_kernel(%arg0: i32, %arg1: memref<8x32xf32, #tpu.memory_space<vmem>>, %arg2: memref<32x1024xbf16, #tpu.memory_space<vmem>>, %arg3: memref<3x1024x256xbf16, #tpu.memory_space<vmem>>, %arg4: memref<2x256x1024xbf16, #tpu.memory_space<vmem>>, %arg5: memref<256x128xbf16, #tpu.memory_space<vmem>>, %arg6: memref<8x1024xf32, #tpu.memory_space<vmem>>, %arg7: memref<8x128xf32, #tpu.memory_space<vmem>>) attributes {dimension_semantics = [#tpu.dimension_semantics<parallel>], iteration_bounds = array<i64: 1>, scalar_prefetch = 0 : i64, scratch_operands = 0 : i64, tpu.core_type = #tpu.core_type<tc>, window_params = [{transform_indices = @transform_0, window_bounds = array<i64: 8, 32>}, {pipeline_mode = #tpu.pipeline_mode<synchronous>, transform_indices = @transform_1, window_bounds = array<i64: 32, 1024>}, {pipeline_mode = #tpu.pipeline_mode<synchronous>, transform_indices = @transform_2, window_bounds = array<i64: 3, 1024, 256>}, {pipeline_mode = #tpu.pipeline_mode<synchronous>, transform_indices = @transform_3, window_bounds = array<i64: 2, 256, 1024>}, {pipeline_mode = #tpu.pipeline_mode<synchronous>, transform_indices = @transform_4, window_bounds = array<i64: 256, 128>}, {pipeline_mode = #tpu.pipeline_mode<synchronous>, transform_indices = @transform_5, window_bounds = array<i64: 8, 1024>}, {transform_indices = @transform_6, window_bounds = array<i64: 8, 128>}]} {
    %c0 = arith.constant 0 : index
    %c0_0 = arith.constant 0 : index
    %0 = vector.load %arg1[%c0, %c0_0] : memref<8x32xf32, #tpu.memory_space<vmem>>, vector<8x32xf32>
    %c0_1 = arith.constant 0 : index
    %c0_2 = arith.constant 0 : index
    %1 = vector.load %arg2[%c0_1, %c0_2] : memref<32x1024xbf16, #tpu.memory_space<vmem>>, vector<32x1024xbf16>
    %c0_3 = arith.constant 0 : index
    %c0_4 = arith.constant 0 : index
    %2 = vector.load %arg6[%c0_3, %c0_4] : memref<8x1024xf32, #tpu.memory_space<vmem>>, vector<1x1024xf32>
    %3 = arith.truncf %0 : vector<8x32xf32> to vector<8x32xbf16>
    %cst = arith.constant dense<0.000000e+00> : vector<8x1024xf32>
    %4 = tpu.matmul %3, %1, %cst {dimension_numbers = #tpu.dot_dimension_numbers<[1], [0], [0], [1], [0, 0, 1, 1], [], []>} : vector<8x32xbf16>, vector<32x1024xbf16>, vector<8x1024xf32> -> vector<8x1024xf32>
    %5 = vector.broadcast %2 : vector<1x1024xf32> to vector<8x1024xf32>
    %6 = arith.addf %4, %5 : vector<8x1024xf32>
    %cst_5 = arith.constant 0.000000e+00 : f32
    %7 = vector.broadcast %cst_5 : f32 to vector<8x1024xf32>
    %8 = arith.maximumf %6, %7 : vector<8x1024xf32>
    %c0_6 = arith.constant 0 : index
    %c0_7 = arith.constant 0 : index
    %c0_8 = arith.constant 0 : index
    %9 = vector.load %arg3[%c0_6, %c0_7, %c0_8] : memref<3x1024x256xbf16, #tpu.memory_space<vmem>>, vector<1x1024x256xbf16>
    %10 = vector.shape_cast %9 : vector<1x1024x256xbf16> to vector<1024x256xbf16>
    %c1 = arith.constant 1 : index
    %c0_9 = arith.constant 0 : index
    %11 = vector.load %arg6[%c1, %c0_9] : memref<8x1024xf32, #tpu.memory_space<vmem>>, vector<1x256xf32>
    %12 = arith.truncf %8 : vector<8x1024xf32> to vector<8x1024xbf16>
    %cst_10 = arith.constant dense<0.000000e+00> : vector<8x256xf32>
    %13 = tpu.matmul %12, %10, %cst_10 {dimension_numbers = #tpu.dot_dimension_numbers<[1], [0], [0], [1], [0, 0, 1, 1], [], []>} : vector<8x1024xbf16>, vector<1024x256xbf16>, vector<8x256xf32> -> vector<8x256xf32>
    %14 = vector.broadcast %11 : vector<1x256xf32> to vector<8x256xf32>
    %15 = arith.addf %13, %14 : vector<8x256xf32>
    %cst_11 = arith.constant 0.000000e+00 : f32
    %16 = vector.broadcast %cst_11 : f32 to vector<8x256xf32>
    %17 = arith.maximumf %15, %16 : vector<8x256xf32>
    %c0_12 = arith.constant 0 : index
    %c0_13 = arith.constant 0 : index
    %c0_14 = arith.constant 0 : index
    %18 = vector.load %arg4[%c0_12, %c0_13, %c0_14] : memref<2x256x1024xbf16, #tpu.memory_space<vmem>>, vector<1x256x1024xbf16>
    %19 = vector.shape_cast %18 : vector<1x256x1024xbf16> to vector<256x1024xbf16>
    %c2 = arith.constant 2 : index
    %c0_15 = arith.constant 0 : index
    %20 = vector.load %arg6[%c2, %c0_15] : memref<8x1024xf32, #tpu.memory_space<vmem>>, vector<1x1024xf32>
    %21 = arith.truncf %17 : vector<8x256xf32> to vector<8x256xbf16>
    %cst_16 = arith.constant dense<0.000000e+00> : vector<8x1024xf32>
    %22 = tpu.matmul %21, %19, %cst_16 {dimension_numbers = #tpu.dot_dimension_numbers<[1], [0], [0], [1], [0, 0, 1, 1], [], []>} : vector<8x256xbf16>, vector<256x1024xbf16>, vector<8x1024xf32> -> vector<8x1024xf32>
    %23 = vector.broadcast %20 : vector<1x1024xf32> to vector<8x1024xf32>
    %24 = arith.addf %22, %23 : vector<8x1024xf32>
    %cst_17 = arith.constant 0.000000e+00 : f32
    %25 = vector.broadcast %cst_17 : f32 to vector<8x1024xf32>
    %26 = arith.maximumf %24, %25 : vector<8x1024xf32>
    %c1_18 = arith.constant 1 : index
    %c0_19 = arith.constant 0 : index
    %c0_20 = arith.constant 0 : index
    %27 = vector.load %arg3[%c1_18, %c0_19, %c0_20] : memref<3x1024x256xbf16, #tpu.memory_space<vmem>>, vector<1x1024x256xbf16>
    %28 = vector.shape_cast %27 : vector<1x1024x256xbf16> to vector<1024x256xbf16>
    %c3 = arith.constant 3 : index
    %c0_21 = arith.constant 0 : index
    %29 = vector.load %arg6[%c3, %c0_21] : memref<8x1024xf32, #tpu.memory_space<vmem>>, vector<1x256xf32>
    %30 = arith.truncf %26 : vector<8x1024xf32> to vector<8x1024xbf16>
    %cst_22 = arith.constant dense<0.000000e+00> : vector<8x256xf32>
    %31 = tpu.matmul %30, %28, %cst_22 {dimension_numbers = #tpu.dot_dimension_numbers<[1], [0], [0], [1], [0, 0, 1, 1], [], []>} : vector<8x1024xbf16>, vector<1024x256xbf16>, vector<8x256xf32> -> vector<8x256xf32>
    %32 = vector.broadcast %29 : vector<1x256xf32> to vector<8x256xf32>
    %33 = arith.addf %31, %32 : vector<8x256xf32>
    %cst_23 = arith.constant 0.000000e+00 : f32
    %34 = vector.broadcast %cst_23 : f32 to vector<8x256xf32>
    %35 = arith.maximumf %33, %34 : vector<8x256xf32>
    %c1_24 = arith.constant 1 : index
    %c0_25 = arith.constant 0 : index
    %c0_26 = arith.constant 0 : index
    %36 = vector.load %arg4[%c1_24, %c0_25, %c0_26] : memref<2x256x1024xbf16, #tpu.memory_space<vmem>>, vector<1x256x1024xbf16>
    %37 = vector.shape_cast %36 : vector<1x256x1024xbf16> to vector<256x1024xbf16>
    %c4 = arith.constant 4 : index
    %c0_27 = arith.constant 0 : index
    %38 = vector.load %arg6[%c4, %c0_27] : memref<8x1024xf32, #tpu.memory_space<vmem>>, vector<1x1024xf32>
    %39 = arith.truncf %35 : vector<8x256xf32> to vector<8x256xbf16>
    %cst_28 = arith.constant dense<0.000000e+00> : vector<8x1024xf32>
    %40 = tpu.matmul %39, %37, %cst_28 {dimension_numbers = #tpu.dot_dimension_numbers<[1], [0], [0], [1], [0, 0, 1, 1], [], []>} : vector<8x256xbf16>, vector<256x1024xbf16>, vector<8x1024xf32> -> vector<8x1024xf32>
    %41 = vector.broadcast %38 : vector<1x1024xf32> to vector<8x1024xf32>
    %42 = arith.addf %40, %41 : vector<8x1024xf32>
    %cst_29 = arith.constant 0.000000e+00 : f32
    %43 = vector.broadcast %cst_29 : f32 to vector<8x1024xf32>
    %44 = arith.maximumf %42, %43 : vector<8x1024xf32>
    %c2_30 = arith.constant 2 : index
    %c0_31 = arith.constant 0 : index
    %c0_32 = arith.constant 0 : index
    %45 = vector.load %arg3[%c2_30, %c0_31, %c0_32] : memref<3x1024x256xbf16, #tpu.memory_space<vmem>>, vector<1x1024x256xbf16>
    %46 = vector.shape_cast %45 : vector<1x1024x256xbf16> to vector<1024x256xbf16>
    %c5 = arith.constant 5 : index
    %c0_33 = arith.constant 0 : index
    %47 = vector.load %arg6[%c5, %c0_33] : memref<8x1024xf32, #tpu.memory_space<vmem>>, vector<1x256xf32>
    %48 = arith.truncf %44 : vector<8x1024xf32> to vector<8x1024xbf16>
    %cst_34 = arith.constant dense<0.000000e+00> : vector<8x256xf32>
    %49 = tpu.matmul %48, %46, %cst_34 {dimension_numbers = #tpu.dot_dimension_numbers<[1], [0], [0], [1], [0, 0, 1, 1], [], []>} : vector<8x1024xbf16>, vector<1024x256xbf16>, vector<8x256xf32> -> vector<8x256xf32>
    %50 = vector.broadcast %47 : vector<1x256xf32> to vector<8x256xf32>
    %51 = arith.addf %49, %50 : vector<8x256xf32>
    %cst_35 = arith.constant 0.000000e+00 : f32
    %52 = vector.broadcast %cst_35 : f32 to vector<8x256xf32>
    %53 = arith.maximumf %51, %52 : vector<8x256xf32>
    %c0_36 = arith.constant 0 : index
    %c0_37 = arith.constant 0 : index
    %54 = vector.load %arg5[%c0_36, %c0_37] : memref<256x128xbf16, #tpu.memory_space<vmem>>, vector<256x128xbf16>
    %c6 = arith.constant 6 : index
    %c0_38 = arith.constant 0 : index
    %55 = vector.load %arg6[%c6, %c0_38] : memref<8x1024xf32, #tpu.memory_space<vmem>>, vector<1x128xf32>
    %56 = arith.truncf %53 : vector<8x256xf32> to vector<8x256xbf16>
    %cst_39 = arith.constant dense<0.000000e+00> : vector<8x128xf32>
    %57 = tpu.matmul %56, %54, %cst_39 {dimension_numbers = #tpu.dot_dimension_numbers<[1], [0], [0], [1], [0, 0, 1, 1], [], []>} : vector<8x256xbf16>, vector<256x128xbf16>, vector<8x128xf32> -> vector<8x128xf32>
    %58 = vector.broadcast %55 : vector<1x128xf32> to vector<8x128xf32>
    %59 = arith.addf %57, %58 : vector<8x128xf32>
    %cst_40 = arith.constant dense<0xFF800000> : vector<8xf32>
    %60 = vector.multi_reduction <maximumf>, %59, %cst_40 [1] : vector<8x128xf32> to vector<8xf32>
    %61 = vector.shape_cast %60 : vector<8xf32> to vector<8x1xf32>
    %62 = vector.broadcast %61 : vector<8x1xf32> to vector<8x128xf32>
    %63 = arith.subf %59, %62 : vector<8x128xf32>
    %64 = math.exp %63 : vector<8x128xf32>
    %cst_41 = arith.constant dense<0.000000e+00> : vector<8xf32>
    %65 = vector.multi_reduction <add>, %64, %cst_41 [1] : vector<8x128xf32> to vector<8xf32>
    %66 = vector.shape_cast %65 : vector<8xf32> to vector<8x1xf32>
    %67 = tpu.reciprocal %66 : vector<8x1xf32> -> vector<8x1xf32>
    %68 = vector.broadcast %67 : vector<8x1xf32> to vector<8x128xf32>
    %69 = arith.mulf %64, %68 : vector<8x128xf32>
    %c0_42 = arith.constant 0 : index
    %c0_43 = arith.constant 0 : index
    %70 = vector.load %arg7[%c0_42, %c0_43] : memref<8x128xf32, #tpu.memory_space<vmem>>, vector<8x128xf32>
    tpu.vector_store %arg7[%c0_42, %c0_43], %69 {strides = array<i32>} : memref<8x128xf32, #tpu.memory_space<vmem>>, vector<8x128xf32>,
    return
  }
  func.func @transform_0(%arg0: i32) -> (i32, i32) {
    %c0_i32 = arith.constant 0 : i32
    %c0_i32_0 = arith.constant 0 : i32
    return %arg0, %c0_i32 : i32, i32
  }
  func.func @transform_1(%arg0: i32) -> (i32, i32) {
    %c0_i32 = arith.constant 0 : i32
    %c0_i32_0 = arith.constant 0 : i32
    %c0_i32_1 = arith.constant 0 : i32
    return %c0_i32, %c0_i32_0 : i32, i32
  }
  func.func @transform_2(%arg0: i32) -> (i32, i32, i32) {
    %c0_i32 = arith.constant 0 : i32
    %c0_i32_0 = arith.constant 0 : i32
    %c0_i32_1 = arith.constant 0 : i32
    %c0_i32_2 = arith.constant 0 : i32
    return %c0_i32, %c0_i32_0, %c0_i32_1 : i32, i32, i32
  }
  func.func @transform_3(%arg0: i32) -> (i32, i32, i32) {
    %c0_i32 = arith.constant 0 : i32
    %c0_i32_0 = arith.constant 0 : i32
    %c0_i32_1 = arith.constant 0 : i32
    %c0_i32_2 = arith.constant 0 : i32
    return %c0_i32, %c0_i32_0, %c0_i32_1 : i32, i32, i32
  }
  func.func @transform_4(%arg0: i32) -> (i32, i32) {
    %c0_i32 = arith.constant 0 : i32
    %c0_i32_0 = arith.constant 0 : i32
    %c0_i32_1 = arith.constant 0 : i32
    return %c0_i32, %c0_i32_0 : i32, i32
  }
  func.func @transform_5(%arg0: i32) -> (i32, i32) {
    %c0_i32 = arith.constant 0 : i32
    %c0_i32_0 = arith.constant 0 : i32
    %c0_i32_1 = arith.constant 0 : i32
    return %c0_i32, %c0_i32_0 : i32, i32
  }
  func.func @transform_6(%arg0: i32) -> (i32, i32) {
    %c0_i32 = arith.constant 0 : i32
    %c0_i32_0 = arith.constant 0 : i32
    return %arg0, %c0_i32 : i32, i32
  }
}

</mosaic_0001>

<bundles_post_ra>
// kernel: mlp_forward.1
= control target key start
LH: loop header
LB: loop body
LE: loop exit
PB: predicated region body
PF: predicated region fallthrough
CT: control target
= control target key end

     0   :  { %11 = vsyncpa [#allocation3], 0  ;;  %s7237_s0 = inlined_call_operand.hbm [shape: f32[8,32], index: 0, kind: input, shape index: {}]   ;;  %s7238_s1 = inlined_call_operand.hbm [shape: bf16[32,1024], index: 1, kind: input, shape index: {}]   ;;  %s7239_s2 = inlined_call_operand.hbm [shape: bf16[3,1024,256], index: 2, kind: input, shape index: {}]   ;;  %s7240_s3 = inlined_call_operand.hbm [shape: bf16[2,256,1024], index: 3, kind: input, shape index: {}]   ;;  %s7241_s4 = inlined_call_operand.hbm [shape: bf16[256,128], index: 4, kind: input, shape index: {}]   ;;  %s7242_s5 = inlined_call_operand.hbm [shape: f32[8,1024], index: 5, kind: input, shape index: {}]   ;;  %s7243_s6 = inlined_call_operand.hbm [shape: f32[8,128], index: 6, kind: output, shape index: {}]  }
   0x1   :  { %12 = vsyncpa [#allocation6], 0 }
   0x2   :  { %13 = vsyncpa [#allocation9], 0 }
   0x3   :  { %14 = vsyncpa [#allocation12], 0 }
   0x4   :  { %15 = vsyncpa [#allocation4], 0  ;;  %s6974_s21 = smov [#allocation5]   ;;  %s6810_s25 = scalar_lea.hbm %s7238_s1, 2048 }
   0x5   :  { %s31_s22 = sshll.u32 %s6974_s21, 4  ;;  %p6811_p0 = scmp.ne.s32.totalorder %s7238_s1, %s6810_s25  ;;  %s32_s22 = int_to_ptr.vmem [resolvable:$true] %s31_s22 }
   0x6   :  { %p6814_p1 = scmp.lt.u32.totalorder %s6810_s25, %s7238_s1 }
   0x8   :  { %p6816_p2 = pnand %p6814_p1, %p6811_p0 }
   0xa   :  { %6819 = shalt.err (!%p6816_p2)
}
   0xb   :  { %s6820_s30 = scalar_lea.vmem %s32_s22, 2048  ;;  %p6825_p4 = scmp.lt.s32.totalorder %s32_s22, %s32_s22 }
   0xc   :  { %p6821_p3 = scmp.ne.s32.totalorder %s32_s22, %s6820_s30  ;;  %p6826_p5 = scmp.lt.s32.totalorder %s6820_s30, %s6820_s30 }
   0xe   :  { %p6827_p6 = por %p6826_p5, %p6825_p4 }
  0x10   :  { %p6828_p7 = pnand %p6827_p6, %p6821_p3 }
  0x12   :  { %6831 = shalt.err (!%p6828_p7)
}
  0x13   :  { %s6975_s7 = smov 512   ;;  %s6976_s8 = smov 32  }
  0x14   :  { %37 = dma.hbm_to_vmem [thread:$0]  %s7238_s1, 2048, %s32_s22, [#allocation6], %s6975_s7, %s6975_s7, %s6976_s8  }
  0x15   :  { %s6977_s11 = smov [#allocation8]   ;;  %s6978_s13 = smov [#allocation2]  }
  0x16   :  { %s55_s12 = sshll.u32 %s6977_s11, 4  ;;  %s22_s14 = sshll.u32 %s6978_s13, 4  ;;  %s56_s12 = int_to_ptr.vmem [resolvable:$true] %s55_s12  ;;  %s23_s14 = int_to_ptr.vmem [resolvable:$true] %s22_s14 }
  0x17   :  { %s6832_s17 = scalar_lea.hbm %s7240_s3, 32768 }
  0x18   :  { %p6833_p8 = scmp.ne.s32.totalorder %s7240_s3, %s6832_s17  ;;  %p6836_p9 = scmp.lt.u32.totalorder %s6832_s17, %s7240_s3 }
  0x1a   :  { %p6838_p10 = pnand %p6836_p9, %p6833_p8 }
  0x1c   :  { %6841 = shalt.err (!%p6838_p10)
}
  0x1d   :  { %s6842_s1 = scalar_lea.vmem %s56_s12, 32768  ;;  %p6847_p12 = scmp.lt.s32.totalorder %s56_s12, %s56_s12 }
  0x1e   :  { %p6843_p11 = scmp.ne.s32.totalorder %s56_s12, %s6842_s1  ;;  %p6848_p13 = scmp.lt.s32.totalorder %s6842_s1, %s6842_s1 }
  0x20   :  { %p6849_p0 = por %p6848_p13, %p6847_p12 }
  0x22   :  { %p6850_p1 = pnand %p6849_p0, %p6843_p11 }
  0x24   :  { %6853 = shalt.err (!%p6850_p1)
}
  0x25   :  { %61 = dma.hbm_to_vmem [thread:$0]  %s7240_s3, 32768, %s56_s12, [#allocation9], %s6975_s7, %s6975_s7, %s6976_s8  }
  0x26   :  { %s6854_s26 = scalar_lea.hbm %s7237_s0, 128 }
  0x27   :  { %p6855_p2 = scmp.ne.s32.totalorder %s7237_s0, %s6854_s26  ;;  %p6858_p3 = scmp.lt.u32.totalorder %s6854_s26, %s7237_s0 }
  0x29   :  { %p6860_p4 = pnand %p6858_p3, %p6855_p2 }
  0x2b   :  { %6863 = shalt.err (!%p6860_p4)
}
  0x2c   :  { %s6864_s9 = scalar_lea.vmem %s23_s14, 128  ;;  %p6869_p6 = scmp.lt.s32.totalorder %s23_s14, %s23_s14 }
  0x2d   :  { %p6865_p5 = scmp.ne.s32.totalorder %s23_s14, %s6864_s9  ;;  %p6870_p7 = scmp.lt.s32.totalorder %s6864_s9, %s6864_s9 }
  0x2f   :  { %p6871_p8 = por %p6870_p7, %p6869_p6 }
  0x31   :  { %p6872_p9 = pnand %p6871_p8, %p6865_p5 }
  0x33   :  { %6875 = shalt.err (!%p6872_p9)
}
  0x34   :  { %25 = dma.hbm_to_vmem [thread:$0]  %s7237_s0, 128, %s23_s14, [#allocation3]  }
  0x35   :  { %s6979_s8 = smov [#allocation7]   ;;  %s6876_s13 = scalar_lea.hbm %s7239_s2, 49152 }
  0x36   :  { %s43_s10 = sshll.u32 %s6979_s8, 4  ;;  %p6877_p10 = scmp.ne.s32.totalorder %s7239_s2, %s6876_s13  ;;  %s44_s10 = int_to_ptr.vmem [resolvable:$true] %s43_s10 }
  0x37   :  { %p6880_p11 = scmp.lt.u32.totalorder %s6876_s13, %s7239_s2 }
  0x39   :  { %p6882_p12 = pnand %p6880_p11, %p6877_p10 }
  0x3b   :  { %6885 = shalt.err (!%p6882_p12)
}
  0x3c   :  { %s6886_s19 = scalar_lea.vmem %s44_s10, 49152  ;;  %p6891_p0 = scmp.lt.s32.totalorder %s44_s10, %s44_s10 }
  0x3d   :  { %p6887_p13 = scmp.ne.s32.totalorder %s44_s10, %s6886_s19  ;;  %p6892_p1 = scmp.lt.s32.totalorder %s6886_s19, %s6886_s19 }
  0x3f   :  { %p6893_p2 = por %p6892_p1, %p6891_p0 }
  0x41   :  { %p6894_p3 = pnand %p6893_p2, %p6887_p13 }
  0x43   :  { %6897 = shalt.err (!%p6894_p3)
}
  0x44   :  { %s6980_s0 = smov 128   ;;  %s6981_s14 = smov 8  }
  0x45   :  { %49 = dma.hbm_to_vmem [thread:$0]  %s7239_s2, 49152, %s44_s10, [#allocation6], %s6980_s0, %s6980_s0, %s6981_s14  }
  0x46   :  { %s6982_s1 = smov [#allocation10]   ;;  %s6898_s25 = scalar_lea.hbm %s7241_s4, 2048 }
  0x47   :  { %s67_s22 = sshll.u32 %s6982_s1, 4  ;;  %p6899_p4 = scmp.ne.s32.totalorder %s7241_s4, %s6898_s25  ;;  %s68_s22 = int_to_ptr.vmem [resolvable:$true] %s67_s22 }
  0x48   :  { %p6902_p5 = scmp.lt.u32.totalorder %s6898_s25, %s7241_s4 }
  0x4a   :  { %p6904_p6 = pnand %p6902_p5, %p6899_p4 }
  0x4c   :  { %6907 = shalt.err (!%p6904_p6)
}
  0x4d   :  { %s6908_s30 = scalar_lea.vmem %s68_s22, 2048  ;;  %p6913_p8 = scmp.lt.s32.totalorder %s68_s22, %s68_s22 }
  0x4e   :  { %p6909_p7 = scmp.ne.s32.totalorder %s68_s22, %s6908_s30  ;;  %p6914_p9 = scmp.lt.s32.totalorder %s6908_s30, %s6908_s30 }
  0x50   :  { %p6915_p10 = por %p6914_p9, %p6913_p8 }
  0x52   :  { %p6916_p11 = pnand %p6915_p10, %p6909_p7 }
  0x54   :  { %6919 = shalt.err (!%p6916_p11)
}
  0x55   :  { %s6983_s2 = smov 64   ;;  %s6984_s9 = smov 4  }
  0x56   :  { %73 = dma.hbm_to_vmem [thread:$0]  %s7241_s4, 2048, %s68_s22, [#allocation9], %s6983_s2, %s6983_s2, %s6984_s9  }
  0x57   :  { %s6985_s8 = smov [#allocation11]   ;;  %s6920_s13 = scalar_lea.hbm %s7242_s5, 1024 }
  0x58   :  { %s80_s10 = sshll.u32 %s6985_s8, 4  ;;  %p6921_p12 = scmp.ne.s32.totalorder %s7242_s5, %s6920_s13  ;;  %s81_s10 = int_to_ptr.vmem [resolvable:$true] %s80_s10 }
  0x59   :  { %p6924_p13 = scmp.lt.u32.totalorder %s6920_s13, %s7242_s5 }
  0x5b   :  { %p6926_p0 = pnand %p6924_p13, %p6921_p12 }
  0x5d   :  { %6929 = shalt.err (!%p6926_p0)
}
  0x5e   :  { %s6930_s19 = scalar_lea.vmem %s81_s10, 1024  ;;  %p6935_p2 = scmp.lt.s32.totalorder %s81_s10, %s81_s10 }
  0x5f   :  { %p6931_p1 = scmp.ne.s32.totalorder %s81_s10, %s6930_s19  ;;  %p6936_p3 = scmp.lt.s32.totalorder %s6930_s19, %s6930_s19 }
  0x61   :  { %p6937_p4 = por %p6936_p3, %p6935_p2 }
  0x63   :  { %p6938_p5 = pnand %p6937_p4, %p6931_p1 }
  0x65   :  { %6941 = shalt.err (!%p6938_p5)
}
  0x66   :  { %83 = dma.hbm_to_vmem [thread:$0]  %s7242_s5, 1024, %s81_s10, [#allocation12]  }
  0x67   :  { %6964 = dma.done.wait [#allocation3], 128  }
  0x68   :  { %6965 = vsyncadd [#allocation3], 4294967168 }
  0x69   :  { %6966 = dma.done.wait [#allocation6], 51200  }
  0x6a   :  { %6967 = vsyncadd [#allocation6], 4294916096 }
  0x6b   :  { %6968 = dma.done.wait [#allocation9], 34816  }
  0x6c   :  { %6969 = vsyncadd [#allocation9], 4294932480 }
  0x6d   :  { %6970 = dma.done.wait [#allocation12], 1024  }
  0x6e   :  { %6971 = vsyncadd [#allocation12], 4294966272  ;;  %v6986_v0 = vmov 0   ;;  %v104_v1 = vld [vmem:[#allocation5] sm:$0xff]  ;;  %v105_v8 = vld [vmem:[#allocation5 + $0x8] sm:$0xff]  ;;  %vm245_vm0 = vcmask 261120  }
  0x6f   :  { %281 = vmatprep.mubr.bf16.mxu0 %v6986_v0  ;;  %v108_v2 = vld [vmem:[#allocation5 + $0x20] sm:$0xff]  ;;  %v109_v9 = vld [vmem:[#allocation5 + $0x28] sm:$0xff]  ;;  %v103_v11 = vld [vmem:[#allocation2] sm:$0xff]  ;;  %s6987_s5 = smov [#allocation13]  }
  0x70   :  { %v112_v3 = vld [vmem:[#allocation5 + $0x40] sm:$0xff]  ;;  %v5463_v4 = vcombine.high %v104_v1, %v108_v2  ;;  %v5462_v5 = vcombine.low %v104_v1, %v108_v2  ;;  %v5465_v12 = vcombine.high %v105_v8, %v109_v9  ;;  %v113_v13 = vld [vmem:[#allocation5 + $0x48] sm:$0xff]  ;;  %v7096_v17 = vpack.c.bf16 %v103_v11, %v103_v11  ;;  %v6217_v18 = vld [vmem:[#allocation7 + $0x14] ss:$8 sps:$4 sm:$0xff]   ;;  %s5450_s14 = sshll.u32 %s6987_s5, 4  ;;  %s5451_s14 = int_to_ptr.vmem [resolvable:$true] %s5450_s14 }
  0x71   :  { %v116_v6 = vld [vmem:[#allocation5 + $0x60] sm:$0xff]  ;;  %v117_v14 = vld [vmem:[#allocation5 + $0x68] sm:$0xff]  ;;  %v5464_v19 = vcombine.low %v105_v8, %v109_v9  ;;  %v106_v21 = vld [vmem:[#allocation5 + $0x10] sm:$0xff]  ;;  %s6942_s20 = scalar_lea.vmem %s5451_s14, 128  ;;  %p6947_p7 = scmp.lt.s32.totalorder %s5451_s14, %s5451_s14 }
  0x72   :  { %v5471_v7 = vcombine.high %v112_v3, %v116_v6  ;;  %249 = vmatprep.subr.bf16.mxu0 %v5463_v4  ;;  %v5470_v10 = vcombine.low %v112_v3, %v116_v6  ;;  %v6214_v15 = vld [vmem:[#allocation7 + $0x4] ss:$8 sps:$4 sm:$0xff]   ;;  %v6216_v16 = vld [vmem:[#allocation7] ss:$8 sps:$4 sm:$0xff]   ;;  %v5473_v20 = vcombine.high %v113_v13, %v117_v14  ;;  %v6219_v22 = vld [vmem:[#allocation7 + $0x10] ss:$8 sps:$4 sm:$0xff]   ;;  %v5472_v25 = vcombine.low %v113_v13, %v117_v14  ;;  %p6943_p6 = scmp.ne.s32.totalorder %s5451_s14, %s6942_s20  ;;  %p6948_p8 = scmp.lt.s32.totalorder %s6942_s20, %s6942_s20 }
  0x73   :  { %250 = vmatpush1.bf16.msra.mxu0 %v5462_v5  ;;  %1210 = vmatprep.subr.bf16.mxu1 %v6214_v15  ;;  %v110_v23 = vld [vmem:[#allocation5 + $0x30] sm:$0xff]  ;;  %v6220_v24 = vld [vmem:[#allocation7 + $0x24] ss:$8 sps:$4 sm:$0xff]   ;;  %v6222_v29 = vld [vmem:[#allocation7 + $0x20] ss:$8 sps:$4 sm:$0xff]  }
  0x74   :  { %251 = vmatprep.subr.bf16.mxu0 %v5471_v7  ;;  %1211 = vmatpush1.bf16.msra.mxu1 %v6216_v16  ;;  %v114_v26 = vld [vmem:[#allocation5 + $0x50] sm:$0xff]  ;;  %v5467_v27 = vcombine.high %v106_v21, %v110_v23  ;;  %v5466_v31 = vcombine.low %v106_v21, %v110_v23  ;;  %v107_v34 = vld [vmem:[#allocation5 + $0x18] sm:$0xff]  ;;  %v6226_v36 = vld [vmem:[#allocation7 + $0x44] ss:$8 sps:$4 sm:$0xff]   ;;  %p6949_p9 = por %p6948_p8, %p6947_p7 }
  0x75   :  { %1212 = vmatprep.subr.bf16.mxu1 %v6217_v18  ;;  %v118_v28 = vld [vmem:[#allocation5 + $0x70] sm:$0xff]  ;;  %v111_v35 = vld [vmem:[#allocation5 + $0x38] sm:$0xff]  ;;  %v6231_v41 = vld [vmem:[#allocation7 + $0x40] ss:$8 sps:$4 sm:$0xff]  }
  0x76   :  { %v6223_v30 = vld [vmem:[#allocation7 + $0x34] ss:$8 sps:$4 sm:$0xff]   ;;  %v5475_v32 = vcombine.high %v114_v26, %v118_v28  ;;  %v6225_v33 = vld [vmem:[#allocation7 + $0x30] ss:$8 sps:$4 sm:$0xff]   ;;  %v5474_v37 = vcombine.low %v114_v26, %v118_v28  ;;  %v5469_v39 = vcombine.high %v107_v34, %v111_v35  ;;  %v5468_v43 = vcombine.low %v107_v34, %v111_v35  ;;  %v6238_v46 = vld [vmem:[#allocation7 + $0x64] ss:$8 sps:$4 sm:$0xff]   ;;  %p6950_p10 = pnand %p6949_p9, %p6943_p6 }
  0x77   :  { %252 = vmatpush1.bf16.msra.mxu0 %v5470_v10  ;;  %v115_v38 = vld [vmem:[#allocation5 + $0x58] sm:$0xff]  ;;  %v6230_v48 = vld [vmem:[#allocation7 + $0x204] ss:$8 sps:$4 sm:$0xff]   ;;  %v6243_v49 = vld [vmem:[#allocation7 + $0x60] ss:$8 sps:$4 sm:$0xff]  }
  0x78   :  { %290 = vmatprep.subr.bf16.mxu0 %v5465_v12  ;;  %1213 = vmatpush1.bf16.msra.mxu1 %v6219_v22  ;;  %v119_v40 = vld [vmem:[#allocation5 + $0x78] sm:$0xff]  ;;  %v6228_v51 = vld [vmem:[#allocation7 + $0x200] ss:$8 sps:$4 sm:$0xff]   ;;  %v6250_v54 = vld [vmem:[#allocation7 + $0x84] ss:$8 sps:$4 sm:$0xff]  }
  0x79   :  { %1214 = vmatprep.subr.bf16.mxu1 %v6220_v24  ;;  %v6232_v42 = vld [vmem:[#allocation7 + $0x54] ss:$8 sps:$4 sm:$0xff]   ;;  %v5477_v44 = vcombine.high %v115_v38, %v119_v40  ;;  %v6237_v45 = vld [vmem:[#allocation7 + $0x50] ss:$8 sps:$4 sm:$0xff]   ;;  %v5476_v47 = vcombine.low %v115_v38, %v119_v40  ;;  %v6242_v56 = vld [vmem:[#allocation7 + $0x224] ss:$8 sps:$4 sm:$0xff]  }
  0x7a   :  { %5478 = vmatmul.mubr.msk.bf16.vlgmr.msra.gmra.mrb[0].mxu0 %vm245_vm0, %v7096_v17  ;;  %v6244_v50 = vld [vmem:[#allocation7 + $0x74] ss:$8 sps:$4 sm:$0xff]   ;;  %v6249_v53 = vld [vmem:[#allocation7 + $0x70] ss:$8 sps:$4 sm:$0xff]   ;;  %v6255_v57 = vld [vmem:[#allocation7 + $0x80] ss:$8 sps:$4 sm:$0xff]  }
  0x7b   :  { %291 = vmatpush1.bf16.msra.mxu0 %v5464_v19  ;;  %322 = vmatprep.mubr.bf16.mxu0 %v6986_v0  ;;  %v6236_v52 = vld [vmem:[#allocation7 + $0x214] ss:$8 sps:$4 sm:$0xff]   ;;  %v6234_v55 = vld [vmem:[#allocation7 + $0x210] ss:$8 sps:$4 sm:$0xff]   ;;  %v6240_v58 = vld [vmem:[#allocation7 + $0x220] ss:$8 sps:$4 sm:$0xff]  }
  0x7c   :  { %292 = vmatprep.subr.bf16.mxu0 %v5473_v20  ;;  %1215 = vmatpush1.bf16.msra.mxu1 %v6222_v29  ;;  %v6256_v59 = vld [vmem:[#allocation7 + $0x94] ss:$8 sps:$4 sm:$0xff]   ;;  %v6261_v61 = vld [vmem:[#allocation7 + $0x90] ss:$8 sps:$4 sm:$0xff]   ;;  %v6262_v62 = vld [vmem:[#allocation7 + $0xa4] ss:$8 sps:$4 sm:$0xff]  }
  0x7d   :  { %1216 = vmatprep.subr.bf16.mxu1 %v6223_v30  ;;  %v6248_v60 = vld [vmem:[#allocation7 + $0x234] ss:$8 sps:$4 sm:$0xff]   ;;  %v6246_v63 = vld [vmem:[#allocation7 + $0x230] ss:$8 sps:$4 sm:$0xff]   ;;  %v6267_v1 = vld [vmem:[#allocation7 + $0xa0] ss:$8 sps:$4 sm:$0xff]  }
  0x7e   :  { %v6268_v2 = vld [vmem:[#allocation7 + $0xb4] ss:$8 sps:$4 sm:$0xff]   ;;  %v6252_v3 = vld [vmem:[#allocation7 + $0x240] ss:$8 sps:$4 sm:$0xff]   ;;  %v6273_v5 = vld [vmem:[#allocation7 + $0xb0] ss:$8 sps:$4 sm:$0xff]  }
  0x7f   :  { %293 = vmatpush1.bf16.msra.mxu0 %v5472_v25  ;;  %v6260_v4 = vld [vmem:[#allocation7 + $0x254] ss:$8 sps:$4 sm:$0xff]   ;;  %v6274_v6 = vld [vmem:[#allocation7 + $0xc4] ss:$8 sps:$4 sm:$0xff]   ;;  %v6258_v7 = vld [vmem:[#allocation7 + $0x250] ss:$8 sps:$4 sm:$0xff]  }
  0x80   :  { %331 = vmatprep.subr.bf16.mxu0 %v5467_v27  ;;  %1217 = vmatpush1.bf16.msra.mxu1 %v6225_v33  ;;  %v6266_v8 = vld [vmem:[#allocation7 + $0x264] ss:$8 sps:$4 sm:$0xff]   ;;  %v6279_v9 = vld [vmem:[#allocation7 + $0xc0] ss:$8 sps:$4 sm:$0xff]   ;;  %v6280_v10 = vld [vmem:[#allocation7 + $0xd4] ss:$8 sps:$4 sm:$0xff]  }
  0x81   :  { %1218 = vmatprep.subr.bf16.mxu1 %v6226_v36  ;;  %v6264_v11 = vld [vmem:[#allocation7 + $0x260] ss:$8 sps:$4 sm:$0xff]   ;;  %v6272_v12 = vld [vmem:[#allocation7 + $0x274] ss:$8 sps:$4 sm:$0xff]   ;;  %v6285_v13 = vld [vmem:[#allocation7 + $0xd0] ss:$8 sps:$4 sm:$0xff]  }
  0x82   :  { %5479 = vmatmul.mubr.msk.bf16.vlgmr.msra.gmra.mrb[4].mxu0 %vm245_vm0, %v7096_v17  ;;  %v6270_v14 = vld [vmem:[#allocation7 + $0x270] ss:$8 sps:$4 sm:$0xff]   ;;  %v6278_v15 = vld [vmem:[#allocation7 + $0x284] ss:$8 sps:$4 sm:$0xff]   ;;  %v6276_v16 = vld [vmem:[#allocation7 + $0x280] ss:$8 sps:$4 sm:$0xff]  }
  0x83   :  { %332 = vmatpush1.bf16.msra.mxu0 %v5466_v31  ;;  %363 = vmatprep.mubr.bf16.mxu0 %v6986_v0  ;;  %v6282_v18 = vld [vmem:[#allocation7 + $0x290] ss:$8 sps:$4 sm:$0xff]   ;;  %v6286_v19 = vld [vmem:[#allocation7 + $0xe4] ss:$8 sps:$4 sm:$0xff]   ;;  %v6288_v21 = vld [vmem:[#allocation7 + $0x2a0] ss:$8 sps:$4 sm:$0xff]  }
  0x84   :  { %333 = vmatprep.subr.bf16.mxu0 %v5475_v32  ;;  %1219 = vmatpush1.bf16.msra.mxu1 %v6231_v41  ;;  %v6290_v20 = vld [vmem:[#allocation7 + $0x2a4] ss:$8 sps:$4 sm:$0xff]   ;;  %v6291_v22 = vld [vmem:[#allocation7 + $0xe0] ss:$8 sps:$4 sm:$0xff]   ;;  %v6292_v23 = vld [vmem:[#allocation7 + $0xf4] ss:$8 sps:$4 sm:$0xff]  }
  0x85   :  { %1220 = vmatprep.subr.bf16.mxu1 %v6232_v42  ;;  %v6296_v24 = vld [vmem:[#allocation7 + $0x2b4] ss:$8 sps:$4 sm:$0xff]   ;;  %v6294_v25 = vld [vmem:[#allocation7 + $0x2b0] ss:$8 sps:$4 sm:$0xff]   ;;  %v6300_v27 = vld [vmem:[#allocation7 + $0x104] ss:$8 sps:$4 sm:$0xff]  }
  0x86   :  { %v6297_v26 = vld [vmem:[#allocation7 + $0xf0] ss:$8 sps:$4 sm:$0xff]   ;;  %v6303_v28 = vld [vmem:[#allocation7 + $0x2c4] ss:$8 sps:$4 sm:$0xff]   ;;  %v6301_v29 = vld [vmem:[#allocation7 + $0x2c0] ss:$8 sps:$4 sm:$0xff]  }
  0x87   :  { %334 = vmatpush1.bf16.msra.mxu0 %v5474_v37  ;;  %v6309_v30 = vld [vmem:[#allocation7 + $0x2d4] ss:$8 sps:$4 sm:$0xff]   ;;  %v6307_v31 = vld [vmem:[#allocation7 + $0x2d0] ss:$8 sps:$4 sm:$0xff]   ;;  %v6315_v32 = vld [vmem:[#allocation7 + $0x2e4] ss:$8 sps:$4 sm:$0xff]   ;;  %v125_v37 = vlaneseq }
  0x88   :  { %372 = vmatprep.subr.bf16.mxu0 %v5469_v39  ;;  %1221 = vmatpush1.bf16.msra.mxu1 %v6237_v45  ;;  %v6313_v33 = vld [vmem:[#allocation7 + $0x2e0] ss:$8 sps:$4 sm:$0xff]   ;;  %v6321_v34 = vld [vmem:[#allocation7 + $0x2f4] ss:$8 sps:$4 sm:$0xff]   ;;  %v6319_v35 = vld [vmem:[#allocation7 + $0x2f0] ss:$8 sps:$4 sm:$0xff]  }
  0x89   :  { %1222 = vmatprep.subr.bf16.mxu1 %v6238_v46  ;;  %v6327_v36 = vld [vmem:[#allocation7 + $0x304] ss:$8 sps:$4 sm:$0xff]   ;;  %v7109_v38 = vshrl.u32 %v125_v37, 7  ;;  %v120_v39 = vld [vmem:[#allocation11] ss:$8 sm:$0xf] }
  0x8a   :  { %5480 = vmatmul.mubr.msk.bf16.vlgmr.msra.gmra.mrb[8].mxu0 %vm245_vm0, %v7096_v17  ;;  %v121_v40 = vld [vmem:[#allocation11] ss:$8 sm:$0xf0] }
  0x8b   :  { %373 = vmatpush1.bf16.msra.mxu0 %v5468_v43  ;;  %404 = vmatprep.mubr.bf16.mxu0 %v6986_v0  ;;  %v6254_v0 = vld [vmem:[#allocation7 + $0x244] ss:$8 sps:$4 sm:$0xff]   ;;  %v7111_v41 = vor.u32 %v121_v40, %v120_v39  ;;  %v7114_v42 = vsub.s32 0, %v7109_v38  ;;  %v7117_v43 = vsub.s32 1, %v7109_v38  ;;  %v6334_v40 = vld [vmem:[#allocation7 + $0x160] ss:$8 sps:$4 sm:$0xff]  }
  0x8c   :  { %374 = vmatprep.subr.bf16.mxu0 %v5477_v44  ;;  %1223 = vmatpush1.bf16.msra.mxu1 %v6243_v49 }
  0x8d   :  { %1224 = vmatprep.subr.bf16.mxu1 %v6244_v50  ;;  %v128_v44 = vrot.slane %v7111_v41, %v7114_v42  ;;  %v132_v45 = vrot.slane %v7111_v41, %v7117_v43 }
  0x8f   :  { %375 = vmatpush1.bf16.msra.mxu0 %v5476_v47 }
  0x90   :  { %1292 = vmatprep.subr.bf16.mxu0 %v6230_v48  ;;  %1225 = vmatpush1.bf16.msra.mxu1 %v6249_v53 }
  0x91   :  { %1226 = vmatprep.subr.bf16.mxu1 %v6250_v54 }
  0x92   :  { %5481 = vmatmul.mubr.msk.bf16.vlgmr.msra.gmra.mrb[12].mxu0 %vm245_vm0, %v7096_v17  ;;  %v6284_v17 = vld [vmem:[#allocation7 + $0x294] ss:$8 sps:$4 sm:$0xff]  }
  0x93   :  { %1293 = vmatpush1.bf16.msra.mxu0 %v6228_v51  ;;  %v7124_v51 = vsub.s32 3, %v7109_v38 }
  0x94   :  { %1294 = vmatprep.subr.bf16.mxu0 %v6236_v52  ;;  %1227 = vmatpush1.bf16.msra.mxu1 %v6255_v57 }
  0x95   :  { %1228 = vmatprep.subr.bf16.mxu1 %v6256_v59  ;;  %v140_v57 = vrot.slane %v7111_v41, %v7124_v51  ;;  %v6306_v59 = vld [vmem:[#allocation7 + $0x114] ss:$8 sps:$4 sm:$0xff]  }
  0x97   :  { %1295 = vmatpush1.bf16.msra.mxu0 %v6234_v55 }
  0x98   :  { %1296 = vmatprep.subr.bf16.mxu0 %v6242_v56  ;;  %1229 = vmatpush1.bf16.msra.mxu1 %v6261_v61  ;;  %v6298_v56 = vld [vmem:[#allocation7 + $0x100] ss:$8 sps:$4 sm:$0xff]  }
  0x99   :  { %1230 = vmatprep.subr.bf16.mxu1 %v6262_v62  ;;  %v7131_v62 = vsub.s32 4, %v7109_v38 }
  0x9b   :  { %1297 = vmatpush1.bf16.msra.mxu0 %v6240_v58 }
  0x9c   :  { %1298 = vmatprep.subr.bf16.mxu0 %v6248_v60  ;;  %1231 = vmatpush1.bf16.msra.mxu1 %v6267_v1  ;;  %v6304_v1 = vld [vmem:[#allocation7 + $0x110] ss:$8 sps:$4 sm:$0xff]  }
  0x9d   :  { %1232 = vmatprep.subr.bf16.mxu1 %v6268_v2  ;;  %v7134_v2 = vsub.s32 5, %v7109_v38 }
  0x9f   :  { %1299 = vmatpush1.bf16.msra.mxu0 %v6246_v63 }
  0xa0   :  { %1300 = vmatprep.subr.bf16.mxu0 %v6254_v0  ;;  %1233 = vmatpush1.bf16.msra.mxu1 %v6273_v5 }
  0xa1   :  { %1234 = vmatprep.subr.bf16.mxu1 %v6274_v6  ;;  %v144_v6 = vrot.slane %v7111_v41, %v7131_v62 }
  0xa3   :  { %1301 = vmatpush1.bf16.msra.mxu0 %v6252_v3 }
  0xa4   :  { %1302 = vmatprep.subr.bf16.mxu0 %v6260_v4  ;;  %1235 = vmatpush1.bf16.msra.mxu1 %v6279_v9  ;;  %v6312_v4 = vld [vmem:[#allocation7 + $0x124] ss:$8 sps:$4 sm:$0xff]   ;;  %v148_v9 = vrot.slane %v7111_v41, %v7134_v2 }
  0xa5   :  { %1236 = vmatprep.subr.bf16.mxu1 %v6280_v10  ;;  %v6318_v10 = vld [vmem:[#allocation7 + $0x134] ss:$8 sps:$4 sm:$0xff]  }
  0xa7   :  { %1303 = vmatpush1.bf16.msra.mxu0 %v6258_v7 }
  0xa8   :  { %1304 = vmatprep.subr.bf16.mxu0 %v6266_v8  ;;  %1237 = vmatpush1.bf16.msra.mxu1 %v6285_v13  ;;  %v6310_v8 = vld [vmem:[#allocation7 + $0x120] ss:$8 sps:$4 sm:$0xff]  }
  0xa9   :  { %1238 = vmatprep.subr.bf16.mxu1 %v6286_v19 }
  0xab   :  { %1305 = vmatpush1.bf16.msra.mxu0 %v6264_v11 }
  0xac   :  { %1306 = vmatprep.subr.bf16.mxu0 %v6272_v12  ;;  %1239 = vmatpush1.bf16.msra.mxu1 %v6291_v22 }
  0xad   :  { %1240 = vmatprep.subr.bf16.mxu1 %v6292_v23  ;;  %v6322_v23 = vld [vmem:[#allocation7 + $0x140] ss:$8 sps:$4 sm:$0xff]  }
  0xaf   :  { %1307 = vmatpush1.bf16.msra.mxu0 %v6270_v14 }
  0xb0   :  { %1308 = vmatprep.subr.bf16.mxu0 %v6278_v15  ;;  %1241 = vmatpush1.bf16.msra.mxu1 %v6297_v26 }
  0xb1   :  { %1251 = vmatprep.subr.bf16.mxu1 %v6300_v27  ;;  %v6330_v27 = vld [vmem:[#allocation7 + $0x154] ss:$8 sps:$4 sm:$0xff]  }
  0xb3   :  { %1309 = vmatpush1.bf16.msra.mxu0 %v6276_v16  ;;  %v6316_v16 = vld [vmem:[#allocation7 + $0x130] ss:$8 sps:$4 sm:$0xff]  }
  0xb4   :  { %1310 = vmatprep.subr.bf16.mxu0 %v6284_v17  ;;  %v7141_v17 = vsub.s32 7, %v7109_v38 }
  0xb7   :  { %1311 = vmatpush1.bf16.msra.mxu0 %v6282_v18 }
  0xb8   :  { %1312 = vmatprep.subr.bf16.mxu0 %v6290_v20  ;;  %v6324_v20 = vld [vmem:[#allocation7 + $0x144] ss:$8 sps:$4 sm:$0xff]  }
  0xbb   :  { %1313 = vmatpush1.bf16.msra.mxu0 %v6288_v21 }
  0xbc   :  { %1314 = vmatprep.subr.bf16.mxu0 %v6296_v24  ;;  %v6325_v24 = vld [vmem:[#allocation7 + $0x300] ss:$8 sps:$4 sm:$0xff]  }
  0xbf   :  { %1315 = vmatpush1.bf16.msra.mxu0 %v6294_v25  ;;  %v156_v25 = vrot.slane %v7111_v41, %v7141_v17 }
  0xc0   :  { %1316 = vmatprep.subr.bf16.mxu0 %v6303_v28  ;;  %v6333_v28 = vld [vmem:[#allocation7 + $0x314] ss:$8 sps:$4 sm:$0xff]  }
  0xc3   :  { %1317 = vmatpush1.bf16.msra.mxu0 %v6301_v29 }
  0xc4   :  { %1318 = vmatprep.subr.bf16.mxu0 %v6309_v30 }
  0xc7   :  { %1319 = vmatpush1.bf16.msra.mxu0 %v6307_v31  ;;  %v6328_v31 = vld [vmem:[#allocation7 + $0x150] ss:$8 sps:$4 sm:$0xff]  }
  0xc8   :  { %1320 = vmatprep.subr.bf16.mxu0 %v6315_v32  ;;  %v6331_v32 = vld [vmem:[#allocation7 + $0x310] ss:$8 sps:$4 sm:$0xff]  }
  0xcb   :  { %1321 = vmatpush1.bf16.msra.mxu0 %v6313_v33 }
  0xcc   :  { %1322 = vmatprep.subr.bf16.mxu0 %v6321_v34 }
  0xcf   :  { %1323 = vmatpush1.bf16.msra.mxu0 %v6319_v35  ;;  %v6336_v35 = vld [vmem:[#allocation7 + $0x164] ss:$8 sps:$4 sm:$0xff]  }
  0xd0   :  { %1333 = vmatprep.subr.bf16.mxu0 %v6327_v36  ;;  %v6339_v36 = vld [vmem:[#allocation7 + $0x324] ss:$8 sps:$4 sm:$0xff]  }
 0x14d   :  { %v283_v46 = vpop.f32.mrb[0].mxu0 }
 0x14e   :  { %v284_v47 = vadd.f32 %v283_v46, %v128_v44  ;;  %v285_v48 = vpop.f32.mrb[1].mxu0  ;;  %v6337_v44 = vld [vmem:[#allocation7 + $0x320] ss:$8 sps:$4 sm:$0xff]   ;;  %v6342_v46 = vld [vmem:[#allocation7 + $0x174] ss:$8 sps:$4 sm:$0xff]  }
 0x14f   :  { %v286_v49 = vadd.f32 %v285_v48, %v132_v45  ;;  %v287_v50 = vpop.f32.mrb[2].mxu0  ;;  %v6340_v48 = vld [vmem:[#allocation7 + $0x170] ss:$8 sps:$4 sm:$0xff]  }
 0x150   :  { %v413_v52 = vmax.f32 %v284_v47, 0.0  ;;  %v288_v53 = vpop.f32.mrb[3].mxu0  ;;  %v6345_v47 = vld [vmem:[#allocation7 + $0x334] ss:$8 sps:$4 sm:$0xff]   ;;  %v6348_v50 = vld [vmem:[#allocation7 + $0x184] ss:$8 sps:$4 sm:$0xff]  }
 0x151   :  { %v414_v54 = vmax.f32 %v286_v49, 0.0  ;;  %v6343_v49 = vld [vmem:[#allocation7 + $0x330] ss:$8 sps:$4 sm:$0xff]   ;;  %v6346_v53 = vld [vmem:[#allocation7 + $0x180] ss:$8 sps:$4 sm:$0xff]  }
 0x152   :  { %v551_v58 = vpack.c.bf16 %v413_v52, %v413_v52  ;;  %v6351_v52 = vld [vmem:[#allocation7 + $0x344] ss:$8 sps:$4 sm:$0xff]  }
 0x153   :  { %v552_v55 = vpack.c.bf16 %v414_v54, %v414_v54  ;;  %v6349_v54 = vld [vmem:[#allocation7 + $0x340] ss:$8 sps:$4 sm:$0xff]  }
 0x155   :  { %v7128_v60 = vpop.f32.mrb[4].mxu0  ;;  %1242 = vmatprep.mubr.bf16.mxu1 %v552_v55  ;;  %v6354_v55 = vld [vmem:[#allocation7 + $0x194] ss:$8 sps:$4 sm:$0xff]  }
 0x156   :  { %v326_v61 = vpop.f32.mrb[5].mxu0  ;;  %1243 = vmatmul.mubr.bf16.vlgmr.msra.gmra.mrb[0].mxu1 %v551_v58  ;;  %v6355_v58 = vld [vmem:[#allocation7 + $0x350] ss:$8 sps:$4 sm:$0xff]  }
 0x157   :  { %v327_v63 = vadd.f32 %v326_v61, %v140_v57  ;;  %1252 = vmatpush1.bf16.msra.mxu1 %v6298_v56  ;;  %v328_v0 = vpop.f32.mrb[6].mxu0  ;;  %v6357_v56 = vld [vmem:[#allocation7 + $0x354] ss:$8 sps:$4 sm:$0xff]   ;;  %v6352_v57 = vld [vmem:[#allocation7 + $0x190] ss:$8 sps:$4 sm:$0xff]  }
 0x158   :  { %v329_v3 = vpop.f32.mrb[7].mxu0  ;;  %1253 = vmatprep.subr.bf16.mxu1 %v6306_v59  ;;  %v6360_v59 = vld [vmem:[#allocation7 + $0x1a4] ss:$8 sps:$4 sm:$0xff]   ;;  %v6361_v0 = vld [vmem:[#allocation7 + $0x360] ss:$8 sps:$4 sm:$0xff]  }
 0x159   :  { %v416_v5 = vmax.f32 %v327_v63, 0.0  ;;  %v6363_v61 = vld [vmem:[#allocation7 + $0x364] ss:$8 sps:$4 sm:$0xff]   ;;  %v6358_v63 = vld [vmem:[#allocation7 + $0x1a0] ss:$8 sps:$4 sm:$0xff]  }
 0x15a   :  { %v6369_v3 = vld [vmem:[#allocation7 + $0x374] ss:$8 sps:$4 sm:$0xff]  }
 0x15b   :  { %v554_v7 = vpack.c.bf16 %v416_v5, %v416_v5  ;;  %1254 = vmatpush1.bf16.msra.mxu1 %v6304_v1  ;;  %v6366_v1 = vld [vmem:[#allocation7 + $0x1b4] ss:$8 sps:$4 sm:$0xff]   ;;  %v6367_v5 = vld [vmem:[#allocation7 + $0x370] ss:$8 sps:$4 sm:$0xff]  }
 0x15c   :  { %1255 = vmatprep.subr.bf16.mxu1 %v6312_v4  ;;  %v6364_v4 = vld [vmem:[#allocation7 + $0x1b0] ss:$8 sps:$4 sm:$0xff]  }
 0x15d   :  { %v365_v11 = vpop.f32.mrb[8].mxu0  ;;  %1283 = vmatprep.mubr.bf16.mxu1 %v554_v7  ;;  %v6375_v7 = vld [vmem:[#allocation7 + $0x384] ss:$8 sps:$4 sm:$0xff]  }
 0x15e   :  { %v366_v12 = vadd.f32 %v365_v11, %v144_v6  ;;  %v367_v13 = vpop.f32.mrb[9].mxu0  ;;  %v6372_v6 = vld [vmem:[#allocation7 + $0x1c4] ss:$8 sps:$4 sm:$0xff]   ;;  %v6378_v11 = vld [vmem:[#allocation7 + $0x1d4] ss:$8 sps:$4 sm:$0xff]  }
 0x15f   :  { %v368_v14 = vadd.f32 %v367_v13, %v148_v9  ;;  %1256 = vmatpush1.bf16.msra.mxu1 %v6310_v8  ;;  %v369_v15 = vpop.f32.mrb[10].mxu0  ;;  %v6370_v8 = vld [vmem:[#allocation7 + $0x1c0] ss:$8 sps:$4 sm:$0xff]   ;;  %v6376_v13 = vld [vmem:[#allocation7 + $0x1d0] ss:$8 sps:$4 sm:$0xff]  }
 0x160   :  { %v417_v18 = vmax.f32 %v366_v12, 0.0  ;;  %v370_v19 = vpop.f32.mrb[11].mxu0  ;;  %1257 = vmatprep.subr.bf16.mxu1 %v6318_v10  ;;  %v6373_v9 = vld [vmem:[#allocation7 + $0x380] ss:$8 sps:$4 sm:$0xff]   ;;  %v7148_v10 = vsub.s32 2, %v7109_v38 }
 0x161   :  { %v418_v21 = vmax.f32 %v368_v14, 0.0  ;;  %v6381_v12 = vld [vmem:[#allocation7 + $0x394] ss:$8 sps:$4 sm:$0xff]   ;;  %v6379_v14 = vld [vmem:[#allocation7 + $0x390] ss:$8 sps:$4 sm:$0xff]  }
 0x162   :  { %v555_v26 = vpack.c.bf16 %v417_v18, %v417_v18  ;;  %v136_v15 = vrot.slane %v7111_v41, %v7148_v10  ;;  %v6387_v18 = vld [vmem:[#allocation7 + $0x3a4] ss:$8 sps:$4 sm:$0xff]   ;;  %v6382_v19 = vld [vmem:[#allocation7 + $0x1e0] ss:$8 sps:$4 sm:$0xff]  }
 0x163   :  { %v556_v22 = vpack.c.bf16 %v418_v21, %v418_v21  ;;  %1258 = vmatpush1.bf16.msra.mxu1 %v6316_v16  ;;  %v6384_v16 = vld [vmem:[#allocation7 + $0x1e4] ss:$8 sps:$4 sm:$0xff]  }
 0x164   :  { %1259 = vmatprep.subr.bf16.mxu1 %v6324_v20  ;;  %v6385_v20 = vld [vmem:[#allocation7 + $0x3a0] ss:$8 sps:$4 sm:$0xff]   ;;  %v325_v21 = vadd.f32 %v7128_v60, %v136_v15 }
 0x165   :  { %1324 = vmatprep.mubr.bf16.mxu0 %v556_v22  ;;  %v7145_v29 = vpop.f32.mrb[12].mxu0  ;;  %v6390_v22 = vld [vmem:[#allocation7 + $0x1f4] ss:$8 sps:$4 sm:$0xff]   ;;  %v6394_v60 = vld [vmem:[#allocation7 + $0x3c0] ss:$8 sps:$4 sm:$0xff]  }
 0x166   :  { %1325 = vmatmul.mubr.bf16.vlgmr.msra.gmra.mrb[16].mxu0 %v555_v26  ;;  %v408_v30 = vpop.f32.mrb[13].mxu0  ;;  %v6388_v26 = vld [vmem:[#allocation7 + $0x1f0] ss:$8 sps:$4 sm:$0xff]   ;;  %v1444_v15 = vld [vmem:[#allocation8 + $0x220] sm:$0xff] }
 0x167   :  { %1260 = vmatpush1.bf16.msra.mxu1 %v6322_v23  ;;  %1334 = vmatpush1.bf16.msra.mxu0 %v6325_v24  ;;  %v409_v33 = vadd.f32 %v408_v30, %v156_v25  ;;  %v410_v34 = vpop.f32.mrb[14].mxu0  ;;  %v6393_v23 = vld [vmem:[#allocation7 + $0x3b4] ss:$8 sps:$4 sm:$0xff]   ;;  %v1376_v24 = vld [vmem:[#allocation8] sm:$0xff] }
 0x168   :  { %1261 = vmatprep.subr.bf16.mxu1 %v6330_v27  ;;  %1335 = vmatprep.subr.bf16.mxu0 %v6333_v28  ;;  %v411_v37 = vpop.f32.mrb[15].mxu0  ;;  %v1380_v25 = vld [vmem:[#allocation8 + $0x20] sm:$0xff]  ;;  %v6391_v27 = vld [vmem:[#allocation7 + $0x3b0] ss:$8 sps:$4 sm:$0xff]   ;;  %v415_v28 = vmax.f32 %v325_v21, 0.0 }
 0x169   :  { %v420_v39 = vmax.f32 %v409_v33, 0.0  ;;  %v6396_v30 = vld [vmem:[#allocation7 + $0x3c4] ss:$8 sps:$4 sm:$0xff]   ;;  %v5610_v34 = vcombine.low %v1376_v24, %v1380_v25  ;;  %v7154_v37 = vsub.s32 6, %v7109_v38  ;;  %v6400_v38 = vld [vmem:[#allocation7 + $0x3e0] ss:$8 sps:$4 sm:$0xff]  }
 0x16a   :  { %v1388_v33 = vld [vmem:[#allocation8 + $0x60] sm:$0xff] }
 0x16b   :  { %1262 = vmatpush1.bf16.msra.mxu1 %v6328_v31  ;;  %1336 = vmatpush1.bf16.msra.mxu0 %v6331_v32  ;;  %v558_v45 = vpack.c.bf16 %v420_v39, %v420_v39  ;;  %v5611_v31 = vcombine.high %v1376_v24, %v1380_v25  ;;  %v1384_v32 = vld [vmem:[#allocation8 + $0x40] sm:$0xff] }
 0x16c   :  { %1263 = vmatprep.subr.bf16.mxu1 %v6336_v35  ;;  %1337 = vmatprep.subr.bf16.mxu0 %v6339_v36  ;;  %v553_v35 = vpack.c.bf16 %v415_v28, %v415_v28  ;;  %v6399_v36 = vld [vmem:[#allocation7 + $0x3d4] ss:$8 sps:$4 sm:$0xff]   ;;  %v5619_v39 = vcombine.high %v1384_v32, %v1388_v33  ;;  %v1456_v24 = vld [vmem:[#allocation8 + $0x280] sm:$0xff] }
 0x16d   :  { %1365 = vmatprep.mubr.bf16.mxu0 %v558_v45  ;;  %v6397_v45 = vld [vmem:[#allocation7 + $0x3d0] ss:$8 sps:$4 sm:$0xff]   ;;  %v1460_v25 = vld [vmem:[#allocation8 + $0x2a0] sm:$0xff] }
 0x16e   :  { %v1464_v28 = vld [vmem:[#allocation8 + $0x2c0] sm:$0xff] }
 0x16f   :  { %1264 = vmatpush1.bf16.msra.mxu1 %v6334_v40  ;;  %1338 = vmatpush1.bf16.msra.mxu0 %v6337_v44  ;;  %v1392_v40 = vld [vmem:[#allocation8 + $0x80] sm:$0xff] }
 0x170   :  { %1265 = vmatprep.subr.bf16.mxu1 %v6342_v46  ;;  %1339 = vmatprep.subr.bf16.mxu0 %v6345_v47  ;;  %v1396_v44 = vld [vmem:[#allocation8 + $0xa0] sm:$0xff]  ;;  %v5618_v46 = vcombine.low %v1384_v32, %v1388_v33  ;;  %v152_v47 = vrot.slane %v7111_v41, %v7154_v37 }
 0x171   :  { %v1472_v33 = vld [vmem:[#allocation8 + $0x300] sm:$0xff] }
 0x173   :  { %1266 = vmatpush1.bf16.msra.mxu1 %v6340_v48  ;;  %1340 = vmatpush1.bf16.msra.mxu0 %v6343_v49  ;;  %v6402_v48 = vld [vmem:[#allocation7 + $0x3e4] ss:$8 sps:$4 sm:$0xff]   ;;  %v5627_v49 = vcombine.high %v1392_v40, %v1396_v44 }
 0x174   :  { %1267 = vmatprep.subr.bf16.mxu1 %v6348_v50  ;;  %1341 = vmatprep.subr.bf16.mxu0 %v6351_v52  ;;  %v1400_v50 = vld [vmem:[#allocation8 + $0xc0] sm:$0xff] }
 0x175   :  { %v1404_v52 = vld [vmem:[#allocation8 + $0xe0] sm:$0xff] }
 0x176   :  { %v5634_v41 = vcombine.low %v1400_v50, %v1404_v52 }
 0x177   :  { %1268 = vmatpush1.bf16.msra.mxu1 %v6346_v53  ;;  %1342 = vmatpush1.bf16.msra.mxu0 %v6349_v54  ;;  %v5626_v53 = vcombine.low %v1392_v40, %v1396_v44  ;;  %v407_v54 = vadd.f32 %v7145_v29, %v152_v47 }
 0x178   :  { %1269 = vmatprep.subr.bf16.mxu1 %v6354_v55  ;;  %1343 = vmatprep.subr.bf16.mxu0 %v6357_v56  ;;  %v6405_v55 = vld [vmem:[#allocation7 + $0x3f4] ss:$8 sps:$4 sm:$0xff]   ;;  %v5635_v56 = vcombine.high %v1400_v50, %v1404_v52  ;;  %v1500_v50 = vld [vmem:[#allocation8 + $0x3e0] sm:$0xff] }
 0x17b   :  { %1270 = vmatpush1.bf16.msra.mxu1 %v6352_v57  ;;  %1344 = vmatpush1.bf16.msra.mxu0 %v6355_v58  ;;  %v1408_v57 = vld [vmem:[#allocation8 + $0x100] sm:$0xff] }
 0x17c   :  { %1271 = vmatprep.subr.bf16.mxu1 %v6360_v59  ;;  %1345 = vmatprep.subr.bf16.mxu0 %v6363_v61  ;;  %v1412_v58 = vld [vmem:[#allocation8 + $0x120] sm:$0xff]  ;;  %v6403_v59 = vld [vmem:[#allocation7 + $0x3f0] ss:$8 sps:$4 sm:$0xff]   ;;  %v419_v61 = vmax.f32 %v407_v54, 0.0  ;;  %v1381_v54 = vld [vmem:[#allocation8 + $0x28] sm:$0xff] }
 0x17e   :  { %v557_v29 = vpack.c.bf16 %v419_v61, %v419_v61  ;;  %v550_v61 = vld [vmem:[#allocation11 + $0x1] ss:$8 sm:$0x3] }
 0x17f   :  { %1272 = vmatpush1.bf16.msra.mxu1 %v6358_v63  ;;  %1346 = vmatpush1.bf16.msra.mxu0 %v6361_v0  ;;  %v5643_v63 = vcombine.high %v1408_v57, %v1412_v58  ;;  %v1416_v0 = vld [vmem:[#allocation8 + $0x140] sm:$0xff] }
 0x180   :  { %1273 = vmatprep.subr.bf16.mxu1 %v6366_v1  ;;  %1347 = vmatprep.subr.bf16.mxu0 %v6369_v3  ;;  %v1420_v1 = vld [vmem:[#allocation8 + $0x160] sm:$0xff]  ;;  %v5642_v3 = vcombine.low %v1408_v57, %v1412_v58 }
 0x183   :  { %1274 = vmatpush1.bf16.msra.mxu1 %v6364_v4  ;;  %1348 = vmatpush1.bf16.msra.mxu0 %v6367_v5  ;;  %v5651_v4 = vcombine.high %v1416_v0, %v1420_v1  ;;  %v1424_v5 = vld [vmem:[#allocation8 + $0x180] sm:$0xff] }
 0x184   :  { %1275 = vmatprep.subr.bf16.mxu1 %v6372_v6  ;;  %1349 = vmatprep.subr.bf16.mxu0 %v6375_v7  ;;  %v1428_v6 = vld [vmem:[#allocation8 + $0x1a0] sm:$0xff]  ;;  %v5650_v7 = vcombine.low %v1416_v0, %v1420_v1  ;;  %v567_v0 = vrot.slane %v550_v61, %v7117_v43 }
 0x187   :  { %1276 = vmatpush1.bf16.msra.mxu1 %v6370_v8  ;;  %1350 = vmatpush1.bf16.msra.mxu0 %v6373_v9  ;;  %v5659_v8 = vcombine.high %v1424_v5, %v1428_v6  ;;  %v1432_v9 = vld [vmem:[#allocation8 + $0x1c0] sm:$0xff] }
 0x188   :  { %1277 = vmatprep.subr.bf16.mxu1 %v6378_v11  ;;  %1351 = vmatprep.subr.bf16.mxu0 %v6381_v12  ;;  %v1436_v11 = vld [vmem:[#allocation8 + $0x1e0] sm:$0xff]  ;;  %v5658_v12 = vcombine.low %v1424_v5, %v1428_v6 }
 0x18b   :  { %1278 = vmatpush1.bf16.msra.mxu1 %v6376_v13  ;;  %1352 = vmatpush1.bf16.msra.mxu0 %v6379_v14  ;;  %v5667_v13 = vcombine.high %v1432_v9, %v1436_v11  ;;  %v1440_v14 = vld [vmem:[#allocation8 + $0x200] sm:$0xff] }
 0x18c   :  { %1279 = vmatprep.subr.bf16.mxu1 %v6384_v16  ;;  %1353 = vmatprep.subr.bf16.mxu0 %v6387_v18  ;;  %v5666_v16 = vcombine.low %v1432_v9, %v1436_v11  ;;  %v5675_v18 = vcombine.high %v1440_v14, %v1444_v15  ;;  %v5674_v21 = vcombine.low %v1440_v14, %v1444_v15 }
 0x18f   :  { %1280 = vmatpush1.bf16.msra.mxu1 %v6382_v19  ;;  %1354 = vmatpush1.bf16.msra.mxu0 %v6385_v20  ;;  %v1448_v19 = vld [vmem:[#allocation8 + $0x240] sm:$0xff] }
 0x190   :  { %1281 = vmatprep.subr.bf16.mxu1 %v6390_v22  ;;  %1355 = vmatprep.subr.bf16.mxu0 %v6393_v23  ;;  %v1452_v20 = vld [vmem:[#allocation8 + $0x260] sm:$0xff] }
 0x191   :  { %v5683_v22 = vcombine.high %v1448_v19, %v1452_v20  ;;  %v5682_v23 = vcombine.low %v1448_v19, %v1452_v20  ;;  %v1397_v19 = vld [vmem:[#allocation8 + $0xa8] sm:$0xff] }
 0x193   :  { %1282 = vmatpush1.bf16.msra.mxu1 %v6388_v26  ;;  %1356 = vmatpush1.bf16.msra.mxu0 %v6391_v27  ;;  %v5691_v26 = vcombine.high %v1456_v24, %v1460_v25  ;;  %v5690_v27 = vcombine.low %v1456_v24, %v1460_v25 }
 0x194   :  { %1357 = vmatprep.subr.bf16.mxu0 %v6396_v30  ;;  %2191 = vmatprep.subr.bf16.mxu1 %v5611_v31  ;;  %v1468_v30 = vld [vmem:[#allocation8 + $0x2e0] sm:$0xff] }
 0x195   :  { %v5699_v31 = vcombine.high %v1464_v28, %v1468_v30  ;;  %v5698_v32 = vcombine.low %v1464_v28, %v1468_v30 }
 0x196   :  { %1284 = vmatmul.mubr.bf16.vlgmr.msra.gmra.mrb[0].mxu1 %v553_v35 }
 0x197   :  { %1358 = vmatpush1.bf16.msra.mxu0 %v6394_v60  ;;  %2192 = vmatpush1.bf16.msra.mxu1 %v5610_v34  ;;  %v1476_v60 = vld [vmem:[#allocation8 + $0x320] sm:$0xff] }
 0x198   :  { %1359 = vmatprep.subr.bf16.mxu0 %v6399_v36  ;;  %2193 = vmatprep.subr.bf16.mxu1 %v5619_v39  ;;  %v1480_v34 = vld [vmem:[#allocation8 + $0x340] sm:$0xff]  ;;  %v5707_v35 = vcombine.high %v1472_v33, %v1476_v60  ;;  %v5706_v39 = vcombine.low %v1472_v33, %v1476_v60 }
 0x199   :  { %v1484_v36 = vld [vmem:[#allocation8 + $0x360] sm:$0xff] }
 0x19a   :  { %v5715_v40 = vcombine.high %v1480_v34, %v1484_v36  ;;  %v5714_v44 = vcombine.low %v1480_v34, %v1484_v36  ;;  %v1425_v34 = vld [vmem:[#allocation8 + $0x188] sm:$0xff] }
 0x19b   :  { %1360 = vmatpush1.bf16.msra.mxu0 %v6397_v45  ;;  %2194 = vmatpush1.bf16.msra.mxu1 %v5618_v46  ;;  %v1488_v45 = vld [vmem:[#allocation8 + $0x380] sm:$0xff] }
 0x19c   :  { %1361 = vmatprep.subr.bf16.mxu0 %v6402_v48  ;;  %2195 = vmatprep.subr.bf16.mxu1 %v5627_v49  ;;  %v1492_v46 = vld [vmem:[#allocation8 + $0x3a0] sm:$0xff] }
 0x19d   :  { %v5723_v47 = vcombine.high %v1488_v45, %v1492_v46  ;;  %v5722_v48 = vcombine.low %v1488_v45, %v1492_v46  ;;  %v1496_v49 = vld [vmem:[#allocation8 + $0x3c0] sm:$0xff] }
 0x19e   :  { %v5731_v52 = vcombine.high %v1496_v49, %v1500_v50 }
 0x19f   :  { %1362 = vmatpush1.bf16.msra.mxu0 %v6400_v38  ;;  %2196 = vmatpush1.bf16.msra.mxu1 %v5626_v53  ;;  %v5730_v38 = vcombine.low %v1496_v49, %v1500_v50  ;;  %v1377_v53 = vld [vmem:[#allocation8 + $0x8] sm:$0xff] }
 0x1a0   :  { %1363 = vmatprep.subr.bf16.mxu0 %v6405_v55  ;;  %2197 = vmatprep.subr.bf16.mxu1 %v5635_v56  ;;  %v5613_v55 = vcombine.high %v1377_v53, %v1381_v54  ;;  %v5612_v56 = vcombine.low %v1377_v53, %v1381_v54  ;;  %v1449_v53 = vld [vmem:[#allocation8 + $0x248] sm:$0xff] }
 0x1a1   :  { %v1453_v54 = vld [vmem:[#allocation8 + $0x268] sm:$0xff] }
 0x1a3   :  { %1364 = vmatpush1.bf16.msra.mxu0 %v6403_v59  ;;  %2198 = vmatpush1.bf16.msra.mxu1 %v5634_v41 }
 0x1a4   :  { %2199 = vmatprep.subr.bf16.mxu1 %v5643_v63  ;;  %v563_v63 = vrot.slane %v550_v61, %v7114_v42  ;;  %v5684_v61 = vcombine.low %v1449_v53, %v1453_v54 }
 0x1a6   :  { %1366 = vmatmul.mubr.bf16.vlgmr.msra.gmra.mrb[16].mxu0 %v557_v29 }
 0x1a7   :  { %2200 = vmatpush1.bf16.msra.mxu1 %v5642_v3 }
 0x1a8   :  { %2201 = vmatprep.subr.bf16.mxu1 %v5651_v4 }
 0x1ab   :  { %2202 = vmatpush1.bf16.msra.mxu1 %v5650_v7 }
 0x1ac   :  { %2203 = vmatprep.subr.bf16.mxu1 %v5659_v8 }
 0x1af   :  { %2204 = vmatpush1.bf16.msra.mxu1 %v5658_v12  ;;  %v1385_v12 = vld [vmem:[#allocation8 + $0x48] sm:$0xff] }
 0x1b0   :  { %2205 = vmatprep.subr.bf16.mxu1 %v5667_v13  ;;  %v1389_v13 = vld [vmem:[#allocation8 + $0x68] sm:$0xff] }
 0x1b1   :  { %v5620_v20 = vcombine.low %v1385_v12, %v1389_v13 }
 0x1b3   :  { %2206 = vmatpush1.bf16.msra.mxu1 %v5666_v16  ;;  %v5621_v16 = vcombine.high %v1385_v12, %v1389_v13  ;;  %v6418_v13 = vld [vmem:[#allocation7 + $0x440] ss:$8 sps:$4 sm:$0xff]  }
 0x1b4   :  { %2207 = vmatprep.subr.bf16.mxu1 %v5675_v18  ;;  %v1393_v18 = vld [vmem:[#allocation8 + $0x88] sm:$0xff] }
 0x1b5   :  { %v5628_v24 = vcombine.low %v1393_v18, %v1397_v19 }
 0x1b7   :  { %2208 = vmatpush1.bf16.msra.mxu1 %v5674_v21  ;;  %v5629_v21 = vcombine.high %v1393_v18, %v1397_v19  ;;  %v1481_v18 = vld [vmem:[#allocation8 + $0x348] sm:$0xff] }
 0x1b8   :  { %2209 = vmatprep.subr.bf16.mxu1 %v5683_v22  ;;  %v1401_v22 = vld [vmem:[#allocation8 + $0xc8] sm:$0xff] }
 0x1b9   :  { %v1485_v19 = vld [vmem:[#allocation8 + $0x368] sm:$0xff] }
 0x1bb   :  { %2210 = vmatpush1.bf16.msra.mxu1 %v5682_v23  ;;  %v1405_v23 = vld [vmem:[#allocation8 + $0xe8] sm:$0xff] }
 0x1bc   :  { %2211 = vmatprep.subr.bf16.mxu1 %v5691_v26  ;;  %v5637_v25 = vcombine.high %v1401_v22, %v1405_v23  ;;  %v1409_v26 = vld [vmem:[#allocation8 + $0x108] sm:$0xff]  ;;  %v5636_v28 = vcombine.low %v1401_v22, %v1405_v23  ;;  %v6421_v22 = vld [vmem:[#allocation7 + $0x450] ss:$8 sps:$4 sm:$0xff]   ;;  %v6423_v23 = vld [vmem:[#allocation7 + $0x454] ss:$8 sps:$4 sm:$0xff]  }
 0x1bf   :  { %2212 = vmatpush1.bf16.msra.mxu1 %v5690_v27  ;;  %v1413_v27 = vld [vmem:[#allocation8 + $0x128] sm:$0xff] }
 0x1c0   :  { %2213 = vmatprep.subr.bf16.mxu1 %v5699_v31  ;;  %v5645_v30 = vcombine.high %v1409_v26, %v1413_v27  ;;  %v1417_v31 = vld [vmem:[#allocation8 + $0x148] sm:$0xff]  ;;  %v5644_v33 = vcombine.low %v1409_v26, %v1413_v27  ;;  %v5716_v26 = vcombine.low %v1481_v18, %v1485_v19 }
 0x1c3   :  { %2214 = vmatpush1.bf16.msra.mxu1 %v5698_v32  ;;  %v1421_v32 = vld [vmem:[#allocation8 + $0x168] sm:$0xff] }
 0x1c4   :  { %2215 = vmatprep.subr.bf16.mxu1 %v5707_v35  ;;  %v5653_v60 = vcombine.high %v1417_v31, %v1421_v32  ;;  %v1429_v35 = vld [vmem:[#allocation8 + $0x1a8] sm:$0xff]  ;;  %v5652_v36 = vcombine.low %v1417_v31, %v1421_v32 }
 0x1c5   :  { %v5660_v45 = vcombine.low %v1425_v34, %v1429_v35  ;;  %v1497_v31 = vld [vmem:[#allocation8 + $0x3c8] sm:$0xff] }
 0x1c6   :  { %v1501_v32 = vld [vmem:[#allocation8 + $0x3e8] sm:$0xff] }
 0x1c7   :  { %2216 = vmatpush1.bf16.msra.mxu1 %v5706_v39  ;;  %v5661_v39 = vcombine.high %v1425_v34, %v1429_v35  ;;  %v6427_v34 = vld [vmem:[#allocation7 + $0x470] ss:$8 sps:$4 sm:$0xff]   ;;  %v6429_v35 = vld [vmem:[#allocation7 + $0x474] ss:$8 sps:$4 sm:$0xff]  }
 0x1c8   :  { %2217 = vmatprep.subr.bf16.mxu1 %v5715_v40  ;;  %v1433_v40 = vld [vmem:[#allocation8 + $0x1c8] sm:$0xff] }
 0x1cb   :  { %2218 = vmatpush1.bf16.msra.mxu1 %v5714_v44  ;;  %v1437_v44 = vld [vmem:[#allocation8 + $0x1e8] sm:$0xff] }
 0x1cc   :  { %2219 = vmatprep.subr.bf16.mxu1 %v5723_v47  ;;  %v5669_v46 = vcombine.high %v1433_v40, %v1437_v44  ;;  %v1441_v47 = vld [vmem:[#allocation8 + $0x208] sm:$0xff]  ;;  %v5668_v49 = vcombine.low %v1433_v40, %v1437_v44  ;;  %v5732_v40 = vcombine.low %v1497_v31, %v1501_v32 }
 0x1cf   :  { %2220 = vmatpush1.bf16.msra.mxu1 %v5722_v48  ;;  %v1445_v48 = vld [vmem:[#allocation8 + $0x228] sm:$0xff] }
 0x1d0   :  { %2221 = vmatprep.subr.bf16.mxu1 %v5731_v52  ;;  %v5677_v50 = vcombine.high %v1441_v47, %v1445_v48  ;;  %v6406_v52 = vld [vmem:[#allocation7 + $0x400] ss:$8 sps:$4 sm:$0xff]  }
 0x1d3   :  { %2222 = vmatpush1.bf16.msra.mxu1 %v5730_v38  ;;  %v6408_v38 = vld [vmem:[#allocation7 + $0x404] ss:$8 sps:$4 sm:$0xff]  }
 0x1d4   :  { %2232 = vmatprep.subr.bf16.mxu1 %v5613_v55  ;;  %3153 = vmatprep.subr.bf16.mxu0 %v6408_v38  ;;  %v5676_v55 = vcombine.low %v1441_v47, %v1445_v48  ;;  %v1386_v47 = vld [vmem:[#allocation8 + $0x50] sm:$0xff] }
 0x1d5   :  { %3154 = vmatpush1.bf16.msra.mxu0 %v6406_v52  ;;  %v1390_v48 = vld [vmem:[#allocation8 + $0x70] sm:$0xff] }
 0x1d6   :  { %v6435_v52 = vld [vmem:[#allocation7 + $0x494] ss:$8 sps:$4 sm:$0xff]  }
 0x1d7   :  { %v1394_v38 = vld [vmem:[#allocation8 + $0x90] sm:$0xff] }
 0x269   :  { %v1285_v57 = vpop.f32.mrb[0].mxu1 }
 0x26a   :  { %v1287_v58 = vpop.f32.mrb[1].mxu1  ;;  %v6160_v1 = vadd.f32 %v1285_v57, %v563_v63  ;;  %v6409_v57 = vld [vmem:[#allocation7 + $0x410] ss:$8 sps:$4 sm:$0xff]  }
 0x26b   :  { %v1289_v59 = vpop.f32.mrb[2].mxu1  ;;  %v6162_v3 = vadd.f32 %v1287_v58, %v567_v0  ;;  %v6411_v58 = vld [vmem:[#allocation7 + $0x414] ss:$8 sps:$4 sm:$0xff]   ;;  %v6412_v0 = vld [vmem:[#allocation7 + $0x420] ss:$8 sps:$4 sm:$0xff]  }
 0x26c   :  { %v1290_v41 = vpop.f32.mrb[3].mxu1  ;;  %v1457_v59 = vld [vmem:[#allocation8 + $0x288] sm:$0xff]  ;;  %3155 = vmatprep.subr.bf16.mxu0 %v6411_v58 }
 0x26d   :  { %v1461_v41 = vld [vmem:[#allocation8 + $0x2a8] sm:$0xff]  ;;  %3156 = vmatpush1.bf16.msra.mxu0 %v6409_v57 }
 0x26e   :  { %v5693_v63 = vcombine.high %v1457_v59, %v1461_v41  ;;  %v6436_v58 = vld [vmem:[#allocation7 + $0x4a0] ss:$8 sps:$4 sm:$0xff]  }
 0x279   :  { %v1367_v29 = vpop.f32.mrb[16].mxu0 }
 0x27a   :  { %v6161_v4 = vadd.f32 %v6160_v1, %v1367_v29  ;;  %v1369_v5 = vpop.f32.mrb[17].mxu0  ;;  %v6414_v1 = vld [vmem:[#allocation7 + $0x424] ss:$8 sps:$4 sm:$0xff]  }
 0x27b   :  { %v6163_v6 = vadd.f32 %v6162_v3, %v1369_v5  ;;  %v1371_v7 = vpop.f32.mrb[18].mxu0  ;;  %v1465_v3 = vld [vmem:[#allocation8 + $0x2c8] sm:$0xff]  ;;  %3157 = vmatprep.subr.bf16.mxu0 %v6414_v1  ;;  %v6439_v1 = vld [vmem:[#allocation7 + $0x4b0] ss:$8 sps:$4 sm:$0xff]  }
 0x27c   :  { %v1374_v8 = vmax.f32 %v6161_v4, 0.0  ;;  %v1372_v9 = vpop.f32.mrb[19].mxu0  ;;  %v1469_v29 = vld [vmem:[#allocation8 + $0x2e8] sm:$0xff]  ;;  %v5692_v4 = vcombine.low %v1457_v59, %v1461_v41  ;;  %3158 = vmatpush1.bf16.msra.mxu0 %v6412_v0  ;;  %v6417_v7 = vld [vmem:[#allocation7 + $0x434] ss:$8 sps:$4 sm:$0xff]  }
 0x27d   :  { %v1375_v11 = vmax.f32 %v6163_v6, 0.0  ;;  %v5701_v5 = vcombine.high %v1465_v3, %v1469_v29  ;;  %v6415_v6 = vld [vmem:[#allocation7 + $0x430] ss:$8 sps:$4 sm:$0xff]   ;;  %v1477_v9 = vld [vmem:[#allocation8 + $0x328] sm:$0xff]  ;;  %3159 = vmatprep.subr.bf16.mxu0 %v6417_v7 }
 0x27e   :  { %v7163_v15 = vpack.c.bf16 %v1374_v8, %v1374_v8  ;;  %v1473_v8 = vld [vmem:[#allocation8 + $0x308] sm:$0xff]  ;;  %v1402_v59 = vld [vmem:[#allocation8 + $0xd0] sm:$0xff] }
 0x27f   :  { %v7161_v14 = vpack.c.bf16 %v1375_v11, %v1375_v11  ;;  %v5700_v11 = vcombine.low %v1465_v3, %v1469_v29  ;;  %v5709_v12 = vcombine.high %v1473_v8, %v1477_v9  ;;  %v1406_v41 = vld [vmem:[#allocation8 + $0xf0] sm:$0xff]  ;;  %v6442_v7 = vld [vmem:[#allocation7 + $0x4c0] ss:$8 sps:$4 sm:$0xff]  }
 0x280   :  { %3160 = vmatpush1.bf16.msra.mxu0 %v6415_v6  ;;  %v5639_v0 = vcombine.high %v1402_v59, %v1406_v41  ;;  %v1410_v3 = vld [vmem:[#allocation8 + $0x110] sm:$0xff] }
 0x281   :  { %2223 = vmatprep.mubr.bf16.mxu1 %v7161_v14  ;;  %v1414_v29 = vld [vmem:[#allocation8 + $0x130] sm:$0xff] }
 0x282   :  { %2224 = vmatmul.mubr.bf16.vlgmr.msra.gmra.mrb[4].mxu1 %v7163_v15  ;;  %v5647_v6 = vcombine.high %v1410_v3, %v1414_v29 }
 0x283   :  { %2233 = vmatpush1.bf16.msra.mxu1 %v5612_v56  ;;  %2264 = vmatprep.mubr.bf16.mxu1 %v7161_v14  ;;  %v5685_v56 = vcombine.high %v1449_v53, %v1453_v54  ;;  %v1398_v53 = vld [vmem:[#allocation8 + $0xb0] sm:$0xff] }
 0x284   :  { %2234 = vmatprep.subr.bf16.mxu1 %v5621_v16  ;;  %v6420_v16 = vld [vmem:[#allocation7 + $0x444] ss:$8 sps:$4 sm:$0xff]   ;;  %v6433_v54 = vld [vmem:[#allocation7 + $0x490] ss:$8 sps:$4 sm:$0xff]   ;;  %v5631_v57 = vcombine.high %v1394_v38, %v1398_v53 }
 0x285   :  { %3161 = vmatprep.subr.bf16.mxu0 %v6420_v16  ;;  %v6445_v16 = vld [vmem:[#allocation7 + $0x4d0] ss:$8 sps:$4 sm:$0xff]  }
 0x286   :  { %3162 = vmatpush1.bf16.msra.mxu0 %v6418_v13 }
 0x287   :  { %2235 = vmatpush1.bf16.msra.mxu1 %v5620_v20  ;;  %v5708_v20 = vcombine.low %v1473_v8, %v1477_v9  ;;  %3163 = vmatprep.subr.bf16.mxu0 %v6423_v23  ;;  %v1418_v8 = vld [vmem:[#allocation8 + $0x150] sm:$0xff] }
 0x288   :  { %2236 = vmatprep.subr.bf16.mxu1 %v5629_v21  ;;  %v5717_v21 = vcombine.high %v1481_v18, %v1485_v19  ;;  %v1422_v9 = vld [vmem:[#allocation8 + $0x170] sm:$0xff] }
 0x289   :  { %v5655_v13 = vcombine.high %v1418_v8, %v1422_v9  ;;  %v1426_v18 = vld [vmem:[#allocation8 + $0x190] sm:$0xff] }
 0x28a   :  { %3164 = vmatpush1.bf16.msra.mxu0 %v6421_v22  ;;  %v1430_v19 = vld [vmem:[#allocation8 + $0x1b0] sm:$0xff]  ;;  %v6450_v22 = vld [vmem:[#allocation7 + $0x4e4] ss:$8 sps:$4 sm:$0xff]  }
 0x28b   :  { %2237 = vmatpush1.bf16.msra.mxu1 %v5628_v24  ;;  %v1489_v24 = vld [vmem:[#allocation8 + $0x388] sm:$0xff]  ;;  %v1434_v23 = vld [vmem:[#allocation8 + $0x1d0] sm:$0xff] }
 0x28c   :  { %2238 = vmatprep.subr.bf16.mxu1 %v5637_v25  ;;  %v1493_v25 = vld [vmem:[#allocation8 + $0x3a8] sm:$0xff] }
 0x28d   :  { %v5725_v27 = vcombine.high %v1489_v24, %v1493_v25 }
 0x28f   :  { %2239 = vmatpush1.bf16.msra.mxu1 %v5636_v28  ;;  %v6424_v28 = vld [vmem:[#allocation7 + $0x460] ss:$8 sps:$4 sm:$0xff]  }
 0x290   :  { %2240 = vmatprep.subr.bf16.mxu1 %v5645_v30  ;;  %v6426_v30 = vld [vmem:[#allocation7 + $0x464] ss:$8 sps:$4 sm:$0xff]  }
 0x291   :  { %3165 = vmatprep.subr.bf16.mxu0 %v6426_v30  ;;  %v1442_v30 = vld [vmem:[#allocation8 + $0x210] sm:$0xff] }
 0x292   :  { %3166 = vmatpush1.bf16.msra.mxu0 %v6424_v28  ;;  %v6453_v28 = vld [vmem:[#allocation7 + $0x4f4] ss:$8 sps:$4 sm:$0xff]  }
 0x293   :  { %2241 = vmatpush1.bf16.msra.mxu1 %v5644_v33  ;;  %v5724_v33 = vcombine.low %v1489_v24, %v1493_v25  ;;  %3167 = vmatprep.subr.bf16.mxu0 %v6429_v35  ;;  %v1438_v24 = vld [vmem:[#allocation8 + $0x1f0] sm:$0xff]  ;;  %v6448_v25 = vld [vmem:[#allocation7 + $0x4e0] ss:$8 sps:$4 sm:$0xff]  }
 0x294   :  { %2242 = vmatprep.subr.bf16.mxu1 %v5653_v60  ;;  %v5733_v60 = vcombine.high %v1497_v31, %v1501_v32  ;;  %v1446_v31 = vld [vmem:[#allocation8 + $0x230] sm:$0xff] }
 0x295   :  { %v6451_v32 = vld [vmem:[#allocation7 + $0x4f0] ss:$8 sps:$4 sm:$0xff]  }
 0x296   :  { %3168 = vmatpush1.bf16.msra.mxu0 %v6427_v34  ;;  %v6456_v34 = vld [vmem:[#allocation7 + $0x504] ss:$8 sps:$4 sm:$0xff]   ;;  %v1450_v35 = vld [vmem:[#allocation8 + $0x250] sm:$0xff] }
 0x297   :  { %2243 = vmatpush1.bf16.msra.mxu1 %v5652_v36  ;;  %v1378_v36 = vld [vmem:[#allocation8 + $0x10] sm:$0xff] }
 0x298   :  { %2244 = vmatprep.subr.bf16.mxu1 %v5661_v39  ;;  %v1382_v39 = vld [vmem:[#allocation8 + $0x30] sm:$0xff] }
 0x299   :  { %v5615_v44 = vcombine.high %v1378_v36, %v1382_v39 }
 0x29b   :  { %2245 = vmatpush1.bf16.msra.mxu1 %v5660_v45  ;;  %v6430_v45 = vld [vmem:[#allocation7 + $0x480] ss:$8 sps:$4 sm:$0xff]  }
 0x29c   :  { %2246 = vmatprep.subr.bf16.mxu1 %v5669_v46  ;;  %v6432_v46 = vld [vmem:[#allocation7 + $0x484] ss:$8 sps:$4 sm:$0xff]  }
 0x29d   :  { %3169 = vmatprep.subr.bf16.mxu0 %v6432_v46 }
 0x29e   :  { %3170 = vmatpush1.bf16.msra.mxu0 %v6430_v45  ;;  %v1462_v45 = vld [vmem:[#allocation8 + $0x2b0] sm:$0xff] }
 0x29f   :  { %2247 = vmatpush1.bf16.msra.mxu1 %v5668_v49  ;;  %v5614_v49 = vcombine.low %v1378_v36, %v1382_v39  ;;  %3171 = vmatprep.subr.bf16.mxu0 %v6435_v52  ;;  %v1454_v36 = vld [vmem:[#allocation8 + $0x270] sm:$0xff]  ;;  %v5678_v39 = vcombine.low %v1442_v30, %v1446_v31 }
 0x2a0   :  { %2248 = vmatprep.subr.bf16.mxu1 %v5677_v50  ;;  %v5623_v50 = vcombine.high %v1386_v47, %v1390_v48  ;;  %v5686_v46 = vcombine.low %v1450_v35, %v1454_v36 }
 0x2a2   :  { %3172 = vmatpush1.bf16.msra.mxu0 %v6433_v54 }
 0x2a3   :  { %2249 = vmatpush1.bf16.msra.mxu1 %v5676_v55  ;;  %v6438_v55 = vld [vmem:[#allocation7 + $0x4a4] ss:$8 sps:$4 sm:$0xff]  }
 0x2a4   :  { %2250 = vmatprep.subr.bf16.mxu1 %v5685_v56  ;;  %v5622_v56 = vcombine.low %v1386_v47, %v1390_v48  ;;  %3173 = vmatprep.subr.bf16.mxu0 %v6438_v55  ;;  %v1466_v48 = vld [vmem:[#allocation8 + $0x2d0] sm:$0xff] }
 0x2a6   :  { %3174 = vmatpush1.bf16.msra.mxu0 %v6436_v58 }
 0x2a7   :  { %2251 = vmatpush1.bf16.msra.mxu1 %v5684_v61  ;;  %v6441_v61 = vld [vmem:[#allocation7 + $0x4b4] ss:$8 sps:$4 sm:$0xff]  }
 0x2a8   :  { %2252 = vmatprep.subr.bf16.mxu1 %v5693_v63  ;;  %v5630_v63 = vcombine.low %v1394_v38, %v1398_v53  ;;  %3175 = vmatprep.subr.bf16.mxu0 %v6441_v61  ;;  %v1474_v38 = vld [vmem:[#allocation8 + $0x310] sm:$0xff] }
 0x2a9   :  { %v1478_v53 = vld [vmem:[#allocation8 + $0x330] sm:$0xff] }
 0x2aa   :  { %3176 = vmatpush1.bf16.msra.mxu0 %v6439_v1  ;;  %v5711_v55 = vcombine.high %v1474_v38, %v1478_v53  ;;  %v5710_v58 = vcombine.low %v1474_v38, %v1478_v53  ;;  %v1494_v61 = vld [vmem:[#allocation8 + $0x3b0] sm:$0xff]  ;;  %v1459_v53 = vld [vmem:[#allocation8 + $0x298] sm:$0xff] }
 0x2ab   :  { %2253 = vmatpush1.bf16.msra.mxu1 %v5692_v4  ;;  %v6444_v4 = vld [vmem:[#allocation7 + $0x4c4] ss:$8 sps:$4 sm:$0xff]   ;;  %v1498_v1 = vld [vmem:[#allocation8 + $0x3d0] sm:$0xff] }
 0x2ac   :  { %2254 = vmatprep.subr.bf16.mxu1 %v5701_v5  ;;  %v5638_v5 = vcombine.low %v1402_v59, %v1406_v41  ;;  %3177 = vmatprep.subr.bf16.mxu0 %v6444_v4  ;;  %v1490_v41 = vld [vmem:[#allocation8 + $0x390] sm:$0xff] }
 0x2ae   :  { %3178 = vmatpush1.bf16.msra.mxu0 %v6442_v7 }
 0x2af   :  { %2255 = vmatpush1.bf16.msra.mxu1 %v5700_v11  ;;  %v6447_v11 = vld [vmem:[#allocation7 + $0x4d4] ss:$8 sps:$4 sm:$0xff]  }
 0x2b0   :  { %2256 = vmatprep.subr.bf16.mxu1 %v5709_v12  ;;  %v5646_v12 = vcombine.low %v1410_v3, %v1414_v29  ;;  %3179 = vmatprep.subr.bf16.mxu0 %v6447_v11  ;;  %v1502_v3 = vld [vmem:[#allocation8 + $0x3f0] sm:$0xff]  ;;  %v5726_v29 = vcombine.low %v1490_v41, %v1494_v61  ;;  %v1391_v11 = vld [vmem:[#allocation8 + $0x78] sm:$0xff] }
 0x2b1   :  { %v5735_v4 = vcombine.high %v1498_v1, %v1502_v3  ;;  %v5734_v7 = vcombine.low %v1498_v1, %v1502_v3  ;;  %v1483_v3 = vld [vmem:[#allocation8 + $0x358] sm:$0xff] }
 0x2b2   :  { %3180 = vmatpush1.bf16.msra.mxu0 %v6445_v16  ;;  %v1395_v16 = vld [vmem:[#allocation8 + $0x98] sm:$0xff] }
 0x2b3   :  { %2257 = vmatpush1.bf16.msra.mxu1 %v5708_v20  ;;  %v5654_v20 = vcombine.low %v1418_v8, %v1422_v9  ;;  %3181 = vmatprep.subr.bf16.mxu0 %v6450_v22  ;;  %v1387_v9 = vld [vmem:[#allocation8 + $0x58] sm:$0xff] }
 0x2b4   :  { %2258 = vmatprep.subr.bf16.mxu1 %v5717_v21  ;;  %v5663_v21 = vcombine.high %v1426_v18, %v1430_v19  ;;  %v1407_v22 = vld [vmem:[#allocation8 + $0xf8] sm:$0xff] }
 0x2b6   :  { %3182 = vmatpush1.bf16.msra.mxu0 %v6448_v25  ;;  %v1411_v25 = vld [vmem:[#allocation8 + $0x118] sm:$0xff] }
 0x2b7   :  { %2259 = vmatpush1.bf16.msra.mxu1 %v5716_v26  ;;  %v5662_v26 = vcombine.low %v1426_v18, %v1430_v19  ;;  %3183 = vmatprep.subr.bf16.mxu0 %v6453_v28  ;;  %v1399_v18 = vld [vmem:[#allocation8 + $0xb8] sm:$0xff]  ;;  %v5624_v19 = vcombine.low %v1387_v9, %v1391_v11 }
 0x2b8   :  { %2260 = vmatprep.subr.bf16.mxu1 %v5725_v27  ;;  %v5671_v27 = vcombine.high %v1434_v23, %v1438_v24 }
 0x2ba   :  { %3184 = vmatpush1.bf16.msra.mxu0 %v6451_v32 }
 0x2bb   :  { %2261 = vmatpush1.bf16.msra.mxu1 %v5724_v33  ;;  %v5670_v33 = vcombine.low %v1434_v23, %v1438_v24  ;;  %3194 = vmatprep.subr.bf16.mxu0 %v6456_v34  ;;  %v5632_v23 = vcombine.low %v1395_v16, %v1399_v18 }
 0x2bc   :  { %2262 = vmatprep.subr.bf16.mxu1 %v5733_v60  ;;  %v5679_v60 = vcombine.high %v1442_v30, %v1446_v31  ;;  %v1419_v30 = vld [vmem:[#allocation8 + $0x158] sm:$0xff] }
 0x2bd   :  { %v1423_v31 = vld [vmem:[#allocation8 + $0x178] sm:$0xff] }
 0x2be   :  { %v5656_v34 = vcombine.low %v1419_v30, %v1423_v31 }
 0x2bf   :  { %2263 = vmatpush1.bf16.msra.mxu1 %v5732_v40  ;;  %v5687_v40 = vcombine.high %v1450_v35, %v1454_v36  ;;  %v1435_v36 = vld [vmem:[#allocation8 + $0x1d8] sm:$0xff] }
 0x2c0   :  { %2273 = vmatprep.subr.bf16.mxu1 %v5615_v44  ;;  %v1458_v44 = vld [vmem:[#allocation8 + $0x290] sm:$0xff] }
 0x2c1   :  { %v5695_v47 = vcombine.high %v1458_v44, %v1462_v45 }
 0x2c2   :  { %2265 = vmatmul.mubr.bf16.vlgmr.msra.gmra.mrb[8].mxu1 %v7163_v15 }
 0x2c3   :  { %2274 = vmatpush1.bf16.msra.mxu1 %v5614_v49  ;;  %2305 = vmatprep.mubr.bf16.mxu1 %v7161_v14  ;;  %v1470_v49 = vld [vmem:[#allocation8 + $0x2f0] sm:$0xff] }
 0x2c4   :  { %2275 = vmatprep.subr.bf16.mxu1 %v5623_v50  ;;  %v5694_v50 = vcombine.low %v1458_v44, %v1462_v45  ;;  %v5703_v52 = vcombine.high %v1466_v48, %v1470_v49  ;;  %v5702_v54 = vcombine.low %v1466_v48, %v1470_v49  ;;  %v1443_v45 = vld [vmem:[#allocation8 + $0x218] sm:$0xff] }
 0x2c5   :  { %v1451_v49 = vld [vmem:[#allocation8 + $0x258] sm:$0xff] }
 0x2c7   :  { %2276 = vmatpush1.bf16.msra.mxu1 %v5622_v56  ;;  %v1482_v56 = vld [vmem:[#allocation8 + $0x350] sm:$0xff] }
 0x2c8   :  { %2277 = vmatprep.subr.bf16.mxu1 %v5631_v57  ;;  %v1486_v57 = vld [vmem:[#allocation8 + $0x370] sm:$0xff] }
 0x2c9   :  { %v5719_v59 = vcombine.high %v1482_v56, %v1486_v57 }
 0x2cb   :  { %2278 = vmatpush1.bf16.msra.mxu1 %v5630_v63  ;;  %v5718_v63 = vcombine.low %v1482_v56, %v1486_v57  ;;  %v1467_v57 = vld [vmem:[#allocation8 + $0x2d8] sm:$0xff] }
 0x2cc   :  { %2279 = vmatprep.subr.bf16.mxu1 %v5639_v0  ;;  %v5727_v0 = vcombine.high %v1490_v41, %v1494_v61  ;;  %v1475_v61 = vld [vmem:[#allocation8 + $0x318] sm:$0xff] }
 0x2cf   :  { %2280 = vmatpush1.bf16.msra.mxu1 %v5638_v5  ;;  %v1379_v5 = vld [vmem:[#allocation8 + $0x18] sm:$0xff] }
 0x2d0   :  { %2281 = vmatprep.subr.bf16.mxu1 %v5647_v6  ;;  %v1383_v6 = vld [vmem:[#allocation8 + $0x38] sm:$0xff] }
 0x2d1   :  { %v5617_v8 = vcombine.high %v1379_v5, %v1383_v6 }
 0x2d3   :  { %2282 = vmatpush1.bf16.msra.mxu1 %v5646_v12  ;;  %v5616_v12 = vcombine.low %v1379_v5, %v1383_v6  ;;  %v1491_v6 = vld [vmem:[#allocation8 + $0x398] sm:$0xff] }
 0x2d4   :  { %2283 = vmatprep.subr.bf16.mxu1 %v5655_v13  ;;  %v5625_v13 = vcombine.high %v1387_v9, %v1391_v11  ;;  %v1499_v11 = vld [vmem:[#allocation8 + $0x3d8] sm:$0xff] }
 0x2d7   :  { %2284 = vmatpush1.bf16.msra.mxu1 %v5654_v20  ;;  %v5633_v20 = vcombine.high %v1395_v16, %v1399_v18 }
 0x2d8   :  { %2285 = vmatprep.subr.bf16.mxu1 %v5663_v21  ;;  %v1403_v21 = vld [vmem:[#allocation8 + $0xd8] sm:$0xff] }
 0x2d9   :  { %v5641_v24 = vcombine.high %v1403_v21, %v1407_v22 }
 0x2db   :  { %2286 = vmatpush1.bf16.msra.mxu1 %v5662_v26  ;;  %v1415_v26 = vld [vmem:[#allocation8 + $0x138] sm:$0xff] }
 0x2dc   :  { %2287 = vmatprep.subr.bf16.mxu1 %v5671_v27  ;;  %v5640_v27 = vcombine.low %v1403_v21, %v1407_v22  ;;  %v5649_v28 = vcombine.high %v1411_v25, %v1415_v26  ;;  %v5648_v32 = vcombine.low %v1411_v25, %v1415_v26 }
 0x2df   :  { %2288 = vmatpush1.bf16.msra.mxu1 %v5670_v33  ;;  %v1427_v33 = vld [vmem:[#allocation8 + $0x198] sm:$0xff] }
 0x2e0   :  { %2289 = vmatprep.subr.bf16.mxu1 %v5679_v60  ;;  %v1431_v60 = vld [vmem:[#allocation8 + $0x1b8] sm:$0xff] }
 0x2e1   :  { %v5665_v35 = vcombine.high %v1427_v33, %v1431_v60 }
 0x2e3   :  { %2290 = vmatpush1.bf16.msra.mxu1 %v5678_v39  ;;  %v1439_v39 = vld [vmem:[#allocation8 + $0x1f8] sm:$0xff] }
 0x2e4   :  { %2291 = vmatprep.subr.bf16.mxu1 %v5687_v40  ;;  %v5664_v40 = vcombine.low %v1427_v33, %v1431_v60  ;;  %v5673_v44 = vcombine.high %v1435_v36, %v1439_v39  ;;  %v6459_v60 = vld [vmem:[#allocation7 + $0x514] ss:$8 sps:$4 sm:$0xff]  }
 0x2e7   :  { %2292 = vmatpush1.bf16.msra.mxu1 %v5686_v46  ;;  %v1447_v46 = vld [vmem:[#allocation8 + $0x238] sm:$0xff] }
 0x2e8   :  { %2293 = vmatprep.subr.bf16.mxu1 %v5695_v47  ;;  %v5672_v47 = vcombine.low %v1435_v36, %v1439_v39  ;;  %v5681_v48 = vcombine.high %v1443_v45, %v1447_v46  ;;  %v6460_v36 = vld [vmem:[#allocation7 + $0x520] ss:$8 sps:$4 sm:$0xff]   ;;  %v6465_v39 = vld [vmem:[#allocation7 + $0x534] ss:$8 sps:$4 sm:$0xff]  }
 0x2eb   :  { %2294 = vmatpush1.bf16.msra.mxu1 %v5694_v50  ;;  %v1455_v50 = vld [vmem:[#allocation8 + $0x278] sm:$0xff] }
 0x2ec   :  { %2295 = vmatprep.subr.bf16.mxu1 %v5703_v52  ;;  %v5680_v52 = vcombine.low %v1443_v45, %v1447_v46  ;;  %v5689_v38 = vcombine.high %v1451_v49, %v1455_v50  ;;  %v6466_v45 = vld [vmem:[#allocation7 + $0x540] ss:$8 sps:$4 sm:$0xff]   ;;  %v6471_v46 = vld [vmem:[#allocation7 + $0x554] ss:$8 sps:$4 sm:$0xff]  }
 0x2ef   :  { %2296 = vmatpush1.bf16.msra.mxu1 %v5702_v54  ;;  %v1463_v54 = vld [vmem:[#allocation8 + $0x2b8] sm:$0xff] }
 0x2f0   :  { %2297 = vmatprep.subr.bf16.mxu1 %v5711_v55  ;;  %v5688_v55 = vcombine.low %v1451_v49, %v1455_v50  ;;  %v5697_v56 = vcombine.high %v1459_v53, %v1463_v54  ;;  %v6472_v49 = vld [vmem:[#allocation7 + $0x560] ss:$8 sps:$4 sm:$0xff]   ;;  %v6477_v50 = vld [vmem:[#allocation7 + $0x574] ss:$8 sps:$4 sm:$0xff]  }
 0x2f3   :  { %2298 = vmatpush1.bf16.msra.mxu1 %v5710_v58  ;;  %v1471_v58 = vld [vmem:[#allocation8 + $0x2f8] sm:$0xff] }
 0x2f4   :  { %2299 = vmatprep.subr.bf16.mxu1 %v5719_v59  ;;  %v5696_v59 = vcombine.low %v1459_v53, %v1463_v54  ;;  %v5705_v41 = vcombine.high %v1467_v57, %v1471_v58  ;;  %v6478_v53 = vld [vmem:[#allocation7 + $0x580] ss:$8 sps:$4 sm:$0xff]   ;;  %v6483_v54 = vld [vmem:[#allocation7 + $0x594] ss:$8 sps:$4 sm:$0xff]  }
 0x2f7   :  { %2300 = vmatpush1.bf16.msra.mxu1 %v5718_v63  ;;  %v1479_v63 = vld [vmem:[#allocation8 + $0x338] sm:$0xff] }
 0x2f8   :  { %2301 = vmatprep.subr.bf16.mxu1 %v5727_v0  ;;  %v5704_v0 = vcombine.low %v1467_v57, %v1471_v58  ;;  %v5713_v1 = vcombine.high %v1475_v61, %v1479_v63  ;;  %v6484_v57 = vld [vmem:[#allocation7 + $0x5a0] ss:$8 sps:$4 sm:$0xff]   ;;  %v6489_v58 = vld [vmem:[#allocation7 + $0x5b4] ss:$8 sps:$4 sm:$0xff]  }
 0x2fb   :  { %2302 = vmatpush1.bf16.msra.mxu1 %v5726_v29  ;;  %v1487_v29 = vld [vmem:[#allocation8 + $0x378] sm:$0xff] }
 0x2fc   :  { %2303 = vmatprep.subr.bf16.mxu1 %v5735_v4  ;;  %v5712_v4 = vcombine.low %v1475_v61, %v1479_v63  ;;  %v5721_v5 = vcombine.high %v1483_v3, %v1487_v29  ;;  %v6490_v61 = vld [vmem:[#allocation7 + $0x5c0] ss:$8 sps:$4 sm:$0xff]   ;;  %v6495_v63 = vld [vmem:[#allocation7 + $0x5d4] ss:$8 sps:$4 sm:$0xff]  }
 0x2ff   :  { %2304 = vmatpush1.bf16.msra.mxu1 %v5734_v7  ;;  %v1495_v7 = vld [vmem:[#allocation8 + $0x3b8] sm:$0xff] }
 0x300   :  { %2314 = vmatprep.subr.bf16.mxu1 %v5617_v8  ;;  %v5720_v8 = vcombine.low %v1483_v3, %v1487_v29  ;;  %v5729_v9 = vcombine.high %v1491_v6, %v1495_v7 }
 0x302   :  { %2306 = vmatmul.mubr.bf16.vlgmr.msra.gmra.mrb[12].mxu1 %v7163_v15 }
 0x303   :  { %2315 = vmatpush1.bf16.msra.mxu1 %v5616_v12  ;;  %2346 = vmatprep.mubr.bf16.mxu1 %v7161_v14  ;;  %v5657_v14 = vcombine.high %v1419_v30, %v1423_v31  ;;  %v1503_v12 = vld [vmem:[#allocation8 + $0x3f8] sm:$0xff] }
 0x304   :  { %2316 = vmatprep.subr.bf16.mxu1 %v5625_v13  ;;  %v5728_v13 = vcombine.low %v1491_v6, %v1495_v7  ;;  %v5737_v16 = vcombine.high %v1499_v11, %v1503_v12  ;;  %v5736_v18 = vcombine.low %v1499_v11, %v1503_v12  ;;  %v6499_v12 = vld [vmem:[#allocation7 + $0x5f0] ss:$8 sps:$4 sm:$0xff]  }
 0x307   :  { %2317 = vmatpush1.bf16.msra.mxu1 %v5624_v19  ;;  %v1505_v19 = vld [vmem:[#allocation11 + $0x2] ss:$8 sm:$0xf] }
 0x308   :  { %2318 = vmatprep.subr.bf16.mxu1 %v5633_v20  ;;  %v1506_v20 = vld [vmem:[#allocation11 + $0x2] ss:$8 sm:$0xf0] }
 0x309   :  { %v7173_v21 = vor.u32 %v1506_v20, %v1505_v19 }
 0x30b   :  { %2319 = vmatpush1.bf16.msra.mxu1 %v5632_v23  ;;  %v1514_v22 = vrot.slane %v7173_v21, %v7114_v42  ;;  %v1518_v23 = vrot.slane %v7173_v21, %v7117_v43  ;;  %v1522_v3 = vrot.slane %v7173_v21, %v7148_v10  ;;  %v1526_v29 = vrot.slane %v7173_v21, %v7124_v51 }
 0x30c   :  { %2320 = vmatprep.subr.bf16.mxu1 %v5641_v24 }
 0x30f   :  { %2321 = vmatpush1.bf16.msra.mxu1 %v5640_v27 }
 0x310   :  { %2322 = vmatprep.subr.bf16.mxu1 %v5649_v28 }
 0x313   :  { %2323 = vmatpush1.bf16.msra.mxu1 %v5648_v32 }
 0x314   :  { %2324 = vmatprep.subr.bf16.mxu1 %v5657_v14 }
 0x317   :  { %2325 = vmatpush1.bf16.msra.mxu1 %v5656_v34  ;;  %v6457_v34 = vld [vmem:[#allocation7 + $0x510] ss:$8 sps:$4 sm:$0xff]  }
 0x318   :  { %2326 = vmatprep.subr.bf16.mxu1 %v5665_v35  ;;  %v6462_v35 = vld [vmem:[#allocation7 + $0x524] ss:$8 sps:$4 sm:$0xff]  }
 0x31b   :  { %2327 = vmatpush1.bf16.msra.mxu1 %v5664_v40  ;;  %v6463_v40 = vld [vmem:[#allocation7 + $0x530] ss:$8 sps:$4 sm:$0xff]  }
 0x31c   :  { %2328 = vmatprep.subr.bf16.mxu1 %v5673_v44  ;;  %v6468_v44 = vld [vmem:[#allocation7 + $0x544] ss:$8 sps:$4 sm:$0xff]  }
 0x31f   :  { %2329 = vmatpush1.bf16.msra.mxu1 %v5672_v47  ;;  %v6469_v47 = vld [vmem:[#allocation7 + $0x550] ss:$8 sps:$4 sm:$0xff]  }
 0x320   :  { %2330 = vmatprep.subr.bf16.mxu1 %v5681_v48  ;;  %v6474_v48 = vld [vmem:[#allocation7 + $0x564] ss:$8 sps:$4 sm:$0xff]  }
 0x323   :  { %2331 = vmatpush1.bf16.msra.mxu1 %v5680_v52  ;;  %v6475_v52 = vld [vmem:[#allocation7 + $0x570] ss:$8 sps:$4 sm:$0xff]  }
 0x324   :  { %2332 = vmatprep.subr.bf16.mxu1 %v5689_v38  ;;  %v6480_v38 = vld [vmem:[#allocation7 + $0x584] ss:$8 sps:$4 sm:$0xff]  }
 0x327   :  { %2333 = vmatpush1.bf16.msra.mxu1 %v5688_v55  ;;  %v6481_v55 = vld [vmem:[#allocation7 + $0x590] ss:$8 sps:$4 sm:$0xff]  }
 0x328   :  { %2334 = vmatprep.subr.bf16.mxu1 %v5697_v56  ;;  %v6486_v56 = vld [vmem:[#allocation7 + $0x5a4] ss:$8 sps:$4 sm:$0xff]  }
 0x32b   :  { %2335 = vmatpush1.bf16.msra.mxu1 %v5696_v59  ;;  %v6487_v59 = vld [vmem:[#allocation7 + $0x5b0] ss:$8 sps:$4 sm:$0xff]  }
 0x32c   :  { %2336 = vmatprep.subr.bf16.mxu1 %v5705_v41  ;;  %v6492_v41 = vld [vmem:[#allocation7 + $0x5c4] ss:$8 sps:$4 sm:$0xff]  }
 0x32f   :  { %2337 = vmatpush1.bf16.msra.mxu1 %v5704_v0  ;;  %v6493_v0 = vld [vmem:[#allocation7 + $0x5d0] ss:$8 sps:$4 sm:$0xff]  }
 0x330   :  { %2338 = vmatprep.subr.bf16.mxu1 %v5713_v1  ;;  %v6498_v1 = vld [vmem:[#allocation7 + $0x5e4] ss:$8 sps:$4 sm:$0xff]  }
 0x333   :  { %2339 = vmatpush1.bf16.msra.mxu1 %v5712_v4  ;;  %v6496_v4 = vld [vmem:[#allocation7 + $0x5e0] ss:$8 sps:$4 sm:$0xff]  }
 0x334   :  { %2340 = vmatprep.subr.bf16.mxu1 %v5721_v5  ;;  %v6501_v5 = vld [vmem:[#allocation7 + $0x5f4] ss:$8 sps:$4 sm:$0xff]  }
 0x337   :  { %2341 = vmatpush1.bf16.msra.mxu1 %v5720_v8 }
 0x338   :  { %2342 = vmatprep.subr.bf16.mxu1 %v5729_v9 }
 0x33b   :  { %2343 = vmatpush1.bf16.msra.mxu1 %v5728_v13 }
 0x33c   :  { %2344 = vmatprep.subr.bf16.mxu1 %v5737_v16 }
 0x33f   :  { %2345 = vmatpush1.bf16.msra.mxu1 %v5736_v18  ;;  %v6504_v18 = vld [vmem:[#allocation7 + $0x604] ss:$8 sps:$4 sm:$0xff]  }
 0x342   :  { %2347 = vmatmul.mubr.bf16.vlgmr.msra.gmra.mrb[16].mxu1 %v7163_v15  ;;  %v6454_v15 = vld [vmem:[#allocation7 + $0x500] ss:$8 sps:$4 sm:$0xff]  }
 0x355   :  { %v2225_v24 = vpop.f32.mrb[4].mxu1 }
 0x356   :  { %v2226_v25 = vadd.f32 %v2225_v24, %v1514_v22  ;;  %v2227_v26 = vpop.f32.mrb[5].mxu1  ;;  %v6502_v22 = vld [vmem:[#allocation7 + $0x600] ss:$8 sps:$4 sm:$0xff]   ;;  %v6507_v24 = vld [vmem:[#allocation7 + $0x614] ss:$8 sps:$4 sm:$0xff]  }
 0x357   :  { %v2228_v27 = vadd.f32 %v2227_v26, %v1518_v23  ;;  %v2229_v28 = vpop.f32.mrb[6].mxu1  ;;  %v3324_v26 = vld [vmem:[#allocation8 + $0x420] sm:$0xff] }
 0x358   :  { %v2355_v30 = vmax.f32 %v2226_v25, 0.0  ;;  %v2230_v31 = vpop.f32.mrb[7].mxu1  ;;  %v3320_v25 = vld [vmem:[#allocation8 + $0x400] sm:$0xff]  ;;  %v6505_v28 = vld [vmem:[#allocation7 + $0x610] ss:$8 sps:$4 sm:$0xff]  }
 0x359   :  { %v2356_v32 = vmax.f32 %v2228_v27, 0.0  ;;  %v3328_v27 = vld [vmem:[#allocation8 + $0x440] sm:$0xff]  ;;  %v5867_v31 = vcombine.high %v3320_v25, %v3324_v26 }
 0x35a   :  { %v2494_v33 = vpack.c.bf16 %v2355_v30, %v2355_v30  ;;  %v5866_v30 = vcombine.low %v3320_v25, %v3324_v26  ;;  %v6534_v26 = vld [vmem:[#allocation7 + $0x6a4] ss:$8 sps:$4 sm:$0xff]  }
 0x35b   :  { %v2495_v14 = vpack.c.bf16 %v2356_v32, %v2356_v32  ;;  %v3332_v32 = vld [vmem:[#allocation8 + $0x460] sm:$0xff]  ;;  %4135 = vmatprep.subr.bf16.mxu1 %v5867_v31 }
 0x35c   :  { %4136 = vmatpush1.bf16.msra.mxu1 %v5866_v30  ;;  %v6532_v31 = vld [vmem:[#allocation7 + $0x6a0] ss:$8 sps:$4 sm:$0xff]  }
 0x35d   :  { %3185 = vmatprep.mubr.bf16.mxu0 %v2495_v14  ;;  %v6510_v14 = vld [vmem:[#allocation7 + $0x624] ss:$8 sps:$4 sm:$0xff]  }
 0x35e   :  { %3186 = vmatmul.mubr.bf16.vlgmr.msra.gmra.mrb[20].mxu0 %v2494_v33  ;;  %v3336_v33 = vld [vmem:[#allocation8 + $0x480] sm:$0xff] }
 0x35f   :  { %3195 = vmatpush1.bf16.msra.mxu0 %v6454_v15  ;;  %v5875_v15 = vcombine.high %v3328_v27, %v3332_v32 }
 0x360   :  { %3196 = vmatprep.subr.bf16.mxu0 %v6459_v60  ;;  %v3340_v60 = vld [vmem:[#allocation8 + $0x4a0] sm:$0xff] }
 0x361   :  { %4137 = vmatprep.subr.bf16.mxu1 %v5875_v15  ;;  %v3408_v15 = vld [vmem:[#allocation8 + $0x6c0] sm:$0xff] }
 0x363   :  { %3197 = vmatpush1.bf16.msra.mxu0 %v6457_v34  ;;  %v5874_v34 = vcombine.low %v3328_v27, %v3332_v32  ;;  %v3400_v27 = vld [vmem:[#allocation8 + $0x680] sm:$0xff] }
 0x364   :  { %3198 = vmatprep.subr.bf16.mxu0 %v6462_v35  ;;  %v6508_v35 = vld [vmem:[#allocation7 + $0x620] ss:$8 sps:$4 sm:$0xff]  }
 0x365   :  { %4138 = vmatpush1.bf16.msra.mxu1 %v5874_v34  ;;  %v6535_v34 = vld [vmem:[#allocation7 + $0x6b0] ss:$8 sps:$4 sm:$0xff]  }
 0x367   :  { %3199 = vmatpush1.bf16.msra.mxu0 %v6460_v36  ;;  %v5883_v36 = vcombine.high %v3336_v33, %v3340_v60 }
 0x368   :  { %3200 = vmatprep.subr.bf16.mxu0 %v6465_v39  ;;  %v6513_v39 = vld [vmem:[#allocation7 + $0x634] ss:$8 sps:$4 sm:$0xff]  }
 0x369   :  { %4139 = vmatprep.subr.bf16.mxu1 %v5883_v36  ;;  %v6540_v36 = vld [vmem:[#allocation7 + $0x6c4] ss:$8 sps:$4 sm:$0xff]  }
 0x36b   :  { %3201 = vmatpush1.bf16.msra.mxu0 %v6463_v40  ;;  %v3344_v40 = vld [vmem:[#allocation8 + $0x4c0] sm:$0xff] }
 0x36c   :  { %3202 = vmatprep.subr.bf16.mxu0 %v6468_v44  ;;  %v3348_v44 = vld [vmem:[#allocation8 + $0x4e0] sm:$0xff] }
 0x36f   :  { %3203 = vmatpush1.bf16.msra.mxu0 %v6466_v45  ;;  %v5882_v45 = vcombine.low %v3336_v33, %v3340_v60  ;;  %v3412_v33 = vld [vmem:[#allocation8 + $0x6e0] sm:$0xff] }
 0x370   :  { %3204 = vmatprep.subr.bf16.mxu0 %v6471_v46  ;;  %v6511_v46 = vld [vmem:[#allocation7 + $0x630] ss:$8 sps:$4 sm:$0xff]  }
 0x371   :  { %4140 = vmatpush1.bf16.msra.mxu1 %v5882_v45  ;;  %v6538_v45 = vld [vmem:[#allocation7 + $0x6c0] ss:$8 sps:$4 sm:$0xff]  }
 0x373   :  { %3205 = vmatpush1.bf16.msra.mxu0 %v6469_v47  ;;  %v5891_v47 = vcombine.high %v3344_v40, %v3348_v44 }
 0x374   :  { %3206 = vmatprep.subr.bf16.mxu0 %v6474_v48  ;;  %v6516_v48 = vld [vmem:[#allocation7 + $0x644] ss:$8 sps:$4 sm:$0xff]  }
 0x375   :  { %4141 = vmatprep.subr.bf16.mxu1 %v5891_v47  ;;  %v6543_v47 = vld [vmem:[#allocation7 + $0x6d4] ss:$8 sps:$4 sm:$0xff]  }
 0x377   :  { %3207 = vmatpush1.bf16.msra.mxu0 %v6472_v49  ;;  %v3352_v49 = vld [vmem:[#allocation8 + $0x500] sm:$0xff] }
 0x378   :  { %3208 = vmatprep.subr.bf16.mxu0 %v6477_v50  ;;  %v3356_v50 = vld [vmem:[#allocation8 + $0x520] sm:$0xff] }
 0x37b   :  { %3209 = vmatpush1.bf16.msra.mxu0 %v6475_v52  ;;  %v5890_v52 = vcombine.low %v3344_v40, %v3348_v44  ;;  %v3420_v40 = vld [vmem:[#allocation8 + $0x720] sm:$0xff]  ;;  %v5954_v44 = vcombine.low %v3408_v15, %v3412_v33 }
 0x37c   :  { %3210 = vmatprep.subr.bf16.mxu0 %v6480_v38  ;;  %v6514_v38 = vld [vmem:[#allocation7 + $0x640] ss:$8 sps:$4 sm:$0xff]  }
 0x37d   :  { %4142 = vmatpush1.bf16.msra.mxu1 %v5890_v52  ;;  %v6541_v52 = vld [vmem:[#allocation7 + $0x6d0] ss:$8 sps:$4 sm:$0xff]  }
 0x37f   :  { %3211 = vmatpush1.bf16.msra.mxu0 %v6478_v53  ;;  %v5899_v53 = vcombine.high %v3352_v49, %v3356_v50 }
 0x380   :  { %3212 = vmatprep.subr.bf16.mxu0 %v6483_v54  ;;  %v6519_v54 = vld [vmem:[#allocation7 + $0x654] ss:$8 sps:$4 sm:$0xff]  }
 0x381   :  { %4143 = vmatprep.subr.bf16.mxu1 %v5899_v53  ;;  %v6546_v53 = vld [vmem:[#allocation7 + $0x6e4] ss:$8 sps:$4 sm:$0xff]  }
 0x383   :  { %3213 = vmatpush1.bf16.msra.mxu0 %v6481_v55  ;;  %v3360_v55 = vld [vmem:[#allocation8 + $0x540] sm:$0xff] }
 0x384   :  { %3214 = vmatprep.subr.bf16.mxu0 %v6486_v56  ;;  %v3364_v56 = vld [vmem:[#allocation8 + $0x560] sm:$0xff] }
 0x387   :  { %3215 = vmatpush1.bf16.msra.mxu0 %v6484_v57  ;;  %v5898_v57 = vcombine.low %v3352_v49, %v3356_v50  ;;  %v3428_v49 = vld [vmem:[#allocation8 + $0x760] sm:$0xff] }
 0x388   :  { %3216 = vmatprep.subr.bf16.mxu0 %v6489_v58  ;;  %v6517_v58 = vld [vmem:[#allocation7 + $0x650] ss:$8 sps:$4 sm:$0xff]  }
 0x389   :  { %4144 = vmatpush1.bf16.msra.mxu1 %v5898_v57  ;;  %v6544_v57 = vld [vmem:[#allocation7 + $0x6e0] ss:$8 sps:$4 sm:$0xff]  }
 0x38b   :  { %3217 = vmatpush1.bf16.msra.mxu0 %v6487_v59  ;;  %v5907_v59 = vcombine.high %v3360_v55, %v3364_v56 }
 0x38c   :  { %3218 = vmatprep.subr.bf16.mxu0 %v6492_v41  ;;  %v6522_v41 = vld [vmem:[#allocation7 + $0x664] ss:$8 sps:$4 sm:$0xff]  }
 0x38d   :  { %4145 = vmatprep.subr.bf16.mxu1 %v5907_v59 }
 0x38f   :  { %3219 = vmatpush1.bf16.msra.mxu0 %v6490_v61  ;;  %v3368_v61 = vld [vmem:[#allocation8 + $0x580] sm:$0xff] }
 0x390   :  { %3220 = vmatprep.subr.bf16.mxu0 %v6495_v63  ;;  %v3372_v63 = vld [vmem:[#allocation8 + $0x5a0] sm:$0xff] }
 0x393   :  { %3221 = vmatpush1.bf16.msra.mxu0 %v6493_v0  ;;  %v5906_v0 = vcombine.low %v3360_v55, %v3364_v56  ;;  %v1534_v56 = vrot.slane %v7173_v21, %v7134_v2 }
 0x394   :  { %3222 = vmatprep.subr.bf16.mxu0 %v6498_v1  ;;  %v6520_v1 = vld [vmem:[#allocation7 + $0x660] ss:$8 sps:$4 sm:$0xff]  }
 0x395   :  { %v2266_v6 = vpop.f32.mrb[8].mxu1  ;;  %4146 = vmatpush1.bf16.msra.mxu1 %v5906_v0 }
 0x396   :  { %v2267_v7 = vadd.f32 %v2266_v6, %v1522_v3  ;;  %v2268_v8 = vpop.f32.mrb[9].mxu1  ;;  %v5915_v3 = vcombine.high %v3368_v61, %v3372_v63  ;;  %v5914_v6 = vcombine.low %v3368_v61, %v3372_v63 }
 0x397   :  { %v2269_v9 = vadd.f32 %v2268_v8, %v1526_v29  ;;  %v2270_v11 = vpop.f32.mrb[10].mxu1  ;;  %3223 = vmatpush1.bf16.msra.mxu0 %v6496_v4  ;;  %v6525_v29 = vld [vmem:[#allocation7 + $0x674] ss:$8 sps:$4 sm:$0xff]   ;;  %v3376_v4 = vld [vmem:[#allocation8 + $0x5c0] sm:$0xff] }
 0x398   :  { %v2357_v13 = vmax.f32 %v2267_v7, 0.0  ;;  %v2271_v16 = vpop.f32.mrb[11].mxu1  ;;  %3224 = vmatprep.subr.bf16.mxu0 %v6501_v5  ;;  %v3380_v5 = vld [vmem:[#allocation8 + $0x5e0] sm:$0xff]  ;;  %v6523_v7 = vld [vmem:[#allocation7 + $0x670] ss:$8 sps:$4 sm:$0xff]   ;;  %4147 = vmatprep.subr.bf16.mxu1 %v5915_v3 }
 0x399   :  { %v2358_v19 = vmax.f32 %v2269_v9, 0.0  ;;  %v5923_v8 = vcombine.high %v3376_v4, %v3380_v5  ;;  %v6528_v9 = vld [vmem:[#allocation7 + $0x684] ss:$8 sps:$4 sm:$0xff]   ;;  %4148 = vmatpush1.bf16.msra.mxu1 %v5914_v6  ;;  %v6526_v16 = vld [vmem:[#allocation7 + $0x680] ss:$8 sps:$4 sm:$0xff]  }
 0x39a   :  { %v2496_v23 = vpack.c.bf16 %v2357_v13, %v2357_v13  ;;  %v3384_v11 = vld [vmem:[#allocation8 + $0x600] sm:$0xff]  ;;  %v5922_v13 = vcombine.low %v3376_v4, %v3380_v5 }
 0x39b   :  { %v2497_v20 = vpack.c.bf16 %v2358_v19, %v2358_v19  ;;  %3225 = vmatpush1.bf16.msra.mxu0 %v6499_v12  ;;  %v3388_v12 = vld [vmem:[#allocation8 + $0x620] sm:$0xff]  ;;  %4149 = vmatprep.subr.bf16.mxu1 %v5923_v8  ;;  %v6531_v19 = vld [vmem:[#allocation7 + $0x694] ss:$8 sps:$4 sm:$0xff]  }
 0x39c   :  { %3235 = vmatprep.subr.bf16.mxu0 %v6504_v18  ;;  %v5931_v18 = vcombine.high %v3384_v11, %v3388_v12  ;;  %v6552_v4 = vld [vmem:[#allocation7 + $0x704] ss:$8 sps:$4 sm:$0xff]  }
 0x39d   :  { %3226 = vmatprep.mubr.bf16.mxu0 %v2497_v20  ;;  %v3392_v20 = vld [vmem:[#allocation8 + $0x640] sm:$0xff]  ;;  %4150 = vmatpush1.bf16.msra.mxu1 %v5922_v13 }
 0x39e   :  { %3227 = vmatmul.mubr.bf16.vlgmr.msra.gmra.mrb[20].mxu0 %v2496_v23  ;;  %v5930_v23 = vcombine.low %v3384_v11, %v3388_v12  ;;  %4151 = vmatprep.subr.bf16.mxu1 %v5931_v18  ;;  %v6553_v11 = vld [vmem:[#allocation7 + $0x710] ss:$8 sps:$4 sm:$0xff]   ;;  %v6558_v12 = vld [vmem:[#allocation7 + $0x724] ss:$8 sps:$4 sm:$0xff]   ;;  %v6556_v13 = vld [vmem:[#allocation7 + $0x720] ss:$8 sps:$4 sm:$0xff]  }
 0x39f   :  { %3236 = vmatpush1.bf16.msra.mxu0 %v6502_v22  ;;  %v3396_v22 = vld [vmem:[#allocation8 + $0x660] sm:$0xff]  ;;  %v6559_v18 = vld [vmem:[#allocation7 + $0x730] ss:$8 sps:$4 sm:$0xff]  }
 0x3a0   :  { %3237 = vmatprep.subr.bf16.mxu0 %v6507_v24  ;;  %v6529_v24 = vld [vmem:[#allocation7 + $0x690] ss:$8 sps:$4 sm:$0xff]   ;;  %v5939_v25 = vcombine.high %v3392_v20, %v3396_v22  ;;  %v5938_v30 = vcombine.low %v3392_v20, %v3396_v22  ;;  %v6562_v20 = vld [vmem:[#allocation7 + $0x740] ss:$8 sps:$4 sm:$0xff]   ;;  %v6567_v22 = vld [vmem:[#allocation7 + $0x754] ss:$8 sps:$4 sm:$0xff]  }
 0x3a1   :  { %4152 = vmatpush1.bf16.msra.mxu1 %v5930_v23  ;;  %v6565_v23 = vld [vmem:[#allocation7 + $0x750] ss:$8 sps:$4 sm:$0xff]  }
 0x3a2   :  { %4153 = vmatprep.subr.bf16.mxu1 %v5939_v25  ;;  %v6568_v25 = vld [vmem:[#allocation7 + $0x760] ss:$8 sps:$4 sm:$0xff]  }
 0x3a3   :  { %3238 = vmatpush1.bf16.msra.mxu0 %v6505_v28  ;;  %v3404_v28 = vld [vmem:[#allocation8 + $0x6a0] sm:$0xff] }
 0x3a4   :  { %3239 = vmatprep.subr.bf16.mxu0 %v6510_v14  ;;  %v5947_v32 = vcombine.high %v3400_v27, %v3404_v28  ;;  %v6537_v14 = vld [vmem:[#allocation7 + $0x6b4] ss:$8 sps:$4 sm:$0xff]   ;;  %v5946_v60 = vcombine.low %v3400_v27, %v3404_v28  ;;  %v6571_v27 = vld [vmem:[#allocation7 + $0x770] ss:$8 sps:$4 sm:$0xff]   ;;  %v6576_v28 = vld [vmem:[#allocation7 + $0x784] ss:$8 sps:$4 sm:$0xff]  }
 0x3a5   :  { %4154 = vmatpush1.bf16.msra.mxu1 %v5938_v30  ;;  %v6574_v30 = vld [vmem:[#allocation7 + $0x780] ss:$8 sps:$4 sm:$0xff]  }
 0x3a6   :  { %4155 = vmatprep.subr.bf16.mxu1 %v5947_v32  ;;  %v6577_v32 = vld [vmem:[#allocation7 + $0x790] ss:$8 sps:$4 sm:$0xff]  }
 0x3a7   :  { %3240 = vmatpush1.bf16.msra.mxu0 %v6508_v35  ;;  %v5955_v35 = vcombine.high %v3408_v15, %v3412_v33  ;;  %v6580_v15 = vld [vmem:[#allocation7 + $0x7a0] ss:$8 sps:$4 sm:$0xff]   ;;  %v6585_v33 = vld [vmem:[#allocation7 + $0x7b4] ss:$8 sps:$4 sm:$0xff]  }
 0x3a8   :  { %3241 = vmatprep.subr.bf16.mxu0 %v6513_v39  ;;  %v3416_v39 = vld [vmem:[#allocation8 + $0x700] sm:$0xff] }
 0x3a9   :  { %4156 = vmatpush1.bf16.msra.mxu1 %v5946_v60  ;;  %v5962_v50 = vcombine.low %v3416_v39, %v3420_v40  ;;  %v6583_v60 = vld [vmem:[#allocation7 + $0x7b0] ss:$8 sps:$4 sm:$0xff]  }
 0x3aa   :  { %4157 = vmatprep.subr.bf16.mxu1 %v5955_v35  ;;  %v6586_v35 = vld [vmem:[#allocation7 + $0x7c0] ss:$8 sps:$4 sm:$0xff]  }
 0x3ab   :  { %3242 = vmatpush1.bf16.msra.mxu0 %v6511_v46  ;;  %v5963_v46 = vcombine.high %v3416_v39, %v3420_v40  ;;  %v6589_v39 = vld [vmem:[#allocation7 + $0x7d0] ss:$8 sps:$4 sm:$0xff]   ;;  %v6594_v40 = vld [vmem:[#allocation7 + $0x7e4] ss:$8 sps:$4 sm:$0xff]  }
 0x3ac   :  { %3243 = vmatprep.subr.bf16.mxu0 %v6516_v48  ;;  %v3424_v48 = vld [vmem:[#allocation8 + $0x740] sm:$0xff] }
 0x3ad   :  { %4158 = vmatpush1.bf16.msra.mxu1 %v5954_v44  ;;  %v5970_v55 = vcombine.low %v3424_v48, %v3428_v49  ;;  %v1538_v44 = vrot.slane %v7173_v21, %v7154_v37 }
 0x3ae   :  { %4159 = vmatprep.subr.bf16.mxu1 %v5963_v46  ;;  %v6592_v46 = vld [vmem:[#allocation7 + $0x7e0] ss:$8 sps:$4 sm:$0xff]  }
 0x3af   :  { %3244 = vmatpush1.bf16.msra.mxu0 %v6514_v38  ;;  %v5971_v38 = vcombine.high %v3424_v48, %v3428_v49 }
 0x3b0   :  { %3245 = vmatprep.subr.bf16.mxu0 %v6519_v54  ;;  %v1530_v54 = vrot.slane %v7173_v21, %v7131_v62 }
 0x3b1   :  { %4160 = vmatpush1.bf16.msra.mxu1 %v5962_v50 }
 0x3b2   :  { %4161 = vmatprep.subr.bf16.mxu1 %v5971_v38 }
 0x3b3   :  { %3246 = vmatpush1.bf16.msra.mxu0 %v6517_v58  ;;  %v6549_v58 = vld [vmem:[#allocation7 + $0x6f4] ss:$8 sps:$4 sm:$0xff]  }
 0x3b4   :  { %3247 = vmatprep.subr.bf16.mxu0 %v6522_v41 }
 0x3b5   :  { %4162 = vmatpush1.bf16.msra.mxu1 %v5970_v55 }
 0x3b7   :  { %3248 = vmatpush1.bf16.msra.mxu0 %v6520_v1  ;;  %v6547_v1 = vld [vmem:[#allocation7 + $0x6f0] ss:$8 sps:$4 sm:$0xff]  }
 0x3b8   :  { %3249 = vmatprep.subr.bf16.mxu0 %v6525_v29 }
 0x3bb   :  { %3250 = vmatpush1.bf16.msra.mxu0 %v6523_v7  ;;  %v6550_v7 = vld [vmem:[#allocation7 + $0x700] ss:$8 sps:$4 sm:$0xff]  }
 0x3bc   :  { %3251 = vmatprep.subr.bf16.mxu0 %v6528_v9  ;;  %v6555_v9 = vld [vmem:[#allocation7 + $0x714] ss:$8 sps:$4 sm:$0xff]  }
 0x3bf   :  { %3252 = vmatpush1.bf16.msra.mxu0 %v6526_v16  ;;  %v6561_v16 = vld [vmem:[#allocation7 + $0x734] ss:$8 sps:$4 sm:$0xff]  }
 0x3c0   :  { %3253 = vmatprep.subr.bf16.mxu0 %v6531_v19  ;;  %v6564_v19 = vld [vmem:[#allocation7 + $0x744] ss:$8 sps:$4 sm:$0xff]  }
 0x3c3   :  { %3254 = vmatpush1.bf16.msra.mxu0 %v6529_v24  ;;  %v6570_v24 = vld [vmem:[#allocation7 + $0x764] ss:$8 sps:$4 sm:$0xff]  }
 0x3c4   :  { %3255 = vmatprep.subr.bf16.mxu0 %v6534_v26  ;;  %v6573_v26 = vld [vmem:[#allocation7 + $0x774] ss:$8 sps:$4 sm:$0xff]  }
 0x3c7   :  { %3256 = vmatpush1.bf16.msra.mxu0 %v6532_v31  ;;  %v6579_v31 = vld [vmem:[#allocation7 + $0x794] ss:$8 sps:$4 sm:$0xff]  }
 0x3c8   :  { %3257 = vmatprep.subr.bf16.mxu0 %v6537_v14  ;;  %v6582_v14 = vld [vmem:[#allocation7 + $0x7a4] ss:$8 sps:$4 sm:$0xff]  }
 0x3cb   :  { %3258 = vmatpush1.bf16.msra.mxu0 %v6535_v34  ;;  %v6588_v34 = vld [vmem:[#allocation7 + $0x7c4] ss:$8 sps:$4 sm:$0xff]  }
 0x3cc   :  { %3259 = vmatprep.subr.bf16.mxu0 %v6540_v36  ;;  %v6591_v36 = vld [vmem:[#allocation7 + $0x7d4] ss:$8 sps:$4 sm:$0xff]  }
 0x3cf   :  { %3260 = vmatpush1.bf16.msra.mxu0 %v6538_v45  ;;  %v1542_v45 = vrot.slane %v7173_v21, %v7141_v17  ;;  %v3432_v21 = vld [vmem:[#allocation8 + $0x780] sm:$0xff] }
 0x3d0   :  { %3261 = vmatprep.subr.bf16.mxu0 %v6543_v47  ;;  %v6597_v47 = vld [vmem:[#allocation7 + $0x7f4] ss:$8 sps:$4 sm:$0xff]  }
 0x3d3   :  { %3262 = vmatpush1.bf16.msra.mxu0 %v6541_v52 }
 0x3d4   :  { %3263 = vmatprep.subr.bf16.mxu0 %v6546_v53  ;;  %v6595_v53 = vld [vmem:[#allocation7 + $0x7f0] ss:$8 sps:$4 sm:$0xff]  }
 0x3d5   :  { %v2307_v59 = vpop.f32.mrb[12].mxu1 }
 0x3d6   :  { %v2308_v41 = vadd.f32 %v2307_v59, %v1530_v54  ;;  %v2309_v61 = vpop.f32.mrb[13].mxu1  ;;  %v3436_v59 = vld [vmem:[#allocation8 + $0x7a0] sm:$0xff] }
 0x3d7   :  { %v2310_v63 = vadd.f32 %v2309_v61, %v1534_v56  ;;  %v2311_v0 = vpop.f32.mrb[14].mxu1  ;;  %3264 = vmatpush1.bf16.msra.mxu0 %v6544_v57  ;;  %v5978_v61 = vcombine.low %v3432_v21, %v3436_v59 }
 0x3d8   :  { %v2359_v3 = vmax.f32 %v2308_v41, 0.0  ;;  %v2312_v29 = vpop.f32.mrb[15].mxu1  ;;  %3265 = vmatprep.subr.bf16.mxu0 %v6549_v58  ;;  %v5979_v41 = vcombine.high %v3432_v21, %v3436_v59  ;;  %v3444_v0 = vld [vmem:[#allocation8 + $0x7e0] sm:$0xff] }
 0x3d9   :  { %v2360_v5 = vmax.f32 %v2310_v63, 0.0  ;;  %v3440_v63 = vld [vmem:[#allocation8 + $0x7c0] sm:$0xff]  ;;  %v3321_v29 = vld [vmem:[#allocation8 + $0x408] sm:$0xff] }
 0x3da   :  { %v2498_v8 = vpack.c.bf16 %v2359_v3, %v2359_v3  ;;  %4163 = vmatprep.subr.bf16.mxu1 %v5979_v41  ;;  %v5986_v3 = vcombine.low %v3440_v63, %v3444_v0  ;;  %v6598_v21 = vld [vmem:[#allocation7 + $0x800] ss:$8 sps:$4 sm:$0xff]   ;;  %v6600_v59 = vld [vmem:[#allocation7 + $0x804] ss:$8 sps:$4 sm:$0xff]  }
 0x3db   :  { %v2499_v6 = vpack.c.bf16 %v2360_v5, %v2360_v5  ;;  %3266 = vmatpush1.bf16.msra.mxu0 %v6547_v1  ;;  %4164 = vmatpush1.bf16.msra.mxu1 %v5978_v61  ;;  %v5987_v1 = vcombine.high %v3440_v63, %v3444_v0  ;;  %v3393_v41 = vld [vmem:[#allocation8 + $0x648] sm:$0xff] }
 0x3dc   :  { %3276 = vmatprep.subr.bf16.mxu0 %v6552_v4  ;;  %v3325_v4 = vld [vmem:[#allocation8 + $0x428] sm:$0xff] }
 0x3dd   :  { %3267 = vmatprep.mubr.bf16.mxu0 %v2499_v6  ;;  %4165 = vmatprep.subr.bf16.mxu1 %v5987_v1  ;;  %v5869_v5 = vcombine.high %v3321_v29, %v3325_v4  ;;  %v5868_v6 = vcombine.low %v3321_v29, %v3325_v4  ;;  %v3397_v61 = vld [vmem:[#allocation8 + $0x668] sm:$0xff]  ;;  %v6601_v1 = vld [vmem:[#allocation7 + $0x810] ss:$8 sps:$4 sm:$0xff]  }
 0x3de   :  { %3268 = vmatmul.mubr.bf16.vlgmr.msra.gmra.mrb[20].mxu0 %v2498_v8  ;;  %v5941_v0 = vcombine.high %v3393_v41, %v3397_v61  ;;  %v3401_v29 = vld [vmem:[#allocation8 + $0x688] sm:$0xff] }
 0x3df   :  { %3277 = vmatpush1.bf16.msra.mxu0 %v6550_v7  ;;  %4166 = vmatpush1.bf16.msra.mxu1 %v5986_v3  ;;  %v2493_v7 = vld [vmem:[#allocation11 + $0x3] ss:$8 sm:$0x3]  ;;  %v6603_v3 = vld [vmem:[#allocation7 + $0x814] ss:$8 sps:$4 sm:$0xff]  }
 0x3e0   :  { %3278 = vmatprep.subr.bf16.mxu0 %v6555_v9  ;;  %4176 = vmatprep.subr.bf16.mxu1 %v5869_v5  ;;  %v2506_v8 = vrot.slane %v2493_v7, %v7114_v42  ;;  %v2510_v9 = vrot.slane %v2493_v7, %v7117_v43  ;;  %v3405_v4 = vld [vmem:[#allocation8 + $0x6a8] sm:$0xff]  ;;  %v5940_v5 = vcombine.low %v3393_v41, %v3397_v61  ;;  %v3342_v41 = vld [vmem:[#allocation8 + $0x4b0] sm:$0xff] }
 0x3e1   :  { %v6604_v7 = vld [vmem:[#allocation7 + $0x820] ss:$8 sps:$4 sm:$0xff]   ;;  %v6625_v61 = vld [vmem:[#allocation7 + $0x890] ss:$8 sps:$4 sm:$0xff]  }
 0x3e3   :  { %3279 = vmatpush1.bf16.msra.mxu0 %v6553_v11 }
 0x3e4   :  { %3280 = vmatprep.subr.bf16.mxu0 %v6558_v12 }
 0x3e7   :  { %3281 = vmatpush1.bf16.msra.mxu0 %v6556_v13 }
 0x3e8   :  { %3282 = vmatprep.subr.bf16.mxu0 %v6561_v16 }
 0x3eb   :  { %3283 = vmatpush1.bf16.msra.mxu0 %v6559_v18 }
 0x3ec   :  { %3284 = vmatprep.subr.bf16.mxu0 %v6564_v19 }
 0x3ef   :  { %3285 = vmatpush1.bf16.msra.mxu0 %v6562_v20 }
 0x3f0   :  { %3286 = vmatprep.subr.bf16.mxu0 %v6567_v22 }
 0x3f3   :  { %3287 = vmatpush1.bf16.msra.mxu0 %v6565_v23  ;;  %v3329_v23 = vld [vmem:[#allocation8 + $0x448] sm:$0xff] }
 0x3f4   :  { %3288 = vmatprep.subr.bf16.mxu0 %v6570_v24  ;;  %v3333_v24 = vld [vmem:[#allocation8 + $0x468] sm:$0xff] }
 0x3f7   :  { %3289 = vmatpush1.bf16.msra.mxu0 %v6568_v25 }
 0x3f8   :  { %3290 = vmatprep.subr.bf16.mxu0 %v6573_v26 }
 0x3fb   :  { %3291 = vmatpush1.bf16.msra.mxu0 %v6571_v27  ;;  %v5877_v27 = vcombine.high %v3329_v23, %v3333_v24 }
 0x3fc   :  { %3292 = vmatprep.subr.bf16.mxu0 %v6576_v28  ;;  %v3337_v28 = vld [vmem:[#allocation8 + $0x488] sm:$0xff] }
 0x3ff   :  { %3293 = vmatpush1.bf16.msra.mxu0 %v6574_v30  ;;  %v3341_v30 = vld [vmem:[#allocation8 + $0x4a8] sm:$0xff] }
 0x400   :  { %3294 = vmatprep.subr.bf16.mxu0 %v6579_v31  ;;  %v5876_v31 = vcombine.low %v3329_v23, %v3333_v24  ;;  %v6610_v24 = vld [vmem:[#allocation7 + $0x840] ss:$8 sps:$4 sm:$0xff]  }
 0x403   :  { %3295 = vmatpush1.bf16.msra.mxu0 %v6577_v32  ;;  %v5885_v32 = vcombine.high %v3337_v28, %v3341_v30 }
 0x404   :  { %3296 = vmatprep.subr.bf16.mxu0 %v6582_v14  ;;  %v3345_v14 = vld [vmem:[#allocation8 + $0x4c8] sm:$0xff] }
 0x407   :  { %3297 = vmatpush1.bf16.msra.mxu0 %v6580_v15  ;;  %v3349_v15 = vld [vmem:[#allocation8 + $0x4e8] sm:$0xff] }
 0x408   :  { %3298 = vmatprep.subr.bf16.mxu0 %v6585_v33  ;;  %v5884_v33 = vcombine.low %v3337_v28, %v3341_v30  ;;  %v3425_v28 = vld [vmem:[#allocation8 + $0x748] sm:$0xff] }
 0x409   :  { %v3429_v30 = vld [vmem:[#allocation8 + $0x768] sm:$0xff] }
 0x40b   :  { %3299 = vmatpush1.bf16.msra.mxu0 %v6583_v60  ;;  %v5893_v60 = vcombine.high %v3345_v14, %v3349_v15 }
 0x40c   :  { %3300 = vmatprep.subr.bf16.mxu0 %v6588_v34  ;;  %v3353_v34 = vld [vmem:[#allocation8 + $0x508] sm:$0xff] }
 0x40f   :  { %3301 = vmatpush1.bf16.msra.mxu0 %v6586_v35  ;;  %v3357_v35 = vld [vmem:[#allocation8 + $0x528] sm:$0xff] }
 0x410   :  { %3302 = vmatprep.subr.bf16.mxu0 %v6591_v36  ;;  %v5892_v36 = vcombine.low %v3345_v14, %v3349_v15  ;;  %v6613_v14 = vld [vmem:[#allocation7 + $0x850] ss:$8 sps:$4 sm:$0xff]   ;;  %v6615_v15 = vld [vmem:[#allocation7 + $0x854] ss:$8 sps:$4 sm:$0xff]  }
 0x413   :  { %3303 = vmatpush1.bf16.msra.mxu0 %v6589_v39  ;;  %v5901_v39 = vcombine.high %v3353_v34, %v3357_v35 }
 0x414   :  { %3304 = vmatprep.subr.bf16.mxu0 %v6594_v40  ;;  %v3361_v40 = vld [vmem:[#allocation8 + $0x548] sm:$0xff] }
 0x415   :  { %v2348_v48 = vpop.f32.mrb[16].mxu1 }
 0x416   :  { %v2349_v49 = vadd.f32 %v2348_v48, %v1538_v44  ;;  %v2350_v50 = vpop.f32.mrb[17].mxu1  ;;  %v3365_v44 = vld [vmem:[#allocation8 + $0x568] sm:$0xff] }
 0x417   :  { %v2351_v52 = vadd.f32 %v2350_v50, %v1542_v45  ;;  %v2352_v38 = vpop.f32.mrb[18].mxu1  ;;  %3305 = vmatpush1.bf16.msra.mxu0 %v6592_v46  ;;  %v5900_v45 = vcombine.low %v3353_v34, %v3357_v35  ;;  %v5909_v46 = vcombine.high %v3361_v40, %v3365_v44  ;;  %v3373_v48 = vld [vmem:[#allocation8 + $0x5a8] sm:$0xff]  ;;  %v5972_v34 = vcombine.low %v3425_v28, %v3429_v30 }
 0x418   :  { %v2361_v54 = vmax.f32 %v2349_v49, 0.0  ;;  %v2353_v55 = vpop.f32.mrb[19].mxu1  ;;  %3306 = vmatprep.subr.bf16.mxu0 %v6597_v47  ;;  %v3369_v47 = vld [vmem:[#allocation8 + $0x588] sm:$0xff]  ;;  %v5908_v49 = vcombine.low %v3361_v40, %v3365_v44 }
 0x419   :  { %v2362_v56 = vmax.f32 %v2351_v52, 0.0  ;;  %v5917_v50 = vcombine.high %v3369_v47, %v3373_v48  ;;  %v3377_v52 = vld [vmem:[#allocation8 + $0x5c8] sm:$0xff] }
 0x41a   :  { %v2500_v58 = vpack.c.bf16 %v2361_v54, %v2361_v54  ;;  %v3381_v38 = vld [vmem:[#allocation8 + $0x5e8] sm:$0xff] }
 0x41b   :  { %v2501_v57 = vpack.c.bf16 %v2362_v56, %v2362_v56  ;;  %3307 = vmatpush1.bf16.msra.mxu0 %v6595_v53  ;;  %v5916_v53 = vcombine.low %v3369_v47, %v3373_v48  ;;  %v5925_v54 = vcombine.high %v3377_v52, %v3381_v38  ;;  %v3385_v55 = vld [vmem:[#allocation8 + $0x608] sm:$0xff]  ;;  %v6619_v47 = vld [vmem:[#allocation7 + $0x870] ss:$8 sps:$4 sm:$0xff]   ;;  %v6621_v48 = vld [vmem:[#allocation7 + $0x874] ss:$8 sps:$4 sm:$0xff]  }
 0x41c   :  { %v3389_v56 = vld [vmem:[#allocation8 + $0x628] sm:$0xff]  ;;  %5097 = vmatprep.subr.bf16.mxu0 %v6600_v59  ;;  %v3338_v59 = vld [vmem:[#allocation8 + $0x490] sm:$0xff] }
 0x41d   :  { %3308 = vmatprep.mubr.bf16.mxu0 %v2501_v57  ;;  %v5924_v57 = vcombine.low %v3377_v52, %v3381_v38  ;;  %v5932_v63 = vcombine.low %v3385_v55, %v3389_v56  ;;  %v3441_v40 = vld [vmem:[#allocation8 + $0x7c8] sm:$0xff] }
 0x41e   :  { %3309 = vmatmul.mubr.bf16.vlgmr.msra.gmra.mrb[20].mxu0 %v2500_v58  ;;  %v5933_v58 = vcombine.high %v3385_v55, %v3389_v56  ;;  %v3445_v44 = vld [vmem:[#allocation8 + $0x7e8] sm:$0xff]  ;;  %v3330_v55 = vld [vmem:[#allocation8 + $0x450] sm:$0xff] }
 0x41f   :  { %5098 = vmatpush1.bf16.msra.mxu0 %v6598_v21  ;;  %v5988_v52 = vcombine.low %v3441_v40, %v3445_v44  ;;  %v3334_v56 = vld [vmem:[#allocation8 + $0x470] sm:$0xff] }
 0x420   :  { %5099 = vmatprep.subr.bf16.mxu0 %v6603_v3  ;;  %v6627_v21 = vld [vmem:[#allocation7 + $0x894] ss:$8 sps:$4 sm:$0xff]   ;;  %v6628_v3 = vld [vmem:[#allocation7 + $0x8a0] ss:$8 sps:$4 sm:$0xff]  }
 0x423   :  { %5100 = vmatpush1.bf16.msra.mxu0 %v6601_v1  ;;  %v5887_v1 = vcombine.high %v3338_v59, %v3342_v41 }
 0x4f1   :  { %v3310_v11 = vpop.f32.mrb[20].mxu0 }
 0x4f2   :  { %v6164_v12 = vadd.f32 %v3310_v11, %v2506_v8  ;;  %v3312_v13 = vpop.f32.mrb[21].mxu0  ;;  %v6606_v8 = vld [vmem:[#allocation7 + $0x824] ss:$8 sps:$4 sm:$0xff]  }
 0x4f3   :  { %v6165_v16 = vadd.f32 %v3312_v13, %v2510_v9  ;;  %v3314_v18 = vpop.f32.mrb[22].mxu0  ;;  %v3409_v9 = vld [vmem:[#allocation8 + $0x6c8] sm:$0xff]  ;;  %5101 = vmatprep.subr.bf16.mxu0 %v6606_v8  ;;  %v6631_v8 = vld [vmem:[#allocation7 + $0x8b0] ss:$8 sps:$4 sm:$0xff]  }
 0x4f4   :  { %v3317_v19 = vmax.f32 %v6164_v12, 0.0  ;;  %v3315_v20 = vpop.f32.mrb[23].mxu0  ;;  %v3413_v11 = vld [vmem:[#allocation8 + $0x6e8] sm:$0xff]  ;;  %v5948_v12 = vcombine.low %v3401_v29, %v3405_v4  ;;  %5102 = vmatpush1.bf16.msra.mxu0 %v6604_v7  ;;  %v6609_v18 = vld [vmem:[#allocation7 + $0x834] ss:$8 sps:$4 sm:$0xff]  }
 0x4f5   :  { %v3318_v22 = vmax.f32 %v6165_v16, 0.0  ;;  %v5957_v13 = vcombine.high %v3409_v9, %v3413_v11  ;;  %v6607_v16 = vld [vmem:[#allocation7 + $0x830] ss:$8 sps:$4 sm:$0xff]   ;;  %v3421_v20 = vld [vmem:[#allocation8 + $0x728] sm:$0xff]  ;;  %5103 = vmatprep.subr.bf16.mxu0 %v6609_v18 }
 0x4f6   :  { %v7195_v26 = vpack.c.bf16 %v3317_v19, %v3317_v19  ;;  %v3417_v19 = vld [vmem:[#allocation8 + $0x708] sm:$0xff] }
 0x4f7   :  { %v7193_v25 = vpack.c.bf16 %v3318_v22, %v3318_v22  ;;  %v5956_v22 = vcombine.low %v3409_v9, %v3413_v11  ;;  %v5965_v23 = vcombine.high %v3417_v19, %v3421_v20  ;;  %v3354_v9 = vld [vmem:[#allocation8 + $0x510] sm:$0xff]  ;;  %v6634_v18 = vld [vmem:[#allocation7 + $0x8c0] ss:$8 sps:$4 sm:$0xff]  }
 0x4f8   :  { %5104 = vmatpush1.bf16.msra.mxu0 %v6607_v16  ;;  %v3358_v11 = vld [vmem:[#allocation8 + $0x530] sm:$0xff] }
 0x4f9   :  { %4167 = vmatprep.mubr.bf16.mxu1 %v7193_v25  ;;  %v5903_v16 = vcombine.high %v3354_v9, %v3358_v11 }
 0x4fa   :  { %4168 = vmatmul.mubr.bf16.vlgmr.msra.gmra.mrb[20].mxu1 %v7195_v26 }
 0x4fb   :  { %4177 = vmatpush1.bf16.msra.mxu1 %v5868_v6  ;;  %4208 = vmatprep.mubr.bf16.mxu1 %v7193_v25  ;;  %v5949_v6 = vcombine.high %v3401_v29, %v3405_v4  ;;  %v3346_v29 = vld [vmem:[#allocation8 + $0x4d0] sm:$0xff] }
 0x4fc   :  { %4178 = vmatprep.subr.bf16.mxu1 %v5877_v27  ;;  %v6612_v27 = vld [vmem:[#allocation7 + $0x844] ss:$8 sps:$4 sm:$0xff]   ;;  %v3350_v4 = vld [vmem:[#allocation8 + $0x4f0] sm:$0xff] }
 0x4fd   :  { %5105 = vmatprep.subr.bf16.mxu0 %v6612_v27  ;;  %v5895_v7 = vcombine.high %v3346_v29, %v3350_v4  ;;  %v6637_v27 = vld [vmem:[#allocation7 + $0x8d0] ss:$8 sps:$4 sm:$0xff]  }
 0x4fe   :  { %5106 = vmatpush1.bf16.msra.mxu0 %v6610_v24 }
 0x4ff   :  { %4179 = vmatpush1.bf16.msra.mxu1 %v5876_v31  ;;  %v5964_v31 = vcombine.low %v3417_v19, %v3421_v20  ;;  %5107 = vmatprep.subr.bf16.mxu0 %v6615_v15  ;;  %v3362_v19 = vld [vmem:[#allocation8 + $0x550] sm:$0xff] }
 0x500   :  { %4180 = vmatprep.subr.bf16.mxu1 %v5885_v32  ;;  %v5973_v32 = vcombine.high %v3425_v28, %v3429_v30  ;;  %v3366_v20 = vld [vmem:[#allocation8 + $0x570] sm:$0xff] }
 0x501   :  { %v5911_v24 = vcombine.high %v3362_v19, %v3366_v20  ;;  %v3370_v28 = vld [vmem:[#allocation8 + $0x590] sm:$0xff] }
 0x502   :  { %5108 = vmatpush1.bf16.msra.mxu0 %v6613_v14  ;;  %v3374_v30 = vld [vmem:[#allocation8 + $0x5b0] sm:$0xff]  ;;  %v6642_v14 = vld [vmem:[#allocation7 + $0x8e4] ss:$8 sps:$4 sm:$0xff]  }
 0x503   :  { %4181 = vmatpush1.bf16.msra.mxu1 %v5884_v33  ;;  %v3433_v33 = vld [vmem:[#allocation8 + $0x788] sm:$0xff]  ;;  %v3378_v15 = vld [vmem:[#allocation8 + $0x5d0] sm:$0xff] }
 0x504   :  { %4182 = vmatprep.subr.bf16.mxu1 %v5893_v60  ;;  %v3437_v60 = vld [vmem:[#allocation8 + $0x7a8] sm:$0xff] }
 0x505   :  { %v5981_v35 = vcombine.high %v3433_v33, %v3437_v60 }
 0x507   :  { %4183 = vmatpush1.bf16.msra.mxu1 %v5892_v36  ;;  %v6616_v36 = vld [vmem:[#allocation7 + $0x860] ss:$8 sps:$4 sm:$0xff]  }
 0x508   :  { %4184 = vmatprep.subr.bf16.mxu1 %v5901_v39  ;;  %v6618_v39 = vld [vmem:[#allocation7 + $0x864] ss:$8 sps:$4 sm:$0xff]  }
 0x509   :  { %5109 = vmatprep.subr.bf16.mxu0 %v6618_v39  ;;  %v3386_v39 = vld [vmem:[#allocation8 + $0x610] sm:$0xff] }
 0x50a   :  { %5110 = vmatpush1.bf16.msra.mxu0 %v6616_v36  ;;  %v6645_v36 = vld [vmem:[#allocation7 + $0x8f4] ss:$8 sps:$4 sm:$0xff]  }
 0x50b   :  { %4185 = vmatpush1.bf16.msra.mxu1 %v5900_v45  ;;  %v5980_v45 = vcombine.low %v3433_v33, %v3437_v60  ;;  %5111 = vmatprep.subr.bf16.mxu0 %v6621_v48  ;;  %v3382_v33 = vld [vmem:[#allocation8 + $0x5f0] sm:$0xff]  ;;  %v6640_v60 = vld [vmem:[#allocation7 + $0x8e0] ss:$8 sps:$4 sm:$0xff]  }
 0x50c   :  { %4186 = vmatprep.subr.bf16.mxu1 %v5909_v46  ;;  %v5989_v46 = vcombine.high %v3441_v40, %v3445_v44  ;;  %v3390_v40 = vld [vmem:[#allocation8 + $0x630] sm:$0xff] }
 0x50d   :  { %v6643_v44 = vld [vmem:[#allocation7 + $0x8f0] ss:$8 sps:$4 sm:$0xff]  }
 0x50e   :  { %5112 = vmatpush1.bf16.msra.mxu0 %v6619_v47  ;;  %v6648_v47 = vld [vmem:[#allocation7 + $0x904] ss:$8 sps:$4 sm:$0xff]   ;;  %v3394_v48 = vld [vmem:[#allocation8 + $0x650] sm:$0xff] }
 0x50f   :  { %4187 = vmatpush1.bf16.msra.mxu1 %v5908_v49  ;;  %v3322_v49 = vld [vmem:[#allocation8 + $0x410] sm:$0xff] }
 0x510   :  { %4188 = vmatprep.subr.bf16.mxu1 %v5917_v50  ;;  %v3326_v50 = vld [vmem:[#allocation8 + $0x430] sm:$0xff] }
 0x511   :  { %v5871_v38 = vcombine.high %v3322_v49, %v3326_v50 }
 0x513   :  { %4189 = vmatpush1.bf16.msra.mxu1 %v5916_v53  ;;  %v6622_v53 = vld [vmem:[#allocation7 + $0x880] ss:$8 sps:$4 sm:$0xff]  }
 0x514   :  { %4190 = vmatprep.subr.bf16.mxu1 %v5925_v54  ;;  %v6624_v54 = vld [vmem:[#allocation7 + $0x884] ss:$8 sps:$4 sm:$0xff]  }
 0x515   :  { %5113 = vmatprep.subr.bf16.mxu0 %v6624_v54 }
 0x516   :  { %5114 = vmatpush1.bf16.msra.mxu0 %v6622_v53  ;;  %v3406_v53 = vld [vmem:[#allocation8 + $0x6b0] sm:$0xff] }
 0x517   :  { %4191 = vmatpush1.bf16.msra.mxu1 %v5924_v57  ;;  %v5870_v57 = vcombine.low %v3322_v49, %v3326_v50  ;;  %5115 = vmatprep.subr.bf16.mxu0 %v6627_v21  ;;  %v3398_v49 = vld [vmem:[#allocation8 + $0x670] sm:$0xff]  ;;  %v5934_v50 = vcombine.low %v3386_v39, %v3390_v40 }
 0x518   :  { %4192 = vmatprep.subr.bf16.mxu1 %v5933_v58  ;;  %v5879_v58 = vcombine.high %v3330_v55, %v3334_v56  ;;  %v5942_v54 = vcombine.low %v3394_v48, %v3398_v49 }
 0x51a   :  { %5116 = vmatpush1.bf16.msra.mxu0 %v6625_v61 }
 0x51b   :  { %4193 = vmatpush1.bf16.msra.mxu1 %v5932_v63  ;;  %v6630_v63 = vld [vmem:[#allocation7 + $0x8a4] ss:$8 sps:$4 sm:$0xff]  }
 0x51c   :  { %4194 = vmatprep.subr.bf16.mxu1 %v5941_v0  ;;  %v5878_v0 = vcombine.low %v3330_v55, %v3334_v56  ;;  %5117 = vmatprep.subr.bf16.mxu0 %v6630_v63  ;;  %v3410_v56 = vld [vmem:[#allocation8 + $0x6d0] sm:$0xff] }
 0x51e   :  { %5118 = vmatpush1.bf16.msra.mxu0 %v6628_v3 }
 0x51f   :  { %4195 = vmatpush1.bf16.msra.mxu1 %v5940_v5  ;;  %v6633_v5 = vld [vmem:[#allocation7 + $0x8b4] ss:$8 sps:$4 sm:$0xff]  }
 0x520   :  { %4196 = vmatprep.subr.bf16.mxu1 %v5949_v6  ;;  %v5886_v6 = vcombine.low %v3338_v59, %v3342_v41  ;;  %5119 = vmatprep.subr.bf16.mxu0 %v6633_v5  ;;  %v3418_v59 = vld [vmem:[#allocation8 + $0x710] sm:$0xff] }
 0x521   :  { %v3422_v41 = vld [vmem:[#allocation8 + $0x730] sm:$0xff] }
 0x522   :  { %5120 = vmatpush1.bf16.msra.mxu0 %v6631_v8  ;;  %v5967_v63 = vcombine.high %v3418_v59, %v3422_v41  ;;  %v5966_v3 = vcombine.low %v3418_v59, %v3422_v41  ;;  %v3438_v5 = vld [vmem:[#allocation8 + $0x7b0] sm:$0xff]  ;;  %v3403_v41 = vld [vmem:[#allocation8 + $0x698] sm:$0xff] }
 0x523   :  { %4197 = vmatpush1.bf16.msra.mxu1 %v5948_v12  ;;  %v6636_v12 = vld [vmem:[#allocation7 + $0x8c4] ss:$8 sps:$4 sm:$0xff]   ;;  %v3442_v8 = vld [vmem:[#allocation8 + $0x7d0] sm:$0xff] }
 0x524   :  { %4198 = vmatprep.subr.bf16.mxu1 %v5957_v13  ;;  %v5894_v13 = vcombine.low %v3346_v29, %v3350_v4  ;;  %5121 = vmatprep.subr.bf16.mxu0 %v6636_v12  ;;  %v3434_v4 = vld [vmem:[#allocation8 + $0x790] sm:$0xff] }
 0x526   :  { %5122 = vmatpush1.bf16.msra.mxu0 %v6634_v18 }
 0x527   :  { %4199 = vmatpush1.bf16.msra.mxu1 %v5956_v22  ;;  %v6639_v22 = vld [vmem:[#allocation7 + $0x8d4] ss:$8 sps:$4 sm:$0xff]  }
 0x528   :  { %4200 = vmatprep.subr.bf16.mxu1 %v5965_v23  ;;  %v5902_v23 = vcombine.low %v3354_v9, %v3358_v11  ;;  %5123 = vmatprep.subr.bf16.mxu0 %v6639_v22  ;;  %v3446_v9 = vld [vmem:[#allocation8 + $0x7f0] sm:$0xff]  ;;  %v5982_v11 = vcombine.low %v3434_v4, %v3438_v5  ;;  %v3335_v22 = vld [vmem:[#allocation8 + $0x478] sm:$0xff] }
 0x529   :  { %v5991_v12 = vcombine.high %v3442_v8, %v3446_v9  ;;  %v5990_v18 = vcombine.low %v3442_v8, %v3446_v9  ;;  %v3427_v9 = vld [vmem:[#allocation8 + $0x758] sm:$0xff] }
 0x52a   :  { %5124 = vmatpush1.bf16.msra.mxu0 %v6637_v27  ;;  %v3339_v27 = vld [vmem:[#allocation8 + $0x498] sm:$0xff] }
 0x52b   :  { %4201 = vmatpush1.bf16.msra.mxu1 %v5964_v31  ;;  %v5910_v31 = vcombine.low %v3362_v19, %v3366_v20  ;;  %5125 = vmatprep.subr.bf16.mxu0 %v6642_v14  ;;  %v3331_v20 = vld [vmem:[#allocation8 + $0x458] sm:$0xff] }
 0x52c   :  { %4202 = vmatprep.subr.bf16.mxu1 %v5973_v32  ;;  %v5919_v32 = vcombine.high %v3370_v28, %v3374_v30  ;;  %v3351_v14 = vld [vmem:[#allocation8 + $0x4f8] sm:$0xff] }
 0x52e   :  { %5126 = vmatpush1.bf16.msra.mxu0 %v6640_v60  ;;  %v3355_v60 = vld [vmem:[#allocation8 + $0x518] sm:$0xff] }
 0x52f   :  { %4203 = vmatpush1.bf16.msra.mxu1 %v5972_v34  ;;  %v5918_v34 = vcombine.low %v3370_v28, %v3374_v30  ;;  %5127 = vmatprep.subr.bf16.mxu0 %v6645_v36  ;;  %v3343_v28 = vld [vmem:[#allocation8 + $0x4b8] sm:$0xff]  ;;  %v5880_v30 = vcombine.low %v3331_v20, %v3335_v22 }
 0x530   :  { %4204 = vmatprep.subr.bf16.mxu1 %v5981_v35  ;;  %v5927_v35 = vcombine.high %v3378_v15, %v3382_v33 }
 0x532   :  { %5128 = vmatpush1.bf16.msra.mxu0 %v6643_v44 }
 0x533   :  { %4205 = vmatpush1.bf16.msra.mxu1 %v5980_v45  ;;  %v5926_v45 = vcombine.low %v3378_v15, %v3382_v33  ;;  %5138 = vmatprep.subr.bf16.mxu0 %v6648_v47  ;;  %v5888_v15 = vcombine.low %v3339_v27, %v3343_v28 }
 0x534   :  { %4206 = vmatprep.subr.bf16.mxu1 %v5989_v46  ;;  %v5935_v46 = vcombine.high %v3386_v39, %v3390_v40  ;;  %v3363_v39 = vld [vmem:[#allocation8 + $0x558] sm:$0xff] }
 0x535   :  { %v3367_v40 = vld [vmem:[#allocation8 + $0x578] sm:$0xff] }
 0x536   :  { %v5912_v47 = vcombine.low %v3363_v39, %v3367_v40 }
 0x537   :  { %4207 = vmatpush1.bf16.msra.mxu1 %v5988_v52  ;;  %v5943_v52 = vcombine.high %v3394_v48, %v3398_v49  ;;  %v3379_v49 = vld [vmem:[#allocation8 + $0x5d8] sm:$0xff] }
 0x538   :  { %4217 = vmatprep.subr.bf16.mxu1 %v5871_v38  ;;  %v3402_v38 = vld [vmem:[#allocation8 + $0x690] sm:$0xff] }
 0x539   :  { %v5951_v55 = vcombine.high %v3402_v38, %v3406_v53 }
 0x53a   :  { %4209 = vmatmul.mubr.bf16.vlgmr.msra.gmra.mrb[24].mxu1 %v7195_v26 }
 0x53b   :  { %4218 = vmatpush1.bf16.msra.mxu1 %v5870_v57  ;;  %4249 = vmatprep.mubr.bf16.mxu1 %v7193_v25  ;;  %v3414_v57 = vld [vmem:[#allocation8 + $0x6f0] sm:$0xff] }
 0x53c   :  { %4219 = vmatprep.subr.bf16.mxu1 %v5879_v58  ;;  %v5950_v58 = vcombine.low %v3402_v38, %v3406_v53  ;;  %v5959_v21 = vcombine.high %v3410_v56, %v3414_v57  ;;  %v5958_v61 = vcombine.low %v3410_v56, %v3414_v57  ;;  %v3387_v53 = vld [vmem:[#allocation8 + $0x618] sm:$0xff] }
 0x53d   :  { %v3395_v57 = vld [vmem:[#allocation8 + $0x658] sm:$0xff] }
 0x53f   :  { %4220 = vmatpush1.bf16.msra.mxu1 %v5878_v0  ;;  %v3426_v0 = vld [vmem:[#allocation8 + $0x750] sm:$0xff] }
 0x540   :  { %4221 = vmatprep.subr.bf16.mxu1 %v5887_v1  ;;  %v3430_v1 = vld [vmem:[#allocation8 + $0x770] sm:$0xff] }
 0x541   :  { %v5975_v29 = vcombine.high %v3426_v0, %v3430_v1 }
 0x543   :  { %4222 = vmatpush1.bf16.msra.mxu1 %v5886_v6  ;;  %v5974_v6 = vcombine.low %v3426_v0, %v3430_v1  ;;  %v3411_v1 = vld [vmem:[#allocation8 + $0x6d8] sm:$0xff] }
 0x544   :  { %4223 = vmatprep.subr.bf16.mxu1 %v5895_v7  ;;  %v5983_v7 = vcombine.high %v3434_v4, %v3438_v5  ;;  %v3419_v5 = vld [vmem:[#allocation8 + $0x718] sm:$0xff] }
 0x547   :  { %4224 = vmatpush1.bf16.msra.mxu1 %v5894_v13  ;;  %v3323_v13 = vld [vmem:[#allocation8 + $0x418] sm:$0xff] }
 0x548   :  { %4225 = vmatprep.subr.bf16.mxu1 %v5903_v16  ;;  %v3327_v16 = vld [vmem:[#allocation8 + $0x438] sm:$0xff] }
 0x549   :  { %v5873_v19 = vcombine.high %v3323_v13, %v3327_v16 }
 0x54b   :  { %4226 = vmatpush1.bf16.msra.mxu1 %v5902_v23  ;;  %v5872_v23 = vcombine.low %v3323_v13, %v3327_v16  ;;  %v3435_v16 = vld [vmem:[#allocation8 + $0x798] sm:$0xff] }
 0x54c   :  { %4227 = vmatprep.subr.bf16.mxu1 %v5911_v24  ;;  %v5881_v24 = vcombine.high %v3331_v20, %v3335_v22  ;;  %v3443_v22 = vld [vmem:[#allocation8 + $0x7d8] sm:$0xff] }
 0x54f   :  { %4228 = vmatpush1.bf16.msra.mxu1 %v5910_v31  ;;  %v5889_v31 = vcombine.high %v3339_v27, %v3343_v28 }
 0x550   :  { %4229 = vmatprep.subr.bf16.mxu1 %v5919_v32  ;;  %v3347_v32 = vld [vmem:[#allocation8 + $0x4d8] sm:$0xff] }
 0x551   :  { %v5897_v33 = vcombine.high %v3347_v32, %v3351_v14 }
 0x553   :  { %4230 = vmatpush1.bf16.msra.mxu1 %v5918_v34  ;;  %v3359_v34 = vld [vmem:[#allocation8 + $0x538] sm:$0xff] }
 0x554   :  { %4231 = vmatprep.subr.bf16.mxu1 %v5927_v35  ;;  %v5896_v35 = vcombine.low %v3347_v32, %v3351_v14  ;;  %v5905_v36 = vcombine.high %v3355_v60, %v3359_v34  ;;  %v5904_v44 = vcombine.low %v3355_v60, %v3359_v34 }
 0x557   :  { %4232 = vmatpush1.bf16.msra.mxu1 %v5926_v45  ;;  %v3371_v45 = vld [vmem:[#allocation8 + $0x598] sm:$0xff] }
 0x558   :  { %4233 = vmatprep.subr.bf16.mxu1 %v5935_v46  ;;  %v3375_v46 = vld [vmem:[#allocation8 + $0x5b8] sm:$0xff] }
 0x559   :  { %v5921_v48 = vcombine.high %v3371_v45, %v3375_v46 }
 0x55b   :  { %4234 = vmatpush1.bf16.msra.mxu1 %v5934_v50  ;;  %v3383_v50 = vld [vmem:[#allocation8 + $0x5f8] sm:$0xff] }
 0x55c   :  { %4235 = vmatprep.subr.bf16.mxu1 %v5943_v52  ;;  %v5920_v52 = vcombine.low %v3371_v45, %v3375_v46  ;;  %v5929_v38 = vcombine.high %v3379_v49, %v3383_v50  ;;  %v6651_v46 = vld [vmem:[#allocation7 + $0x914] ss:$8 sps:$4 sm:$0xff]  }
 0x55f   :  { %4236 = vmatpush1.bf16.msra.mxu1 %v5942_v54  ;;  %v3391_v54 = vld [vmem:[#allocation8 + $0x638] sm:$0xff] }
 0x560   :  { %4237 = vmatprep.subr.bf16.mxu1 %v5951_v55  ;;  %v5928_v55 = vcombine.low %v3379_v49, %v3383_v50  ;;  %v5937_v56 = vcombine.high %v3387_v53, %v3391_v54  ;;  %v6652_v49 = vld [vmem:[#allocation7 + $0x920] ss:$8 sps:$4 sm:$0xff]   ;;  %v6657_v50 = vld [vmem:[#allocation7 + $0x934] ss:$8 sps:$4 sm:$0xff]  }
 0x563   :  { %4238 = vmatpush1.bf16.msra.mxu1 %v5950_v58  ;;  %v3399_v58 = vld [vmem:[#allocation8 + $0x678] sm:$0xff] }
 0x564   :  { %4239 = vmatprep.subr.bf16.mxu1 %v5959_v21  ;;  %v5936_v21 = vcombine.low %v3387_v53, %v3391_v54  ;;  %v5945_v59 = vcombine.high %v3395_v57, %v3399_v58  ;;  %v6658_v53 = vld [vmem:[#allocation7 + $0x940] ss:$8 sps:$4 sm:$0xff]   ;;  %v6663_v54 = vld [vmem:[#allocation7 + $0x954] ss:$8 sps:$4 sm:$0xff]  }
 0x567   :  { %4240 = vmatpush1.bf16.msra.mxu1 %v5958_v61  ;;  %v3407_v61 = vld [vmem:[#allocation8 + $0x6b8] sm:$0xff] }
 0x568   :  { %4241 = vmatprep.subr.bf16.mxu1 %v5967_v63  ;;  %v5944_v63 = vcombine.low %v3395_v57, %v3399_v58  ;;  %v5953_v0 = vcombine.high %v3403_v41, %v3407_v61  ;;  %v6664_v57 = vld [vmem:[#allocation7 + $0x960] ss:$8 sps:$4 sm:$0xff]   ;;  %v6669_v58 = vld [vmem:[#allocation7 + $0x974] ss:$8 sps:$4 sm:$0xff]  }
 0x56b   :  { %4242 = vmatpush1.bf16.msra.mxu1 %v5966_v3  ;;  %v3415_v3 = vld [vmem:[#allocation8 + $0x6f8] sm:$0xff] }
 0x56c   :  { %4243 = vmatprep.subr.bf16.mxu1 %v5975_v29  ;;  %v5952_v29 = vcombine.low %v3403_v41, %v3407_v61  ;;  %v5961_v4 = vcombine.high %v3411_v1, %v3415_v3  ;;  %v6670_v41 = vld [vmem:[#allocation7 + $0x980] ss:$8 sps:$4 sm:$0xff]   ;;  %v6675_v61 = vld [vmem:[#allocation7 + $0x994] ss:$8 sps:$4 sm:$0xff]  }
 0x56f   :  { %4244 = vmatpush1.bf16.msra.mxu1 %v5974_v6  ;;  %v3423_v6 = vld [vmem:[#allocation8 + $0x738] sm:$0xff] }
 0x570   :  { %4245 = vmatprep.subr.bf16.mxu1 %v5983_v7  ;;  %v5960_v7 = vcombine.low %v3411_v1, %v3415_v3  ;;  %v5969_v8 = vcombine.high %v3419_v5, %v3423_v6  ;;  %v6676_v1 = vld [vmem:[#allocation7 + $0x9a0] ss:$8 sps:$4 sm:$0xff]   ;;  %v6681_v3 = vld [vmem:[#allocation7 + $0x9b4] ss:$8 sps:$4 sm:$0xff]  }
 0x573   :  { %4246 = vmatpush1.bf16.msra.mxu1 %v5982_v11  ;;  %v3431_v11 = vld [vmem:[#allocation8 + $0x778] sm:$0xff] }
 0x574   :  { %4247 = vmatprep.subr.bf16.mxu1 %v5991_v12  ;;  %v5968_v12 = vcombine.low %v3419_v5, %v3423_v6  ;;  %v5977_v13 = vcombine.high %v3427_v9, %v3431_v11  ;;  %v6682_v5 = vld [vmem:[#allocation7 + $0x9c0] ss:$8 sps:$4 sm:$0xff]   ;;  %v6687_v6 = vld [vmem:[#allocation7 + $0x9d4] ss:$8 sps:$4 sm:$0xff]  }
 0x577   :  { %4248 = vmatpush1.bf16.msra.mxu1 %v5990_v18  ;;  %v3439_v18 = vld [vmem:[#allocation8 + $0x7b8] sm:$0xff] }
 0x578   :  { %4258 = vmatprep.subr.bf16.mxu1 %v5873_v19  ;;  %v5976_v19 = vcombine.low %v3427_v9, %v3431_v11  ;;  %v5985_v20 = vcombine.high %v3435_v16, %v3439_v18 }
 0x57a   :  { %4250 = vmatmul.mubr.bf16.vlgmr.msra.gmra.mrb[28].mxu1 %v7195_v26 }
 0x57b   :  { %4259 = vmatpush1.bf16.msra.mxu1 %v5872_v23  ;;  %4290 = vmatprep.mubr.bf16.mxu1 %v7193_v25  ;;  %v5913_v25 = vcombine.high %v3363_v39, %v3367_v40  ;;  %v3447_v23 = vld [vmem:[#allocation8 + $0x7f8] sm:$0xff] }
 0x57c   :  { %4260 = vmatprep.subr.bf16.mxu1 %v5881_v24  ;;  %v5984_v24 = vcombine.low %v3435_v16, %v3439_v18  ;;  %v5993_v27 = vcombine.high %v3443_v22, %v3447_v23  ;;  %v5992_v28 = vcombine.low %v3443_v22, %v3447_v23  ;;  %v6691_v23 = vld [vmem:[#allocation7 + $0x9f0] ss:$8 sps:$4 sm:$0xff]  }
 0x57f   :  { %4261 = vmatpush1.bf16.msra.mxu1 %v5880_v30  ;;  %v3449_v30 = vld [vmem:[#allocation11 + $0x4] ss:$8 sm:$0xf] }
 0x580   :  { %4262 = vmatprep.subr.bf16.mxu1 %v5889_v31  ;;  %v3450_v31 = vld [vmem:[#allocation11 + $0x4] ss:$8 sm:$0xf0] }
 0x581   :  { %v7205_v32 = vor.u32 %v3450_v31, %v3449_v30  ;;  %v6694_v31 = vld [vmem:[#allocation7 + $0xa00] ss:$8 sps:$4 sm:$0xff]  }
 0x583   :  { %4263 = vmatpush1.bf16.msra.mxu1 %v5888_v15  ;;  %v3458_v14 = vrot.slane %v7205_v32, %v7114_v42  ;;  %v3462_v15 = vrot.slane %v7205_v32, %v7117_v43  ;;  %v3466_v9 = vrot.slane %v7205_v32, %v7148_v10  ;;  %v3470_v11 = vrot.slane %v7205_v32, %v7124_v51  ;;  %v6699_v51 = vld [vmem:[#allocation7 + $0xa14] ss:$8 sps:$4 sm:$0xff]  }
 0x584   :  { %4264 = vmatprep.subr.bf16.mxu1 %v5897_v33 }
 0x587   :  { %4265 = vmatpush1.bf16.msra.mxu1 %v5896_v35 }
 0x588   :  { %4266 = vmatprep.subr.bf16.mxu1 %v5905_v36 }
 0x58b   :  { %4267 = vmatpush1.bf16.msra.mxu1 %v5904_v44 }
 0x58c   :  { %4268 = vmatprep.subr.bf16.mxu1 %v5913_v25 }
 0x58f   :  { %4269 = vmatpush1.bf16.msra.mxu1 %v5912_v47  ;;  %v6649_v47 = vld [vmem:[#allocation7 + $0x910] ss:$8 sps:$4 sm:$0xff]  }
 0x590   :  { %4270 = vmatprep.subr.bf16.mxu1 %v5921_v48  ;;  %v6654_v48 = vld [vmem:[#allocation7 + $0x924] ss:$8 sps:$4 sm:$0xff]  }
 0x593   :  { %4271 = vmatpush1.bf16.msra.mxu1 %v5920_v52  ;;  %v6655_v52 = vld [vmem:[#allocation7 + $0x930] ss:$8 sps:$4 sm:$0xff]  }
 0x594   :  { %4272 = vmatprep.subr.bf16.mxu1 %v5929_v38  ;;  %v6660_v38 = vld [vmem:[#allocation7 + $0x944] ss:$8 sps:$4 sm:$0xff]  }
 0x597   :  { %4273 = vmatpush1.bf16.msra.mxu1 %v5928_v55  ;;  %v6661_v55 = vld [vmem:[#allocation7 + $0x950] ss:$8 sps:$4 sm:$0xff]  }
 0x598   :  { %4274 = vmatprep.subr.bf16.mxu1 %v5937_v56  ;;  %v6666_v56 = vld [vmem:[#allocation7 + $0x964] ss:$8 sps:$4 sm:$0xff]  }
 0x59b   :  { %4275 = vmatpush1.bf16.msra.mxu1 %v5936_v21  ;;  %v6667_v21 = vld [vmem:[#allocation7 + $0x970] ss:$8 sps:$4 sm:$0xff]  }
 0x59c   :  { %4276 = vmatprep.subr.bf16.mxu1 %v5945_v59  ;;  %v6672_v59 = vld [vmem:[#allocation7 + $0x984] ss:$8 sps:$4 sm:$0xff]  }
 0x59f   :  { %4277 = vmatpush1.bf16.msra.mxu1 %v5944_v63  ;;  %v6673_v63 = vld [vmem:[#allocation7 + $0x990] ss:$8 sps:$4 sm:$0xff]  }
 0x5a0   :  { %4278 = vmatprep.subr.bf16.mxu1 %v5953_v0  ;;  %v6678_v0 = vld [vmem:[#allocation7 + $0x9a4] ss:$8 sps:$4 sm:$0xff]  }
 0x5a3   :  { %4279 = vmatpush1.bf16.msra.mxu1 %v5952_v29  ;;  %v6679_v29 = vld [vmem:[#allocation7 + $0x9b0] ss:$8 sps:$4 sm:$0xff]  }
 0x5a4   :  { %4280 = vmatprep.subr.bf16.mxu1 %v5961_v4  ;;  %v6684_v4 = vld [vmem:[#allocation7 + $0x9c4] ss:$8 sps:$4 sm:$0xff]  }
 0x5a7   :  { %4281 = vmatpush1.bf16.msra.mxu1 %v5960_v7  ;;  %v6685_v7 = vld [vmem:[#allocation7 + $0x9d0] ss:$8 sps:$4 sm:$0xff]  }
 0x5a8   :  { %4282 = vmatprep.subr.bf16.mxu1 %v5969_v8  ;;  %v6690_v8 = vld [vmem:[#allocation7 + $0x9e4] ss:$8 sps:$4 sm:$0xff]  }
 0x5ab   :  { %4283 = vmatpush1.bf16.msra.mxu1 %v5968_v12  ;;  %v6688_v12 = vld [vmem:[#allocation7 + $0x9e0] ss:$8 sps:$4 sm:$0xff]  }
 0x5ac   :  { %4284 = vmatprep.subr.bf16.mxu1 %v5977_v13  ;;  %v6693_v13 = vld [vmem:[#allocation7 + $0x9f4] ss:$8 sps:$4 sm:$0xff]  }
 0x5af   :  { %4285 = vmatpush1.bf16.msra.mxu1 %v5976_v19 }
 0x5b0   :  { %4286 = vmatprep.subr.bf16.mxu1 %v5985_v20 }
 0x5b3   :  { %4287 = vmatpush1.bf16.msra.mxu1 %v5984_v24 }
 0x5b4   :  { %4288 = vmatprep.subr.bf16.mxu1 %v5993_v27 }
 0x5b7   :  { %4289 = vmatpush1.bf16.msra.mxu1 %v5992_v28  ;;  %v6696_v28 = vld [vmem:[#allocation7 + $0xa04] ss:$8 sps:$4 sm:$0xff]  }
 0x5ba   :  { %4291 = vmatmul.mubr.bf16.vlgmr.msra.gmra.mrb[32].mxu1 %v7195_v26  ;;  %v6646_v26 = vld [vmem:[#allocation7 + $0x900] ss:$8 sps:$4 sm:$0xff]  }
 0x5cd   :  { %v4169_v33 = vpop.f32.mrb[20].mxu1 }
 0x5ce   :  { %v4170_v60 = vadd.f32 %v4169_v33, %v3458_v14  ;;  %v4171_v34 = vpop.f32.mrb[21].mxu1  ;;  %v6791_v33 = vld [vmem:[#allocation10] sm:$0xff]  }
 0x5cf   :  { %v4172_v35 = vadd.f32 %v4171_v34, %v3462_v15  ;;  %v4173_v36 = vpop.f32.mrb[22].mxu1  ;;  %v6790_v15 = vld [vmem:[#allocation10 + $0x40] sm:$0xff]   ;;  %v6697_v34 = vld [vmem:[#allocation7 + $0xa10] ss:$8 sps:$4 sm:$0xff]  }
 0x5d0   :  { %v4299_v39 = vmax.f32 %v4170_v60, 0.0  ;;  %v4174_v40 = vpop.f32.mrb[23].mxu1  ;;  %v6792_v60 = vld [vmem:[#allocation10 + $0x48] sm:$0xff]   ;;  %6138 = vmatprep.subr.bf16.mxu1 %v6790_v15  ;;  %v6753_v15 = vld [vmem:[#allocation7 + $0xb34] ss:$8 sps:$4 sm:$0xff]  }
 0x5d1   :  { %v4300_v44 = vmax.f32 %v4172_v35, 0.0  ;;  %v6702_v35 = vld [vmem:[#allocation7 + $0xa24] ss:$8 sps:$4 sm:$0xff]   ;;  %6139 = vmatpush3.bf16.msra.mxu1 %v6791_v33  ;;  %v6700_v40 = vld [vmem:[#allocation7 + $0xa20] ss:$8 sps:$4 sm:$0xff]  }
 0x5d2   :  { %v4438_v45 = vpack.c.bf16 %v4299_v39, %v4299_v39  ;;  %v6793_v36 = vld [vmem:[#allocation10 + $0x8] sm:$0xff]   ;;  %6140 = vmatprep.subr.bf16.mxu1 %v6792_v60  ;;  %v6794_v39 = vld [vmem:[#allocation10 + $0x50] sm:$0xff]  }
 0x5d3   :  { %v4439_v25 = vpack.c.bf16 %v4300_v44, %v4300_v44  ;;  %v6705_v44 = vld [vmem:[#allocation7 + $0xa34] ss:$8 sps:$4 sm:$0xff]   ;;  %v6751_v33 = vld [vmem:[#allocation7 + $0xb30] ss:$8 sps:$4 sm:$0xff]   ;;  %v6756_v60 = vld [vmem:[#allocation7 + $0xb44] ss:$8 sps:$4 sm:$0xff]  }
 0x5d5   :  { %5129 = vmatprep.mubr.bf16.mxu0 %v4439_v25  ;;  %6141 = vmatpush3.bf16.msra.mxu1 %v6793_v36  ;;  %v6795_v25 = vld [vmem:[#allocation10 + $0x10] sm:$0xff]  }
 0x5d6   :  { %5130 = vmatmul.mubr.bf16.vlgmr.msra.gmra.mrb[24].mxu0 %v4438_v45  ;;  %6142 = vmatprep.subr.bf16.mxu1 %v6794_v39  ;;  %v6703_v45 = vld [vmem:[#allocation7 + $0xa30] ss:$8 sps:$4 sm:$0xff]   ;;  %v6762_v39 = vld [vmem:[#allocation7 + $0xb64] ss:$8 sps:$4 sm:$0xff]  }
 0x5d7   :  { %5139 = vmatpush1.bf16.msra.mxu0 %v6646_v26  ;;  %v6796_v26 = vld [vmem:[#allocation10 + $0x58] sm:$0xff]  }
 0x5d8   :  { %5140 = vmatprep.subr.bf16.mxu0 %v6651_v46  ;;  %v6708_v46 = vld [vmem:[#allocation7 + $0xa44] ss:$8 sps:$4 sm:$0xff]   ;;  %v6757_v36 = vld [vmem:[#allocation7 + $0xb50] ss:$8 sps:$4 sm:$0xff]  }
 0x5d9   :  { %6143 = vmatpush3.bf16.msra.mxu1 %v6795_v25  ;;  %v6763_v25 = vld [vmem:[#allocation7 + $0xb70] ss:$8 sps:$4 sm:$0xff]  }
 0x5da   :  { %6144 = vmatprep.subr.bf16.mxu1 %v6796_v26  ;;  %v6768_v26 = vld [vmem:[#allocation7 + $0xb84] ss:$8 sps:$4 sm:$0xff]  }
 0x5db   :  { %5141 = vmatpush1.bf16.msra.mxu0 %v6649_v47  ;;  %v6797_v47 = vld [vmem:[#allocation10 + $0x18] sm:$0xff]  }
 0x5dc   :  { %5142 = vmatprep.subr.bf16.mxu0 %v6654_v48  ;;  %v6798_v48 = vld [vmem:[#allocation10 + $0x60] sm:$0xff]  }
 0x5dd   :  { %6145 = vmatpush3.bf16.msra.mxu1 %v6797_v47  ;;  %v6769_v47 = vld [vmem:[#allocation7 + $0xb90] ss:$8 sps:$4 sm:$0xff]  }
 0x5de   :  { %6146 = vmatprep.subr.bf16.mxu1 %v6798_v48  ;;  %v6774_v48 = vld [vmem:[#allocation7 + $0xba4] ss:$8 sps:$4 sm:$0xff]  }
 0x5df   :  { %5143 = vmatpush1.bf16.msra.mxu0 %v6652_v49  ;;  %v6706_v49 = vld [vmem:[#allocation7 + $0xa40] ss:$8 sps:$4 sm:$0xff]  }
 0x5e0   :  { %5144 = vmatprep.subr.bf16.mxu0 %v6657_v50  ;;  %v6711_v50 = vld [vmem:[#allocation7 + $0xa54] ss:$8 sps:$4 sm:$0xff]  }
 0x5e3   :  { %5145 = vmatpush1.bf16.msra.mxu0 %v6655_v52  ;;  %v6799_v52 = vld [vmem:[#allocation10 + $0x20] sm:$0xff]  }
 0x5e4   :  { %5146 = vmatprep.subr.bf16.mxu0 %v6660_v38  ;;  %v6800_v38 = vld [vmem:[#allocation10 + $0x68] sm:$0xff]   ;;  %6147 = vmatpush3.bf16.msra.mxu1 %v6799_v52  ;;  %v6775_v52 = vld [vmem:[#allocation7 + $0xbb0] ss:$8 sps:$4 sm:$0xff]  }
 0x5e5   :  { %6148 = vmatprep.subr.bf16.mxu1 %v6800_v38  ;;  %v6780_v38 = vld [vmem:[#allocation7 + $0xbc4] ss:$8 sps:$4 sm:$0xff]  }
 0x5e7   :  { %5147 = vmatpush1.bf16.msra.mxu0 %v6658_v53  ;;  %v6709_v53 = vld [vmem:[#allocation7 + $0xa50] ss:$8 sps:$4 sm:$0xff]  }
 0x5e8   :  { %5148 = vmatprep.subr.bf16.mxu0 %v6663_v54  ;;  %v6714_v54 = vld [vmem:[#allocation7 + $0xa64] ss:$8 sps:$4 sm:$0xff]  }
 0x5eb   :  { %5149 = vmatpush1.bf16.msra.mxu0 %v6661_v55  ;;  %v6801_v55 = vld [vmem:[#allocation10 + $0x28] sm:$0xff]  }
 0x5ec   :  { %5150 = vmatprep.subr.bf16.mxu0 %v6666_v56  ;;  %v6712_v56 = vld [vmem:[#allocation7 + $0xa60] ss:$8 sps:$4 sm:$0xff]   ;;  %6149 = vmatpush3.bf16.msra.mxu1 %v6801_v55  ;;  %v6781_v55 = vld [vmem:[#allocation7 + $0xbd0] ss:$8 sps:$4 sm:$0xff]  }
 0x5ef   :  { %5151 = vmatpush1.bf16.msra.mxu0 %v6664_v57  ;;  %v6717_v57 = vld [vmem:[#allocation7 + $0xa74] ss:$8 sps:$4 sm:$0xff]  }
 0x5f0   :  { %5152 = vmatprep.subr.bf16.mxu0 %v6669_v58  ;;  %v6715_v58 = vld [vmem:[#allocation7 + $0xa70] ss:$8 sps:$4 sm:$0xff]  }
 0x5f3   :  { %5153 = vmatpush1.bf16.msra.mxu0 %v6667_v21  ;;  %v6720_v21 = vld [vmem:[#allocation7 + $0xa84] ss:$8 sps:$4 sm:$0xff]  }
 0x5f4   :  { %5154 = vmatprep.subr.bf16.mxu0 %v6672_v59  ;;  %v6718_v59 = vld [vmem:[#allocation7 + $0xa80] ss:$8 sps:$4 sm:$0xff]  }
 0x5f7   :  { %5155 = vmatpush1.bf16.msra.mxu0 %v6670_v41  ;;  %v6723_v41 = vld [vmem:[#allocation7 + $0xa94] ss:$8 sps:$4 sm:$0xff]  }
 0x5f8   :  { %5156 = vmatprep.subr.bf16.mxu0 %v6675_v61  ;;  %v6721_v61 = vld [vmem:[#allocation7 + $0xa90] ss:$8 sps:$4 sm:$0xff]  }
 0x5fb   :  { %5157 = vmatpush1.bf16.msra.mxu0 %v6673_v63  ;;  %v6726_v63 = vld [vmem:[#allocation7 + $0xaa4] ss:$8 sps:$4 sm:$0xff]  }
 0x5fc   :  { %5158 = vmatprep.subr.bf16.mxu0 %v6678_v0  ;;  %v6724_v0 = vld [vmem:[#allocation7 + $0xaa0] ss:$8 sps:$4 sm:$0xff]  }
 0x5ff   :  { %5159 = vmatpush1.bf16.msra.mxu0 %v6676_v1  ;;  %v6729_v1 = vld [vmem:[#allocation7 + $0xab4] ss:$8 sps:$4 sm:$0xff]  }
 0x600   :  { %5160 = vmatprep.subr.bf16.mxu0 %v6681_v3  ;;  %v6727_v3 = vld [vmem:[#allocation7 + $0xab0] ss:$8 sps:$4 sm:$0xff]  }
 0x603   :  { %5161 = vmatpush1.bf16.msra.mxu0 %v6679_v29  ;;  %v6732_v29 = vld [vmem:[#allocation7 + $0xac4] ss:$8 sps:$4 sm:$0xff]  }
 0x604   :  { %5162 = vmatprep.subr.bf16.mxu0 %v6684_v4  ;;  %v6730_v4 = vld [vmem:[#allocation7 + $0xac0] ss:$8 sps:$4 sm:$0xff]  }
 0x607   :  { %5163 = vmatpush1.bf16.msra.mxu0 %v6682_v5  ;;  %v6735_v5 = vld [vmem:[#allocation7 + $0xad4] ss:$8 sps:$4 sm:$0xff]  }
 0x608   :  { %5164 = vmatprep.subr.bf16.mxu0 %v6687_v6  ;;  %v6733_v6 = vld [vmem:[#allocation7 + $0xad0] ss:$8 sps:$4 sm:$0xff]  }
 0x60b   :  { %5165 = vmatpush1.bf16.msra.mxu0 %v6685_v7  ;;  %v6738_v7 = vld [vmem:[#allocation7 + $0xae4] ss:$8 sps:$4 sm:$0xff]  }
 0x60c   :  { %5166 = vmatprep.subr.bf16.mxu0 %v6690_v8  ;;  %v3474_v8 = vrot.slane %v7205_v32, %v7131_v62 }
 0x60d   :  { %v4210_v16 = vpop.f32.mrb[24].mxu1 }
 0x60e   :  { %v4211_v18 = vadd.f32 %v4210_v16, %v3466_v9  ;;  %v4212_v19 = vpop.f32.mrb[25].mxu1  ;;  %v3478_v9 = vrot.slane %v7205_v32, %v7134_v2  ;;  %v6747_v2 = vld [vmem:[#allocation7 + $0xb14] ss:$8 sps:$4 sm:$0xff]  }
 0x60f   :  { %v4213_v20 = vadd.f32 %v4212_v19, %v3470_v11  ;;  %v4214_v22 = vpop.f32.mrb[26].mxu1  ;;  %5167 = vmatpush1.bf16.msra.mxu0 %v6688_v12  ;;  %v6736_v11 = vld [vmem:[#allocation7 + $0xae0] ss:$8 sps:$4 sm:$0xff]   ;;  %v6741_v12 = vld [vmem:[#allocation7 + $0xaf4] ss:$8 sps:$4 sm:$0xff]  }
 0x610   :  { %v4301_v24 = vmax.f32 %v4211_v18, 0.0  ;;  %v4215_v27 = vpop.f32.mrb[27].mxu1  ;;  %5168 = vmatprep.subr.bf16.mxu0 %v6693_v13  ;;  %v6739_v22 = vld [vmem:[#allocation7 + $0xaf0] ss:$8 sps:$4 sm:$0xff]  }
 0x611   :  { %v4302_v30 = vmax.f32 %v4213_v20, 0.0  ;;  %v6744_v27 = vld [vmem:[#allocation7 + $0xb04] ss:$8 sps:$4 sm:$0xff]  }
 0x612   :  { %v4440_v14 = vpack.c.bf16 %v4301_v24, %v4301_v24 }
 0x613   :  { %v4441_v10 = vpack.c.bf16 %v4302_v30, %v4302_v30  ;;  %5169 = vmatpush1.bf16.msra.mxu0 %v6691_v23  ;;  %v6742_v30 = vld [vmem:[#allocation7 + $0xb00] ss:$8 sps:$4 sm:$0xff]  }
 0x614   :  { %5179 = vmatprep.subr.bf16.mxu0 %v6696_v28 }
 0x615   :  { %5170 = vmatprep.mubr.bf16.mxu0 %v4441_v10 }
 0x616   :  { %5171 = vmatmul.mubr.bf16.vlgmr.msra.gmra.mrb[24].mxu0 %v4440_v14  ;;  %v6750_v14 = vld [vmem:[#allocation7 + $0xb24] ss:$8 sps:$4 sm:$0xff]  }
 0x617   :  { %5180 = vmatpush1.bf16.msra.mxu0 %v6694_v31  ;;  %v6745_v31 = vld [vmem:[#allocation7 + $0xb10] ss:$8 sps:$4 sm:$0xff]  }
 0x618   :  { %5181 = vmatprep.subr.bf16.mxu0 %v6699_v51  ;;  %v6748_v51 = vld [vmem:[#allocation7 + $0xb20] ss:$8 sps:$4 sm:$0xff]  }
 0x61b   :  { %5182 = vmatpush1.bf16.msra.mxu0 %v6697_v34  ;;  %v6754_v34 = vld [vmem:[#allocation7 + $0xb40] ss:$8 sps:$4 sm:$0xff]  }
 0x61c   :  { %5183 = vmatprep.subr.bf16.mxu0 %v6702_v35  ;;  %v6759_v35 = vld [vmem:[#allocation7 + $0xb54] ss:$8 sps:$4 sm:$0xff]  }
 0x61f   :  { %5184 = vmatpush1.bf16.msra.mxu0 %v6700_v40  ;;  %v6760_v40 = vld [vmem:[#allocation7 + $0xb60] ss:$8 sps:$4 sm:$0xff]  }
 0x620   :  { %5185 = vmatprep.subr.bf16.mxu0 %v6705_v44  ;;  %v6765_v44 = vld [vmem:[#allocation7 + $0xb74] ss:$8 sps:$4 sm:$0xff]  }
 0x623   :  { %5186 = vmatpush1.bf16.msra.mxu0 %v6703_v45  ;;  %v6766_v45 = vld [vmem:[#allocation7 + $0xb80] ss:$8 sps:$4 sm:$0xff]  }
 0x624   :  { %5187 = vmatprep.subr.bf16.mxu0 %v6708_v46  ;;  %v6771_v46 = vld [vmem:[#allocation7 + $0xb94] ss:$8 sps:$4 sm:$0xff]  }
 0x627   :  { %5188 = vmatpush1.bf16.msra.mxu0 %v6706_v49  ;;  %v6772_v49 = vld [vmem:[#allocation7 + $0xba0] ss:$8 sps:$4 sm:$0xff]  }
 0x628   :  { %5189 = vmatprep.subr.bf16.mxu0 %v6711_v50  ;;  %v6777_v50 = vld [vmem:[#allocation7 + $0xbb4] ss:$8 sps:$4 sm:$0xff]  }
 0x62b   :  { %5190 = vmatpush1.bf16.msra.mxu0 %v6709_v53  ;;  %v6778_v53 = vld [vmem:[#allocation7 + $0xbc0] ss:$8 sps:$4 sm:$0xff]  }
 0x62c   :  { %5191 = vmatprep.subr.bf16.mxu0 %v6714_v54  ;;  %v6783_v54 = vld [vmem:[#allocation7 + $0xbd4] ss:$8 sps:$4 sm:$0xff]  }
 0x62f   :  { %5192 = vmatpush1.bf16.msra.mxu0 %v6712_v56  ;;  %v6786_v56 = vld [vmem:[#allocation7 + $0xbe4] ss:$8 sps:$4 sm:$0xff]  }
 0x630   :  { %5193 = vmatprep.subr.bf16.mxu0 %v6717_v57  ;;  %v3482_v57 = vrot.slane %v7205_v32, %v7154_v37 }
 0x633   :  { %5194 = vmatpush1.bf16.msra.mxu0 %v6715_v58  ;;  %v3486_v58 = vrot.slane %v7205_v32, %v7141_v17  ;;  %v6802_v17 = vld [vmem:[#allocation10 + $0x70] sm:$0xff]  }
 0x634   :  { %5195 = vmatprep.subr.bf16.mxu0 %v6720_v21  ;;  %v6784_v21 = vld [vmem:[#allocation7 + $0xbe0] ss:$8 sps:$4 sm:$0xff]   ;;  %v6803_v32 = vld [vmem:[#allocation10 + $0x30] sm:$0xff]   ;;  %6150 = vmatprep.subr.bf16.mxu1 %v6802_v17 }
 0x635   :  { %6151 = vmatpush3.bf16.msra.mxu1 %v6803_v32 }
 0x637   :  { %5196 = vmatpush1.bf16.msra.mxu0 %v6718_v59  ;;  %v6789_v59 = vld [vmem:[#allocation7 + $0xbf4] ss:$8 sps:$4 sm:$0xff]  }
 0x638   :  { %5197 = vmatprep.subr.bf16.mxu0 %v6723_v41 }
 0x63b   :  { %5198 = vmatpush1.bf16.msra.mxu0 %v6721_v61 }
 0x63c   :  { %5199 = vmatprep.subr.bf16.mxu0 %v6726_v63 }
 0x63f   :  { %5200 = vmatpush1.bf16.msra.mxu0 %v6724_v0 }
 0x640   :  { %5201 = vmatprep.subr.bf16.mxu0 %v6729_v1 }
 0x643   :  { %5202 = vmatpush1.bf16.msra.mxu0 %v6727_v3  ;;  %v6787_v3 = vld [vmem:[#allocation7 + $0xbf0] ss:$8 sps:$4 sm:$0xff]  }
 0x644   :  { %5203 = vmatprep.subr.bf16.mxu0 %v6732_v29 }
 0x647   :  { %5204 = vmatpush1.bf16.msra.mxu0 %v6730_v4 }
 0x648   :  { %5205 = vmatprep.subr.bf16.mxu0 %v6735_v5 }
 0x64b   :  { %5206 = vmatpush1.bf16.msra.mxu0 %v6733_v6 }
 0x64c   :  { %5207 = vmatprep.subr.bf16.mxu0 %v6738_v7  ;;  %v6804_v7 = vld [vmem:[#allocation10 + $0x78] sm:$0xff]  }
 0x64d   :  { %v4251_v13 = vpop.f32.mrb[28].mxu1  ;;  %6152 = vmatprep.subr.bf16.mxu1 %v6804_v7 }
 0x64e   :  { %v4252_v16 = vadd.f32 %v4251_v13, %v3474_v8  ;;  %v4253_v18 = vpop.f32.mrb[29].mxu1  ;;  %v6805_v8 = vld [vmem:[#allocation10 + $0x38] sm:$0xff]  }
 0x64f   :  { %v4254_v19 = vadd.f32 %v4253_v18, %v3478_v9  ;;  %v4255_v20 = vpop.f32.mrb[30].mxu1  ;;  %5208 = vmatpush1.bf16.msra.mxu0 %v6736_v11  ;;  %6153 = vmatpush3.bf16.msra.mxu1 %v6805_v8  ;;  %v4437_v9 = vld [vmem:[#allocation11 + $0x5] ss:$8 sm:$0x3] }
 0x650   :  { %v4303_v23 = vmax.f32 %v4252_v16, 0.0  ;;  %v4256_v24 = vpop.f32.mrb[31].mxu1  ;;  %5209 = vmatprep.subr.bf16.mxu0 %v6741_v12  ;;  %v4450_v11 = vrot.slane %v4437_v9, %v7114_v42  ;;  %v4454_v12 = vrot.slane %v4437_v9, %v7117_v43 }
 0x651   :  { %v4304_v28 = vmax.f32 %v4254_v19, 0.0 }
 0x652   :  { %v4442_v10 = vpack.c.bf16 %v4303_v23, %v4303_v23 }
 0x653   :  { %v4443_v62 = vpack.c.bf16 %v4304_v28, %v4304_v28  ;;  %5210 = vmatpush1.bf16.msra.mxu0 %v6739_v22 }
 0x654   :  { %5220 = vmatprep.subr.bf16.mxu0 %v6744_v27 }
 0x655   :  { %5211 = vmatprep.mubr.bf16.mxu0 %v4443_v62 }
 0x656   :  { %5212 = vmatmul.mubr.bf16.vlgmr.msra.gmra.mrb[24].mxu0 %v4442_v10  ;;  %v5295_v10 = vld [vmem:[#allocation11 + $0x6] ss:$0 sm:$0xff] }
 0x657   :  { %5221 = vmatpush1.bf16.msra.mxu0 %v6742_v30 }
 0x658   :  { %5222 = vmatprep.subr.bf16.mxu0 %v6747_v2 }
 0x65b   :  { %5223 = vmatpush1.bf16.msra.mxu0 %v6745_v31 }
 0x65c   :  { %5224 = vmatprep.subr.bf16.mxu0 %v6750_v14 }
 0x65f   :  { %5225 = vmatpush1.bf16.msra.mxu0 %v6748_v51 }
 0x660   :  { %5226 = vmatprep.subr.bf16.mxu0 %v6753_v15 }
 0x663   :  { %5227 = vmatpush1.bf16.msra.mxu0 %v6751_v33 }
 0x664   :  { %5228 = vmatprep.subr.bf16.mxu0 %v6756_v60 }
 0x667   :  { %5229 = vmatpush1.bf16.msra.mxu0 %v6754_v34 }
 0x668   :  { %5230 = vmatprep.subr.bf16.mxu0 %v6759_v35 }
 0x66b   :  { %5231 = vmatpush1.bf16.msra.mxu0 %v6757_v36 }
 0x66c   :  { %5232 = vmatprep.subr.bf16.mxu0 %v6762_v39 }
 0x66f   :  { %5233 = vmatpush1.bf16.msra.mxu0 %v6760_v40 }
 0x670   :  { %5234 = vmatprep.subr.bf16.mxu0 %v6765_v44 }
 0x673   :  { %5235 = vmatpush1.bf16.msra.mxu0 %v6763_v25 }
 0x674   :  { %5236 = vmatprep.subr.bf16.mxu0 %v6768_v26 }
 0x677   :  { %5237 = vmatpush1.bf16.msra.mxu0 %v6766_v45 }
 0x678   :  { %5238 = vmatprep.subr.bf16.mxu0 %v6771_v46 }
 0x67b   :  { %5239 = vmatpush1.bf16.msra.mxu0 %v6769_v47 }
 0x67c   :  { %5240 = vmatprep.subr.bf16.mxu0 %v6774_v48 }
 0x67f   :  { %5241 = vmatpush1.bf16.msra.mxu0 %v6772_v49 }
 0x680   :  { %5242 = vmatprep.subr.bf16.mxu0 %v6777_v50 }
 0x683   :  { %5243 = vmatpush1.bf16.msra.mxu0 %v6775_v52 }
 0x684   :  { %5244 = vmatprep.subr.bf16.mxu0 %v6780_v38 }
 0x687   :  { %5245 = vmatpush1.bf16.msra.mxu0 %v6778_v53 }
 0x688   :  { %5246 = vmatprep.subr.bf16.mxu0 %v6783_v54 }
 0x68b   :  { %5247 = vmatpush1.bf16.msra.mxu0 %v6781_v55 }
 0x68c   :  { %5248 = vmatprep.subr.bf16.mxu0 %v6786_v56 }
 0x68d   :  { %v4292_v41 = vpop.f32.mrb[32].mxu1 }
 0x68e   :  { %v4293_v61 = vadd.f32 %v4292_v41, %v3482_v57  ;;  %v4294_v63 = vpop.f32.mrb[33].mxu1 }
 0x68f   :  { %v4295_v0 = vadd.f32 %v4294_v63, %v3486_v58  ;;  %v4296_v1 = vpop.f32.mrb[34].mxu1  ;;  %5249 = vmatpush1.bf16.msra.mxu0 %v6784_v21 }
 0x690   :  { %v4305_v29 = vmax.f32 %v4293_v61, 0.0  ;;  %v4297_v4 = vpop.f32.mrb[35].mxu1  ;;  %5250 = vmatprep.subr.bf16.mxu0 %v6789_v59 }
 0x691   :  { %v4306_v5 = vmax.f32 %v4295_v0, 0.0 }
 0x692   :  { %v4444_v37 = vpack.c.bf16 %v4305_v29, %v4305_v29 }
 0x693   :  { %v4445_v6 = vpack.c.bf16 %v4306_v5, %v4306_v5  ;;  %5251 = vmatpush1.bf16.msra.mxu0 %v6787_v3 }
 0x695   :  { %5252 = vmatprep.mubr.bf16.mxu0 %v4445_v6 }
 0x696   :  { %5253 = vmatmul.mubr.bf16.vlgmr.msra.gmra.mrb[24].mxu0 %v4444_v37 }
 0x769   :  { %v5254_v13 = vpop.f32.mrb[24].mxu0 }
 0x76a   :  { %v6166_v16 = vadd.f32 %v5254_v13, %v4450_v11  ;;  %v5256_v18 = vpop.f32.mrb[25].mxu0 }
 0x76b   :  { %v6167_v19 = vadd.f32 %v5256_v18, %v4454_v12  ;;  %v5258_v20 = vpop.f32.mrb[26].mxu0 }
 0x76c   :  { %v5261_v22 = vmax.f32 %v6166_v16, 0.0  ;;  %v5259_v23 = vpop.f32.mrb[27].mxu0 }
 0x76d   :  { %v5262_v24 = vmax.f32 %v6167_v19, 0.0 }
 0x76e   :  { %v5296_v28 = vpack.c.bf16 %v5261_v22, %v5261_v22 }
 0x76f   :  { %v5297_v27 = vpack.c.bf16 %v5262_v24, %v5262_v24 }
 0x771   :  { %5426 = vmatprep.mubr.bf16.mxu1 %v5297_v27 }
 0x772   :  { %5427 = vmatmul.mubr.bf16.vlgmr.msra.gmra.mrb[36].mxu1 %v5296_v28 }
 0x845   :  { %v6154_v62 = vpop.f32.mrb[36].mxu1 }
 0x846   :  { %v6155_v30 = vpop.f32.mrb[37].mxu1 }
 0x847   :  { %v6156_v2 = vadd.f32 %v6155_v30, %v6154_v62  ;;  %v6157_v31 = vpop.f32.mrb[38].mxu1 }
 0x848   :  { %v6158_v42 = vpop.f32.mrb[39].mxu1 }
 0x849   :  { %v5429_v14 = vadd.f32 %v6156_v2, %v5295_v10 }
 0x84b   :  { %5434 = vmax.xlane.f32.xlu0 %v5429_v14 }
 0x8d8   :  { %v5435_v43 = vpop.xlane.xlu0 %5434 }
 0x8d9   :  { %v5436_v51 = vsub.f32 %v5429_v14, %v5435_v43 }
 0x8db   :  { %v5437_v15 = vmul.f32 1.442695, %v5436_v51 }
 0x8dd   :  { %6806 = vpow2.f32 %v5437_v15 }
 0x8e7   :  { %v6807_v33 = vpop.eup %6806 }
 0x8e8   :  { %5439 = vadd.xlane.f32.xlu0 %v6807_v33 }
 0x975   :  { %v5440_v60 = vpop.xlane.xlu0 %5439 }
 0x976   :  { %6808 = vrcp.f32 %v5440_v60 }
 0x980   :  { %v6809_v34 = vpop.eup %6808 }
 0x981   :  { %v5442_v35 = vmul.f32 %v6809_v34, %v6807_v33 }
 0x983   :  { %5443 = vst [vmem:[#allocation13] sm:$0xff] %v5442_v35 }
 0x984   :  { %6953 = shalt.err (!%p6950_p10)
}
 0x985   :  { %s6954_s22 = scalar_lea.hbm %s7243_s6, 128 }
 0x986   :  { %p6955_p11 = scmp.ne.s32.totalorder %s7243_s6, %s6954_s22  ;;  %p6958_p12 = scmp.lt.u32.totalorder %s6954_s22, %s7243_s6 }
 0x988   :  { %p6960_p13 = pnand %p6958_p12, %p6955_p11 }
 0x98a   :  { %6963 = shalt.err (!%p6960_p13)
}
 0x98b   :  { %5453 = dma.vmem_to_hbm [thread:$0]  %s5451_s14, 128, %s7243_s6, [#allocation4]  }
 0x98c   :  { %6972 = dma.done.wait [#allocation4], 128  }
 0x98d   :  { %6973 = vsyncadd [#allocation4], 4294967168 }
 0x98e   :  { %5457 = vsyncpa [#allocation3], 1 }
 0x98f   :  { %5458 = vsyncpa [#allocation6], 1 }
 0x990   :  { %5459 = vsyncpa [#allocation9], 1 }
 0x991   :  { %5460 = vsyncpa [#allocation12], 1 }
 0x992   :  { %5461 = vsyncpa [#allocation4], 1 }

</bundles_post_ra>
